<compile_context>
chip_gen: v7x
topology: tpu7x:2x2x1
jax: 0.10.0
libtpu: 0.0.40
codegen_flags: <defaults>
</compile_context>

<pallas_src>
import functools
import math

import jax
import jax.numpy as jnp
import numpy as np
from jax import lax
from jax.experimental import pallas as pl
from jax.experimental.pallas import tpu as pltpu  # noqa: F401  (kept for convention)


# ----------------------------- in-kernel helpers -----------------------------

def _sigmoid(x):
    return 1.0 / (1.0 + jnp.exp(-x))


def _softplus(x):
    # log(1 + exp(x)), numerically stable (matches F.softplus in this range)
    return jnp.maximum(x, 0.0) + jnp.log(1.0 + jnp.exp(-jnp.abs(x)))


def _softmax(x, axis):
    m = jnp.max(x, axis=axis, keepdims=True)
    ex = jnp.exp(x - m)
    return ex / jnp.sum(ex, axis=axis, keepdims=True)


# --------------------------------- kernel ------------------------------------

def ntm_read_head_seq_kernel(emb_ref, wt_ref, b_ref, winit_ref, mem_ref,
                             r_ref, w_ref, *, T, B, N, M):
    # -------- loop-invariant (hoisted) work: computed exactly once --------
    # fc_read for ALL timesteps at once: (T*B, C) @ (C, O) + b  with O = M + 6
    o_all = jnp.dot(emb_ref[...], wt_ref[...],
                    preferred_element_type=jnp.float32) + b_ref[...]

    # _split_cols(o, [M,1,1,3,1]) + activations, vectorized over all T steps.
    k_all     = o_all[:, 0:M]                             # (T*B, M)
    beta_all  = _softplus(o_all[:, M:M + 1])              # (T*B, 1)
    g_all     = _sigmoid(o_all[:, M + 1:M + 2])           # (T*B, 1)
    s_all     = _softmax(o_all[:, M + 2:M + 5], axis=1)   # (T*B, 3)
    gamma_all = 1.0 + _softplus(o_all[:, M + 5:M + 6])    # (T*B, 1)

    # Memory-only invariants (read head never writes memory).
    mem = mem_ref[...]                                    # (B, N, M)
    x1 = mem + 1e-16
    inv_n1 = lax.rsqrt(jnp.maximum(jnp.sum(x1 * x1, axis=-1), 1e-16))   # (B, N)

    # Key norms are also recurrence-independent: hoist for all T.
    x2_all = k_all + 1e-16                                # (T*B, M)
    inv_n2_all = lax.rsqrt(
        jnp.maximum(jnp.sum(x2_all * x2_all, axis=-1, keepdims=True), 1e-16))

    # -------- recurrent part: fully unrolled in-kernel loop over T --------
    # (T is a small static constant; full unroll gives the scheduler cross-step
    #  visibility and keeps every slice/store index static.)
    w = winit_ref[...]                                    # (B, N) carried state
    for t in range(T):
        lo, hi = t * B, (t + 1) * B
        x2     = x2_all[lo:hi]                            # (B, M)
        beta   = beta_all[lo:hi]                          # (B, 1)
        g      = g_all[lo:hi]                             # (B, 1)
        s      = s_all[lo:hi]                             # (B, 3)
        gamma  = gamma_all[lo:hi]                         # (B, 1)
        inv_n2 = inv_n2_all[lo:hi]                        # (B, 1)

        # ---- content addressing: softmax(beta * cosine_similarity) ----
        num = jnp.sum(x1 * x2[:, None, :], axis=-1)       # (B, N)
        wc = _softmax(beta * (num * inv_n1 * inv_n2), axis=1)

        # ---- interpolate with previous weights ----
        wg = g * wc + (1.0 - g) * w

        # ---- circular convolution with 3-tap shift kernel ----
        w_sh = (s[:, 0:1] * jnp.roll(wg, 1, axis=1)
                + s[:, 1:2] * wg
                + s[:, 2:3] * jnp.roll(wg, -1, axis=1))

        # ---- sharpen: w^gamma / (sum + 1e-16) (exact divide, w_sh >= 0) ----
        w_pow = jnp.exp(gamma * jnp.log(w_sh + 1e-16))
        w = w_pow / (jnp.sum(w_pow, axis=1, keepdims=True) + 1e-16)

        # ---- outputs (resident VMEM blocks, written back once at the end) ----
        w_ref[t] = w
        r_ref[t] = jnp.sum(w[:, :, None] * mem, axis=1)   # (B, M) read vector


# -------------------------------- wrappers ------------------------------------

def ntm_read_head_seq(emb_seq, w_T, bias, w_init, memory):
    """Fused T-step read-head loop in one grid-less pallas_call.

    emb_seq: (T, B, C); w_T: (C, O) with O = M + 6; bias: (O,)
    w_init:  (B, N) initial w_prev; memory: (B, N, M)
    returns  r_seq (T, B, M), w_seq (T, B, N)
    """
    T, B, C = emb_seq.shape
    _, N, M = memory.shape
    O = w_T.shape[1]
    kernel = functools.partial(ntm_read_head_seq_kernel, T=T, B=B, N=N, M=M)

    # Flatten (T,B,C) -> (T*B,C) on the host so the kernel does a single
    # lane/sublane-friendly 2-D matmul and only static row slices per step.
    r_seq, w_seq = pl.pallas_call(
        kernel,
        out_shape=(jax.ShapeDtypeStruct((T, B, M), jnp.float32),
                   jax.ShapeDtypeStruct((T, B, N), jnp.float32)),
        # No grid / no BlockSpecs: every operand is whole-array VMEM-resident
        # (total working set is a few KB), one DMA in and one DMA out.
    )(emb_seq.reshape(T * B, C).astype(jnp.float32),
      w_T.astype(jnp.float32),
      bias.reshape(1, O).astype(jnp.float32),
      w_init.astype(jnp.float32),
      memory.astype(jnp.float32))
    return r_seq, w_seq


def ntm_read_head(embeddings, w_T, bias, w_prev, memory):
    """Single-step API matching NTMReadHead.forward(embeddings, w_prev) -> (r, w)."""
    r_seq, w_seq = ntm_read_head_seq(embeddings[None], w_T, bias, w_prev, memory)
    return r_seq[0], w_seq[0]


# ------------------------------ pure-JAX reference ----------------------------

def ntm_read_head_ref_step(embeddings, w_T, bias, w_prev, memory):
    _, N, M = memory.shape
    o = embeddings @ w_T + bias
    k, beta, g, s, gamma = (o[:, 0:M], o[:, M:M + 1], o[:, M + 1:M + 2],
                            o[:, M + 2:M + 5], o[:, M + 5:M + 6])
    beta = jax.nn.softplus(beta)
    g = jax.nn.sigmoid(g)
    s = jax.nn.softmax(s, axis=1)
    gamma = 1.0 + jax.nn.softplus(gamma)

    x1 = memory + 1e-16
    x2 = k[:, None, :] + 1e-16
    cos = (jnp.sum(x1 * x2, -1)
           / (jnp.maximum(jnp.linalg.norm(x1, axis=-1), 1e-8)
              * jnp.maximum(jnp.linalg.norm(x2, axis=-1), 1e-8)))
    wc = jax.nn.softmax(beta * cos, axis=1)
    wg = g * wc + (1.0 - g) * w_prev
    w_sh = (s[:, 0:1] * jnp.roll(wg, 1, axis=1)
            + s[:, 1:2] * wg
            + s[:, 2:3] * jnp.roll(wg, -1, axis=1))
    w_pow = w_sh ** gamma
    w = w_pow / (jnp.sum(w_pow, axis=1, keepdims=True) + 1e-16)
    r = jnp.einsum('bn,bnm->bm', w, memory)
    return r, w


def ntm_read_head_ref_seq(emb_seq, w_T, bias, w_init, memory):
    rs, ws = [], []
    w = w_init
    for t in range(emb_seq.shape[0]):
        r, w = ntm_read_head_ref_step(emb_seq[t], w_T, bias, w, memory)
        rs.append(r)
        ws.append(w)
    return jnp.stack(rs), jnp.stack(ws)


# ---------------------------------- main --------------------------------------

if __name__ == "__main__":
    B, C, N, M, T = 2, 32, 16, 8, 8     # batch, controller_size, mem rows/cols, timesteps
    O = M + 6                           # sum(read_length) = M+1+1+3+1

    key = jax.random.PRNGKey(0)
    k1, k2, k3, k4 = jax.random.split(key, 4)

    # fc_read params: xavier_uniform(gain=1.4) weight, normal(std=0.01) bias
    gain = 1.4
    bound = gain * math.sqrt(6.0 / (C + O))
    W = jax.random.uniform(k1, (O, C), jnp.float32, -bound, bound)
    b = 0.01 * jax.random.normal(k2, (O,), jnp.float32)

    emb_seq = jax.random.normal(k3, (T, B, C), jnp.float32)
    stdev = 1.0 / math.sqrt(N + M)
    memory = jax.random.uniform(k4, (B, N, M), jnp.float32, -stdev, stdev)
    w_init = jnp.zeros((B, N), jnp.float32)   # NTMReadHead.create_new_state

    # Fused T-step kernel
    r_seq, w_seq = ntm_read_head_seq(emb_seq, W.T, b, w_init, memory)
    jax.block_until_ready((r_seq, w_seq))

    r_ref, w_ref = ntm_read_head_ref_seq(emb_seq, W.T, b, w_init, memory)
    np.testing.assert_allclose(np.asarray(w_seq), np.asarray(w_ref), rtol=5e-3, atol=5e-4)
    np.testing.assert_allclose(np.asarray(r_seq), np.asarray(r_ref), rtol=5e-3, atol=5e-4)

    # Single-step API parity (module forward: (embeddings, w_prev) -> (r, w))
    r0, w0 = ntm_read_head(emb_seq[0], W.T, b, w_init, memory)
    r0_ref, w0_ref = ntm_read_head_ref_step(emb_seq[0], W.T, b, w_init, memory)
    np.testing.assert_allclose(np.asarray(w0), np.asarray(w0_ref), rtol=2e-3, atol=2e-4)
    np.testing.assert_allclose(np.asarray(r0), np.asarray(r0_ref), rtol=2e-3, atol=2e-4)

    print("KERNEL_OK")
</pallas_src>

<mosaic_0001>
module attributes {stable_mosaic.version = 11 : i64} {
  func.func @ntm_read_head_seq_kernel(%arg0: memref<16x32xf32, #tpu.memory_space<vmem>>, %arg1: memref<32x14xf32, #tpu.memory_space<vmem>>, %arg2: memref<1x14xf32, #tpu.memory_space<vmem>>, %arg3: memref<2x16xf32, #tpu.memory_space<vmem>>, %arg4: memref<2x16x8xf32, #tpu.memory_space<vmem>>, %arg5: memref<8x2x8xf32, #tpu.memory_space<vmem>>, %arg6: memref<8x2x16xf32, #tpu.memory_space<vmem>>) attributes {dimension_semantics = [], scalar_prefetch = 0 : i64, scratch_operands = 0 : i64, tpu.core_type = #tpu.core_type<tc>} {
    %c0 = arith.constant 0 : index
    %c0_0 = arith.constant 0 : index
    %0 = vector.load %arg0[%c0, %c0_0] : memref<16x32xf32, #tpu.memory_space<vmem>>, vector<16x32xf32>
    %c0_1 = arith.constant 0 : index
    %c0_2 = arith.constant 0 : index
    %1 = vector.load %arg1[%c0_1, %c0_2] : memref<32x14xf32, #tpu.memory_space<vmem>>, vector<32x14xf32>
    %cst = arith.constant dense<0.000000e+00> : vector<16x14xf32>
    %2 = tpu.matmul %0, %1, %cst {dimension_numbers = #tpu.dot_dimension_numbers<[1], [0], [0], [1], [0, 0, 1, 1], [], []>} : vector<16x32xf32>, vector<32x14xf32>, vector<16x14xf32> -> vector<16x14xf32>
    %c0_3 = arith.constant 0 : index
    %c0_4 = arith.constant 0 : index
    %3 = vector.load %arg2[%c0_3, %c0_4] : memref<1x14xf32, #tpu.memory_space<vmem>>, vector<1x14xf32>
    %4 = vector.broadcast %3 : vector<1x14xf32> to vector<16x14xf32>
    %5 = arith.addf %2, %4 : vector<16x14xf32>
    %6 = vector.extract_strided_slice %5 {offsets = [0, 0], sizes = [16, 8], strides = [1, 1]} : vector<16x14xf32> to vector<16x8xf32>
    %7 = vector.extract_strided_slice %5 {offsets = [0, 8], sizes = [16, 1], strides = [1, 1]} : vector<16x14xf32> to vector<16x1xf32>
    %cst_5 = arith.constant 0.000000e+00 : f32
    %8 = vector.broadcast %cst_5 : f32 to vector<16x1xf32>
    %9 = arith.maximumf %7, %8 : vector<16x1xf32>
    %10 = math.absf %7 : vector<16x1xf32>
    %cst_6 = arith.constant 0.000000e+00 : f32
    %11 = vector.broadcast %cst_6 : f32 to vector<16x1xf32>
    %12 = arith.subf %11, %10 : vector<16x1xf32>
    %13 = math.exp %12 : vector<16x1xf32>
    %cst_7 = arith.constant 1.000000e+00 : f32
    %14 = vector.broadcast %cst_7 : f32 to vector<16x1xf32>
    %15 = arith.addf %14, %13 : vector<16x1xf32>
    %16 = math.log %15 : vector<16x1xf32>
    %17 = arith.addf %9, %16 : vector<16x1xf32>
    %18 = vector.extract_strided_slice %5 {offsets = [0, 9], sizes = [16, 1], strides = [1, 1]} : vector<16x14xf32> to vector<16x1xf32>
    %cst_8 = arith.constant 0.000000e+00 : f32
    %19 = vector.broadcast %cst_8 : f32 to vector<16x1xf32>
    %20 = arith.subf %19, %18 : vector<16x1xf32>
    %21 = math.exp %20 : vector<16x1xf32>
    %cst_9 = arith.constant 1.000000e+00 : f32
    %22 = vector.broadcast %cst_9 : f32 to vector<16x1xf32>
    %23 = arith.addf %22, %21 : vector<16x1xf32>
    %cst_10 = arith.constant 1.000000e+00 : f32
    %24 = vector.broadcast %cst_10 : f32 to vector<16x1xf32>
    %25 = arith.divf %24, %23 : vector<16x1xf32>
    %26 = vector.extract_strided_slice %5 {offsets = [0, 10], sizes = [16, 3], strides = [1, 1]} : vector<16x14xf32> to vector<16x3xf32>
    %cst_11 = arith.constant dense<0xFF800000> : vector<16xf32>
    %27 = vector.multi_reduction <maximumf>, %26, %cst_11 [1] : vector<16x3xf32> to vector<16xf32>
    %28 = vector.shape_cast %27 : vector<16xf32> to vector<16x1xf32>
    %29 = vector.broadcast %28 : vector<16x1xf32> to vector<16x3xf32>
    %30 = arith.subf %26, %29 : vector<16x3xf32>
    %31 = math.exp %30 : vector<16x3xf32>
    %cst_12 = arith.constant dense<0.000000e+00> : vector<16xf32>
    %32 = vector.multi_reduction <add>, %31, %cst_12 [1] : vector<16x3xf32> to vector<16xf32>
    %33 = vector.shape_cast %32 : vector<16xf32> to vector<16x1xf32>
    %34 = vector.broadcast %33 : vector<16x1xf32> to vector<16x3xf32>
    %35 = arith.divf %31, %34 : vector<16x3xf32>
    %36 = vector.extract_strided_slice %5 {offsets = [0, 13], sizes = [16, 1], strides = [1, 1]} : vector<16x14xf32> to vector<16x1xf32>
    %cst_13 = arith.constant 0.000000e+00 : f32
    %37 = vector.broadcast %cst_13 : f32 to vector<16x1xf32>
    %38 = arith.maximumf %36, %37 : vector<16x1xf32>
    %39 = math.absf %36 : vector<16x1xf32>
    %cst_14 = arith.constant 0.000000e+00 : f32
    %40 = vector.broadcast %cst_14 : f32 to vector<16x1xf32>
    %41 = arith.subf %40, %39 : vector<16x1xf32>
    %42 = math.exp %41 : vector<16x1xf32>
    %cst_15 = arith.constant 1.000000e+00 : f32
    %43 = vector.broadcast %cst_15 : f32 to vector<16x1xf32>
    %44 = arith.addf %43, %42 : vector<16x1xf32>
    %45 = math.log %44 : vector<16x1xf32>
    %46 = arith.addf %38, %45 : vector<16x1xf32>
    %cst_16 = arith.constant 1.000000e+00 : f32
    %47 = vector.broadcast %cst_16 : f32 to vector<16x1xf32>
    %48 = arith.addf %47, %46 : vector<16x1xf32>
    %c0_17 = arith.constant 0 : index
    %c0_18 = arith.constant 0 : index
    %c0_19 = arith.constant 0 : index
    %49 = vector.load %arg4[%c0_17, %c0_18, %c0_19] : memref<2x16x8xf32, #tpu.memory_space<vmem>>, vector<2x16x8xf32>
    %cst_20 = arith.constant 1.000000e-16 : f32
    %50 = vector.broadcast %cst_20 : f32 to vector<2x16x8xf32>
    %51 = arith.addf %49, %50 : vector<2x16x8xf32>
    %52 = arith.mulf %51, %51 : vector<2x16x8xf32>
    %cst_21 = arith.constant dense<0.000000e+00> : vector<2x16xf32>
    %53 = vector.multi_reduction <add>, %52, %cst_21 [2] : vector<2x16x8xf32> to vector<2x16xf32>
    %cst_22 = arith.constant 1.000000e-16 : f32
    %54 = vector.broadcast %cst_22 : f32 to vector<2x16xf32>
    %55 = arith.maximumf %53, %54 : vector<2x16xf32>
    %56 = math.rsqrt %55 : vector<2x16xf32>
    %cst_23 = arith.constant 1.000000e-16 : f32
    %57 = vector.broadcast %cst_23 : f32 to vector<16x8xf32>
    %58 = arith.addf %6, %57 : vector<16x8xf32>
    %59 = arith.mulf %58, %58 : vector<16x8xf32>
    %cst_24 = arith.constant dense<0.000000e+00> : vector<16xf32>
    %60 = vector.multi_reduction <add>, %59, %cst_24 [1] : vector<16x8xf32> to vector<16xf32>
    %61 = vector.shape_cast %60 : vector<16xf32> to vector<16x1xf32>
    %cst_25 = arith.constant 1.000000e-16 : f32
    %62 = vector.broadcast %cst_25 : f32 to vector<16x1xf32>
    %63 = arith.maximumf %61, %62 : vector<16x1xf32>
    %64 = math.rsqrt %63 : vector<16x1xf32>
    %c0_26 = arith.constant 0 : index
    %c0_27 = arith.constant 0 : index
    %65 = vector.load %arg3[%c0_26, %c0_27] : memref<2x16xf32, #tpu.memory_space<vmem>>, vector<2x16xf32>
    %66 = vector.extract_strided_slice %58 {offsets = [0, 0], sizes = [2, 8], strides = [1, 1]} : vector<16x8xf32> to vector<2x8xf32>
    %67 = vector.extract_strided_slice %17 {offsets = [0, 0], sizes = [2, 1], strides = [1, 1]} : vector<16x1xf32> to vector<2x1xf32>
    %68 = vector.extract_strided_slice %25 {offsets = [0, 0], sizes = [2, 1], strides = [1, 1]} : vector<16x1xf32> to vector<2x1xf32>
    %69 = vector.extract_strided_slice %35 {offsets = [0, 0], sizes = [2, 3], strides = [1, 1]} : vector<16x3xf32> to vector<2x3xf32>
    %70 = vector.extract_strided_slice %48 {offsets = [0, 0], sizes = [2, 1], strides = [1, 1]} : vector<16x1xf32> to vector<2x1xf32>
    %71 = vector.extract_strided_slice %64 {offsets = [0, 0], sizes = [2, 1], strides = [1, 1]} : vector<16x1xf32> to vector<2x1xf32>
    %72 = vector.shape_cast %66 : vector<2x8xf32> to vector<2x1x8xf32>
    %73 = vector.broadcast %72 : vector<2x1x8xf32> to vector<2x16x8xf32>
    %74 = arith.mulf %51, %73 : vector<2x16x8xf32>
    %cst_28 = arith.constant dense<0.000000e+00> : vector<2x16xf32>
    %75 = vector.multi_reduction <add>, %74, %cst_28 [2] : vector<2x16x8xf32> to vector<2x16xf32>
    %76 = arith.mulf %75, %56 : vector<2x16xf32>
    %77 = vector.broadcast %71 : vector<2x1xf32> to vector<2x16xf32>
    %78 = arith.mulf %76, %77 : vector<2x16xf32>
    %79 = vector.broadcast %67 : vector<2x1xf32> to vector<2x16xf32>
    %80 = arith.mulf %79, %78 : vector<2x16xf32>
    %cst_29 = arith.constant dense<0xFF800000> : vector<2xf32>
    %81 = vector.multi_reduction <maximumf>, %80, %cst_29 [1] : vector<2x16xf32> to vector<2xf32>
    %82 = vector.shape_cast %81 : vector<2xf32> to vector<2x1xf32>
    %83 = vector.broadcast %82 : vector<2x1xf32> to vector<2x16xf32>
    %84 = arith.subf %80, %83 : vector<2x16xf32>
    %85 = math.exp %84 : vector<2x16xf32>
    %cst_30 = arith.constant dense<0.000000e+00> : vector<2xf32>
    %86 = vector.multi_reduction <add>, %85, %cst_30 [1] : vector<2x16xf32> to vector<2xf32>
    %87 = vector.shape_cast %86 : vector<2xf32> to vector<2x1xf32>
    %88 = vector.broadcast %87 : vector<2x1xf32> to vector<2x16xf32>
    %89 = arith.divf %85, %88 : vector<2x16xf32>
    %90 = vector.broadcast %68 : vector<2x1xf32> to vector<2x16xf32>
    %91 = arith.mulf %90, %89 : vector<2x16xf32>
    %cst_31 = arith.constant 1.000000e+00 : f32
    %92 = vector.broadcast %cst_31 : f32 to vector<2x1xf32>
    %93 = arith.subf %92, %68 : vector<2x1xf32>
    %94 = vector.broadcast %93 : vector<2x1xf32> to vector<2x16xf32>
    %95 = arith.mulf %94, %65 : vector<2x16xf32>
    %96 = arith.addf %91, %95 : vector<2x16xf32>
    %97 = vector.extract_strided_slice %69 {offsets = [0, 0], sizes = [2, 1], strides = [1, 1]} : vector<2x3xf32> to vector<2x1xf32>
    %98 = vector.extract_strided_slice %96 {offsets = [0, 15], sizes = [2, 1], strides = [1, 1]} : vector<2x16xf32> to vector<2x1xf32>
    %99 = vector.extract_strided_slice %96 {offsets = [0, 0], sizes = [2, 15], strides = [1, 1]} : vector<2x16xf32> to vector<2x15xf32>
    %100 = tpu.concatenate %98, %99 in 1 : vector<2x1xf32>, vector<2x15xf32> -> vector<2x16xf32>
    %101 = vector.broadcast %97 : vector<2x1xf32> to vector<2x16xf32>
    %102 = arith.mulf %101, %100 : vector<2x16xf32>
    %103 = vector.extract_strided_slice %69 {offsets = [0, 1], sizes = [2, 1], strides = [1, 1]} : vector<2x3xf32> to vector<2x1xf32>
    %104 = vector.broadcast %103 : vector<2x1xf32> to vector<2x16xf32>
    %105 = arith.mulf %104, %96 : vector<2x16xf32>
    %106 = arith.addf %102, %105 : vector<2x16xf32>
    %107 = vector.extract_strided_slice %69 {offsets = [0, 2], sizes = [2, 1], strides = [1, 1]} : vector<2x3xf32> to vector<2x1xf32>
    %108 = vector.extract_strided_slice %96 {offsets = [0, 1], sizes = [2, 15], strides = [1, 1]} : vector<2x16xf32> to vector<2x15xf32>
    %109 = vector.extract_strided_slice %96 {offsets = [0, 0], sizes = [2, 1], strides = [1, 1]} : vector<2x16xf32> to vector<2x1xf32>
    %110 = tpu.concatenate %108, %109 in 1 : vector<2x15xf32>, vector<2x1xf32> -> vector<2x16xf32>
    %111 = vector.broadcast %107 : vector<2x1xf32> to vector<2x16xf32>
    %112 = arith.mulf %111, %110 : vector<2x16xf32>
    %113 = arith.addf %106, %112 : vector<2x16xf32>
    %cst_32 = arith.constant 1.000000e-16 : f32
    %114 = vector.broadcast %cst_32 : f32 to vector<2x16xf32>
    %115 = arith.addf %113, %114 : vector<2x16xf32>
    %116 = math.log %115 : vector<2x16xf32>
    %117 = vector.broadcast %70 : vector<2x1xf32> to vector<2x16xf32>
    %118 = arith.mulf %117, %116 : vector<2x16xf32>
    %119 = math.exp %118 : vector<2x16xf32>
    %cst_33 = arith.constant dense<0.000000e+00> : vector<2xf32>
    %120 = vector.multi_reduction <add>, %119, %cst_33 [1] : vector<2x16xf32> to vector<2xf32>
    %121 = vector.shape_cast %120 : vector<2xf32> to vector<2x1xf32>
    %cst_34 = arith.constant 1.000000e-16 : f32
    %122 = vector.broadcast %cst_34 : f32 to vector<2x1xf32>
    %123 = arith.addf %121, %122 : vector<2x1xf32>
    %124 = vector.broadcast %123 : vector<2x1xf32> to vector<2x16xf32>
    %125 = arith.divf %119, %124 : vector<2x16xf32>
    %c0_35 = arith.constant 0 : index
    %c0_36 = arith.constant 0 : index
    %c0_37 = arith.constant 0 : index
    %126 = vector.load %arg6[%c0_35, %c0_36, %c0_37] : memref<8x2x16xf32, #tpu.memory_space<vmem>>, vector<1x2x16xf32>
    %127 = vector.shape_cast %126 : vector<1x2x16xf32> to vector<2x16xf32>
    %128 = vector.shape_cast %125 : vector<2x16xf32> to vector<1x2x16xf32>
    tpu.vector_store %arg6[%c0_35, %c0_36, %c0_37], %128 {strides = array<i32>} : memref<8x2x16xf32, #tpu.memory_space<vmem>>, vector<1x2x16xf32>,
    %129 = vector.shape_cast %125 : vector<2x16xf32> to vector<2x16x1xf32>
    %130 = vector.broadcast %129 : vector<2x16x1xf32> to vector<2x16x8xf32>
    %131 = arith.mulf %130, %49 : vector<2x16x8xf32>
    %cst_38 = arith.constant dense<0.000000e+00> : vector<2x8xf32>
    %132 = vector.multi_reduction <add>, %131, %cst_38 [1] : vector<2x16x8xf32> to vector<2x8xf32>
    %c0_39 = arith.constant 0 : index
    %c0_40 = arith.constant 0 : index
    %c0_41 = arith.constant 0 : index
    %133 = vector.load %arg5[%c0_39, %c0_40, %c0_41] : memref<8x2x8xf32, #tpu.memory_space<vmem>>, vector<1x2x8xf32>
    %134 = vector.shape_cast %133 : vector<1x2x8xf32> to vector<2x8xf32>
    %135 = vector.shape_cast %132 : vector<2x8xf32> to vector<1x2x8xf32>
    tpu.vector_store %arg5[%c0_39, %c0_40, %c0_41], %135 {strides = array<i32>} : memref<8x2x8xf32, #tpu.memory_space<vmem>>, vector<1x2x8xf32>,
    %136 = vector.extract_strided_slice %58 {offsets = [2, 0], sizes = [2, 8], strides = [1, 1]} : vector<16x8xf32> to vector<2x8xf32>
    %137 = vector.extract_strided_slice %17 {offsets = [2, 0], sizes = [2, 1], strides = [1, 1]} : vector<16x1xf32> to vector<2x1xf32>
    %138 = vector.extract_strided_slice %25 {offsets = [2, 0], sizes = [2, 1], strides = [1, 1]} : vector<16x1xf32> to vector<2x1xf32>
    %139 = vector.extract_strided_slice %35 {offsets = [2, 0], sizes = [2, 3], strides = [1, 1]} : vector<16x3xf32> to vector<2x3xf32>
    %140 = vector.extract_strided_slice %48 {offsets = [2, 0], sizes = [2, 1], strides = [1, 1]} : vector<16x1xf32> to vector<2x1xf32>
    %141 = vector.extract_strided_slice %64 {offsets = [2, 0], sizes = [2, 1], strides = [1, 1]} : vector<16x1xf32> to vector<2x1xf32>
    %142 = vector.shape_cast %136 : vector<2x8xf32> to vector<2x1x8xf32>
    %143 = vector.broadcast %142 : vector<2x1x8xf32> to vector<2x16x8xf32>
    %144 = arith.mulf %51, %143 : vector<2x16x8xf32>
    %cst_42 = arith.constant dense<0.000000e+00> : vector<2x16xf32>
    %145 = vector.multi_reduction <add>, %144, %cst_42 [2] : vector<2x16x8xf32> to vector<2x16xf32>
    %146 = arith.mulf %145, %56 : vector<2x16xf32>
    %147 = vector.broadcast %141 : vector<2x1xf32> to vector<2x16xf32>
    %148 = arith.mulf %146, %147 : vector<2x16xf32>
    %149 = vector.broadcast %137 : vector<2x1xf32> to vector<2x16xf32>
    %150 = arith.mulf %149, %148 : vector<2x16xf32>
    %cst_43 = arith.constant dense<0xFF800000> : vector<2xf32>
    %151 = vector.multi_reduction <maximumf>, %150, %cst_43 [1] : vector<2x16xf32> to vector<2xf32>
    %152 = vector.shape_cast %151 : vector<2xf32> to vector<2x1xf32>
    %153 = vector.broadcast %152 : vector<2x1xf32> to vector<2x16xf32>
    %154 = arith.subf %150, %153 : vector<2x16xf32>
    %155 = math.exp %154 : vector<2x16xf32>
    %cst_44 = arith.constant dense<0.000000e+00> : vector<2xf32>
    %156 = vector.multi_reduction <add>, %155, %cst_44 [1] : vector<2x16xf32> to vector<2xf32>
    %157 = vector.shape_cast %156 : vector<2xf32> to vector<2x1xf32>
    %158 = vector.broadcast %157 : vector<2x1xf32> to vector<2x16xf32>
    %159 = arith.divf %155, %158 : vector<2x16xf32>
    %160 = vector.broadcast %138 : vector<2x1xf32> to vector<2x16xf32>
    %161 = arith.mulf %160, %159 : vector<2x16xf32>
    %cst_45 = arith.constant 1.000000e+00 : f32
    %162 = vector.broadcast %cst_45 : f32 to vector<2x1xf32>
    %163 = arith.subf %162, %138 : vector<2x1xf32>
    %164 = vector.broadcast %163 : vector<2x1xf32> to vector<2x16xf32>
    %165 = arith.mulf %164, %125 : vector<2x16xf32>
    %166 = arith.addf %161, %165 : vector<2x16xf32>
    %167 = vector.extract_strided_slice %139 {offsets = [0, 0], sizes = [2, 1], strides = [1, 1]} : vector<2x3xf32> to vector<2x1xf32>
    %168 = vector.extract_strided_slice %166 {offsets = [0, 15], sizes = [2, 1], strides = [1, 1]} : vector<2x16xf32> to vector<2x1xf32>
    %169 = vector.extract_strided_slice %166 {offsets = [0, 0], sizes = [2, 15], strides = [1, 1]} : vector<2x16xf32> to vector<2x15xf32>
    %170 = tpu.concatenate %168, %169 in 1 : vector<2x1xf32>, vector<2x15xf32> -> vector<2x16xf32>
    %171 = vector.broadcast %167 : vector<2x1xf32> to vector<2x16xf32>
    %172 = arith.mulf %171, %170 : vector<2x16xf32>
    %173 = vector.extract_strided_slice %139 {offsets = [0, 1], sizes = [2, 1], strides = [1, 1]} : vector<2x3xf32> to vector<2x1xf32>
    %174 = vector.broadcast %173 : vector<2x1xf32> to vector<2x16xf32>
    %175 = arith.mulf %174, %166 : vector<2x16xf32>
    %176 = arith.addf %172, %175 : vector<2x16xf32>
    %177 = vector.extract_strided_slice %139 {offsets = [0, 2], sizes = [2, 1], strides = [1, 1]} : vector<2x3xf32> to vector<2x1xf32>
    %178 = vector.extract_strided_slice %166 {offsets = [0, 1], sizes = [2, 15], strides = [1, 1]} : vector<2x16xf32> to vector<2x15xf32>
    %179 = vector.extract_strided_slice %166 {offsets = [0, 0], sizes = [2, 1], strides = [1, 1]} : vector<2x16xf32> to vector<2x1xf32>
    %180 = tpu.concatenate %178, %179 in 1 : vector<2x15xf32>, vector<2x1xf32> -> vector<2x16xf32>
    %181 = vector.broadcast %177 : vector<2x1xf32> to vector<2x16xf32>
    %182 = arith.mulf %181, %180 : vector<2x16xf32>
    %183 = arith.addf %176, %182 : vector<2x16xf32>
    %cst_46 = arith.constant 1.000000e-16 : f32
    %184 = vector.broadcast %cst_46 : f32 to vector<2x16xf32>
    %185 = arith.addf %183, %184 : vector<2x16xf32>
    %186 = math.log %185 : vector<2x16xf32>
    %187 = vector.broadcast %140 : vector<2x1xf32> to vector<2x16xf32>
    %188 = arith.mulf %187, %186 : vector<2x16xf32>
    %189 = math.exp %188 : vector<2x16xf32>
    %cst_47 = arith.constant dense<0.000000e+00> : vector<2xf32>
    %190 = vector.multi_reduction <add>, %189, %cst_47 [1] : vector<2x16xf32> to vector<2xf32>
    %191 = vector.shape_cast %190 : vector<2xf32> to vector<2x1xf32>
    %cst_48 = arith.constant 1.000000e-16 : f32
    %192 = vector.broadcast %cst_48 : f32 to vector<2x1xf32>
    %193 = arith.addf %191, %192 : vector<2x1xf32>
    %194 = vector.broadcast %193 : vector<2x1xf32> to vector<2x16xf32>
    %195 = arith.divf %189, %194 : vector<2x16xf32>
    %c1 = arith.constant 1 : index
    %c0_49 = arith.constant 0 : index
    %c0_50 = arith.constant 0 : index
    %196 = vector.load %arg6[%c1, %c0_49, %c0_50] : memref<8x2x16xf32, #tpu.memory_space<vmem>>, vector<1x2x16xf32>
    %197 = vector.shape_cast %196 : vector<1x2x16xf32> to vector<2x16xf32>
    %198 = vector.shape_cast %195 : vector<2x16xf32> to vector<1x2x16xf32>
    tpu.vector_store %arg6[%c1, %c0_49, %c0_50], %198 {strides = array<i32>} : memref<8x2x16xf32, #tpu.memory_space<vmem>>, vector<1x2x16xf32>,
    %199 = vector.shape_cast %195 : vector<2x16xf32> to vector<2x16x1xf32>
    %200 = vector.broadcast %199 : vector<2x16x1xf32> to vector<2x16x8xf32>
    %201 = arith.mulf %200, %49 : vector<2x16x8xf32>
    %cst_51 = arith.constant dense<0.000000e+00> : vector<2x8xf32>
    %202 = vector.multi_reduction <add>, %201, %cst_51 [1] : vector<2x16x8xf32> to vector<2x8xf32>
    %c1_52 = arith.constant 1 : index
    %c0_53 = arith.constant 0 : index
    %c0_54 = arith.constant 0 : index
    %203 = vector.load %arg5[%c1_52, %c0_53, %c0_54] : memref<8x2x8xf32, #tpu.memory_space<vmem>>, vector<1x2x8xf32>
    %204 = vector.shape_cast %203 : vector<1x2x8xf32> to vector<2x8xf32>
    %205 = vector.shape_cast %202 : vector<2x8xf32> to vector<1x2x8xf32>
    tpu.vector_store %arg5[%c1_52, %c0_53, %c0_54], %205 {strides = array<i32>} : memref<8x2x8xf32, #tpu.memory_space<vmem>>, vector<1x2x8xf32>,
    %206 = vector.extract_strided_slice %58 {offsets = [4, 0], sizes = [2, 8], strides = [1, 1]} : vector<16x8xf32> to vector<2x8xf32>
    %207 = vector.extract_strided_slice %17 {offsets = [4, 0], sizes = [2, 1], strides = [1, 1]} : vector<16x1xf32> to vector<2x1xf32>
    %208 = vector.extract_strided_slice %25 {offsets = [4, 0], sizes = [2, 1], strides = [1, 1]} : vector<16x1xf32> to vector<2x1xf32>
    %209 = vector.extract_strided_slice %35 {offsets = [4, 0], sizes = [2, 3], strides = [1, 1]} : vector<16x3xf32> to vector<2x3xf32>
    %210 = vector.extract_strided_slice %48 {offsets = [4, 0], sizes = [2, 1], strides = [1, 1]} : vector<16x1xf32> to vector<2x1xf32>
    %211 = vector.extract_strided_slice %64 {offsets = [4, 0], sizes = [2, 1], strides = [1, 1]} : vector<16x1xf32> to vector<2x1xf32>
    %212 = vector.shape_cast %206 : vector<2x8xf32> to vector<2x1x8xf32>
    %213 = vector.broadcast %212 : vector<2x1x8xf32> to vector<2x16x8xf32>
    %214 = arith.mulf %51, %213 : vector<2x16x8xf32>
    %cst_55 = arith.constant dense<0.000000e+00> : vector<2x16xf32>
    %215 = vector.multi_reduction <add>, %214, %cst_55 [2] : vector<2x16x8xf32> to vector<2x16xf32>
    %216 = arith.mulf %215, %56 : vector<2x16xf32>
    %217 = vector.broadcast %211 : vector<2x1xf32> to vector<2x16xf32>
    %218 = arith.mulf %216, %217 : vector<2x16xf32>
    %219 = vector.broadcast %207 : vector<2x1xf32> to vector<2x16xf32>
    %220 = arith.mulf %219, %218 : vector<2x16xf32>
    %cst_56 = arith.constant dense<0xFF800000> : vector<2xf32>
    %221 = vector.multi_reduction <maximumf>, %220, %cst_56 [1] : vector<2x16xf32> to vector<2xf32>
    %222 = vector.shape_cast %221 : vector<2xf32> to vector<2x1xf32>
    %223 = vector.broadcast %222 : vector<2x1xf32> to vector<2x16xf32>
    %224 = arith.subf %220, %223 : vector<2x16xf32>
    %225 = math.exp %224 : vector<2x16xf32>
    %cst_57 = arith.constant dense<0.000000e+00> : vector<2xf32>
    %226 = vector.multi_reduction <add>, %225, %cst_57 [1] : vector<2x16xf32> to vector<2xf32>
    %227 = vector.shape_cast %226 : vector<2xf32> to vector<2x1xf32>
    %228 = vector.broadcast %227 : vector<2x1xf32> to vector<2x16xf32>
    %229 = arith.divf %225, %228 : vector<2x16xf32>
    %230 = vector.broadcast %208 : vector<2x1xf32> to vector<2x16xf32>
    %231 = arith.mulf %230, %229 : vector<2x16xf32>
    %cst_58 = arith.constant 1.000000e+00 : f32
    %232 = vector.broadcast %cst_58 : f32 to vector<2x1xf32>
    %233 = arith.subf %232, %208 : vector<2x1xf32>
    %234 = vector.broadcast %233 : vector<2x1xf32> to vector<2x16xf32>
    %235 = arith.mulf %234, %195 : vector<2x16xf32>
    %236 = arith.addf %231, %235 : vector<2x16xf32>
    %237 = vector.extract_strided_slice %209 {offsets = [0, 0], sizes = [2, 1], strides = [1, 1]} : vector<2x3xf32> to vector<2x1xf32>
    %238 = vector.extract_strided_slice %236 {offsets = [0, 15], sizes = [2, 1], strides = [1, 1]} : vector<2x16xf32> to vector<2x1xf32>
    %239 = vector.extract_strided_slice %236 {offsets = [0, 0], sizes = [2, 15], strides = [1, 1]} : vector<2x16xf32> to vector<2x15xf32>
    %240 = tpu.concatenate %238, %239 in 1 : vector<2x1xf32>, vector<2x15xf32> -> vector<2x16xf32>
    %241 = vector.broadcast %237 : vector<2x1xf32> to vector<2x16xf32>
    %242 = arith.mulf %241, %240 : vector<2x16xf32>
    %243 = vector.extract_strided_slice %209 {offsets = [0, 1], sizes = [2, 1], strides = [1, 1]} : vector<2x3xf32> to vector<2x1xf32>
    %244 = vector.broadcast %243 : vector<2x1xf32> to vector<2x16xf32>
    %245 = arith.mulf %244, %236 : vector<2x16xf32>
    %246 = arith.addf %242, %245 : vector<2x16xf32>
    %247 = vector.extract_strided_slice %209 {offsets = [0, 2], sizes = [2, 1], strides = [1, 1]} : vector<2x3xf32> to vector<2x1xf32>
    %248 = vector.extract_strided_slice %236 {offsets = [0, 1], sizes = [2, 15], strides = [1, 1]} : vector<2x16xf32> to vector<2x15xf32>
    %249 = vector.extract_strided_slice %236 {offsets = [0, 0], sizes = [2, 1], strides = [1, 1]} : vector<2x16xf32> to vector<2x1xf32>
    %250 = tpu.concatenate %248, %249 in 1 : vector<2x15xf32>, vector<2x1xf32> -> vector<2x16xf32>
    %251 = vector.broadcast %247 : vector<2x1xf32> to vector<2x16xf32>
    %252 = arith.mulf %251, %250 : vector<2x16xf32>
    %253 = arith.addf %246, %252 : vector<2x16xf32>
    %cst_59 = arith.constant 1.000000e-16 : f32
    %254 = vector.broadcast %cst_59 : f32 to vector<2x16xf32>
    %255 = arith.addf %253, %254 : vector<2x16xf32>
    %256 = math.log %255 : vector<2x16xf32>
    %257 = vector.broadcast %210 : vector<2x1xf32> to vector<2x16xf32>
    %258 = arith.mulf %257, %256 : vector<2x16xf32>
    %259 = math.exp %258 : vector<2x16xf32>
    %cst_60 = arith.constant dense<0.000000e+00> : vector<2xf32>
    %260 = vector.multi_reduction <add>, %259, %cst_60 [1] : vector<2x16xf32> to vector<2xf32>
    %261 = vector.shape_cast %260 : vector<2xf32> to vector<2x1xf32>
    %cst_61 = arith.constant 1.000000e-16 : f32
    %262 = vector.broadcast %cst_61 : f32 to vector<2x1xf32>
    %263 = arith.addf %261, %262 : vector<2x1xf32>
    %264 = vector.broadcast %263 : vector<2x1xf32> to vector<2x16xf32>
    %265 = arith.divf %259, %264 : vector<2x16xf32>
    %c2 = arith.constant 2 : index
    %c0_62 = arith.constant 0 : index
    %c0_63 = arith.constant 0 : index
    %266 = vector.load %arg6[%c2, %c0_62, %c0_63] : memref<8x2x16xf32, #tpu.memory_space<vmem>>, vector<1x2x16xf32>
    %267 = vector.shape_cast %266 : vector<1x2x16xf32> to vector<2x16xf32>
    %268 = vector.shape_cast %265 : vector<2x16xf32> to vector<1x2x16xf32>
    tpu.vector_store %arg6[%c2, %c0_62, %c0_63], %268 {strides = array<i32>} : memref<8x2x16xf32, #tpu.memory_space<vmem>>, vector<1x2x16xf32>,
    %269 = vector.shape_cast %265 : vector<2x16xf32> to vector<2x16x1xf32>
    %270 = vector.broadcast %269 : vector<2x16x1xf32> to vector<2x16x8xf32>
    %271 = arith.mulf %270, %49 : vector<2x16x8xf32>
    %cst_64 = arith.constant dense<0.000000e+00> : vector<2x8xf32>
    %272 = vector.multi_reduction <add>, %271, %cst_64 [1] : vector<2x16x8xf32> to vector<2x8xf32>
    %c2_65 = arith.constant 2 : index
    %c0_66 = arith.constant 0 : index
    %c0_67 = arith.constant 0 : index
    %273 = vector.load %arg5[%c2_65, %c0_66, %c0_67] : memref<8x2x8xf32, #tpu.memory_space<vmem>>, vector<1x2x8xf32>
    %274 = vector.shape_cast %273 : vector<1x2x8xf32> to vector<2x8xf32>
    %275 = vector.shape_cast %272 : vector<2x8xf32> to vector<1x2x8xf32>
    tpu.vector_store %arg5[%c2_65, %c0_66, %c0_67], %275 {strides = array<i32>} : memref<8x2x8xf32, #tpu.memory_space<vmem>>, vector<1x2x8xf32>,
    %276 = vector.extract_strided_slice %58 {offsets = [6, 0], sizes = [2, 8], strides = [1, 1]} : vector<16x8xf32> to vector<2x8xf32>
    %277 = vector.extract_strided_slice %17 {offsets = [6, 0], sizes = [2, 1], strides = [1, 1]} : vector<16x1xf32> to vector<2x1xf32>
    %278 = vector.extract_strided_slice %25 {offsets = [6, 0], sizes = [2, 1], strides = [1, 1]} : vector<16x1xf32> to vector<2x1xf32>
    %279 = vector.extract_strided_slice %35 {offsets = [6, 0], sizes = [2, 3], strides = [1, 1]} : vector<16x3xf32> to vector<2x3xf32>
    %280 = vector.extract_strided_slice %48 {offsets = [6, 0], sizes = [2, 1], strides = [1, 1]} : vector<16x1xf32> to vector<2x1xf32>
    %281 = vector.extract_strided_slice %64 {offsets = [6, 0], sizes = [2, 1], strides = [1, 1]} : vector<16x1xf32> to vector<2x1xf32>
    %282 = vector.shape_cast %276 : vector<2x8xf32> to vector<2x1x8xf32>
    %283 = vector.broadcast %282 : vector<2x1x8xf32> to vector<2x16x8xf32>
    %284 = arith.mulf %51, %283 : vector<2x16x8xf32>
    %cst_68 = arith.constant dense<0.000000e+00> : vector<2x16xf32>
    %285 = vector.multi_reduction <add>, %284, %cst_68 [2] : vector<2x16x8xf32> to vector<2x16xf32>
    %286 = arith.mulf %285, %56 : vector<2x16xf32>
    %287 = vector.broadcast %281 : vector<2x1xf32> to vector<2x16xf32>
    %288 = arith.mulf %286, %287 : vector<2x16xf32>
    %289 = vector.broadcast %277 : vector<2x1xf32> to vector<2x16xf32>
    %290 = arith.mulf %289, %288 : vector<2x16xf32>
    %cst_69 = arith.constant dense<0xFF800000> : vector<2xf32>
    %291 = vector.multi_reduction <maximumf>, %290, %cst_69 [1] : vector<2x16xf32> to vector<2xf32>
    %292 = vector.shape_cast %291 : vector<2xf32> to vector<2x1xf32>
    %293 = vector.broadcast %292 : vector<2x1xf32> to vector<2x16xf32>
    %294 = arith.subf %290, %293 : vector<2x16xf32>
    %295 = math.exp %294 : vector<2x16xf32>
    %cst_70 = arith.constant dense<0.000000e+00> : vector<2xf32>
    %296 = vector.multi_reduction <add>, %295, %cst_70 [1] : vector<2x16xf32> to vector<2xf32>
    %297 = vector.shape_cast %296 : vector<2xf32> to vector<2x1xf32>
    %298 = vector.broadcast %297 : vector<2x1xf32> to vector<2x16xf32>
    %299 = arith.divf %295, %298 : vector<2x16xf32>
    %300 = vector.broadcast %278 : vector<2x1xf32> to vector<2x16xf32>
    %301 = arith.mulf %300, %299 : vector<2x16xf32>
    %cst_71 = arith.constant 1.000000e+00 : f32
    %302 = vector.broadcast %cst_71 : f32 to vector<2x1xf32>
    %303 = arith.subf %302, %278 : vector<2x1xf32>
    %304 = vector.broadcast %303 : vector<2x1xf32> to vector<2x16xf32>
    %305 = arith.mulf %304, %265 : vector<2x16xf32>
    %306 = arith.addf %301, %305 : vector<2x16xf32>
    %307 = vector.extract_strided_slice %279 {offsets = [0, 0], sizes = [2, 1], strides = [1, 1]} : vector<2x3xf32> to vector<2x1xf32>
    %308 = vector.extract_strided_slice %306 {offsets = [0, 15], sizes = [2, 1], strides = [1, 1]} : vector<2x16xf32> to vector<2x1xf32>
    %309 = vector.extract_strided_slice %306 {offsets = [0, 0], sizes = [2, 15], strides = [1, 1]} : vector<2x16xf32> to vector<2x15xf32>
    %310 = tpu.concatenate %308, %309 in 1 : vector<2x1xf32>, vector<2x15xf32> -> vector<2x16xf32>
    %311 = vector.broadcast %307 : vector<2x1xf32> to vector<2x16xf32>
    %312 = arith.mulf %311, %310 : vector<2x16xf32>
    %313 = vector.extract_strided_slice %279 {offsets = [0, 1], sizes = [2, 1], strides = [1, 1]} : vector<2x3xf32> to vector<2x1xf32>
    %314 = vector.broadcast %313 : vector<2x1xf32> to vector<2x16xf32>
    %315 = arith.mulf %314, %306 : vector<2x16xf32>
    %316 = arith.addf %312, %315 : vector<2x16xf32>
    %317 = vector.extract_strided_slice %279 {offsets = [0, 2], sizes = [2, 1], strides = [1, 1]} : vector<2x3xf32> to vector<2x1xf32>
    %318 = vector.extract_strided_slice %306 {offsets = [0, 1], sizes = [2, 15], strides = [1, 1]} : vector<2x16xf32> to vector<2x15xf32>
    %319 = vector.extract_strided_slice %306 {offsets = [0, 0], sizes = [2, 1], strides = [1, 1]} : vector<2x16xf32> to vector<2x1xf32>
    %320 = tpu.concatenate %318, %319 in 1 : vector<2x15xf32>, vector<2x1xf32> -> vector<2x16xf32>
    %321 = vector.broadcast %317 : vector<2x1xf32> to vector<2x16xf32>
    %322 = arith.mulf %321, %320 : vector<2x16xf32>
    %323 = arith.addf %316, %322 : vector<2x16xf32>
    %cst_72 = arith.constant 1.000000e-16 : f32
    %324 = vector.broadcast %cst_72 : f32 to vector<2x16xf32>
    %325 = arith.addf %323, %324 : vector<2x16xf32>
    %326 = math.log %325 : vector<2x16xf32>
    %327 = vector.broadcast %280 : vector<2x1xf32> to vector<2x16xf32>
    %328 = arith.mulf %327, %326 : vector<2x16xf32>
    %329 = math.exp %328 : vector<2x16xf32>
    %cst_73 = arith.constant dense<0.000000e+00> : vector<2xf32>
    %330 = vector.multi_reduction <add>, %329, %cst_73 [1] : vector<2x16xf32> to vector<2xf32>
    %331 = vector.shape_cast %330 : vector<2xf32> to vector<2x1xf32>
    %cst_74 = arith.constant 1.000000e-16 : f32
    %332 = vector.broadcast %cst_74 : f32 to vector<2x1xf32>
    %333 = arith.addf %331, %332 : vector<2x1xf32>
    %334 = vector.broadcast %333 : vector<2x1xf32> to vector<2x16xf32>
    %335 = arith.divf %329, %334 : vector<2x16xf32>
    %c3 = arith.constant 3 : index
    %c0_75 = arith.constant 0 : index
    %c0_76 = arith.constant 0 : index
    %336 = vector.load %arg6[%c3, %c0_75, %c0_76] : memref<8x2x16xf32, #tpu.memory_space<vmem>>, vector<1x2x16xf32>
    %337 = vector.shape_cast %336 : vector<1x2x16xf32> to vector<2x16xf32>
    %338 = vector.shape_cast %335 : vector<2x16xf32> to vector<1x2x16xf32>
    tpu.vector_store %arg6[%c3, %c0_75, %c0_76], %338 {strides = array<i32>} : memref<8x2x16xf32, #tpu.memory_space<vmem>>, vector<1x2x16xf32>,
    %339 = vector.shape_cast %335 : vector<2x16xf32> to vector<2x16x1xf32>
    %340 = vector.broadcast %339 : vector<2x16x1xf32> to vector<2x16x8xf32>
    %341 = arith.mulf %340, %49 : vector<2x16x8xf32>
    %cst_77 = arith.constant dense<0.000000e+00> : vector<2x8xf32>
    %342 = vector.multi_reduction <add>, %341, %cst_77 [1] : vector<2x16x8xf32> to vector<2x8xf32>
    %c3_78 = arith.constant 3 : index
    %c0_79 = arith.constant 0 : index
    %c0_80 = arith.constant 0 : index
    %343 = vector.load %arg5[%c3_78, %c0_79, %c0_80] : memref<8x2x8xf32, #tpu.memory_space<vmem>>, vector<1x2x8xf32>
    %344 = vector.shape_cast %343 : vector<1x2x8xf32> to vector<2x8xf32>
    %345 = vector.shape_cast %342 : vector<2x8xf32> to vector<1x2x8xf32>
    tpu.vector_store %arg5[%c3_78, %c0_79, %c0_80], %345 {strides = array<i32>} : memref<8x2x8xf32, #tpu.memory_space<vmem>>, vector<1x2x8xf32>,
    %346 = vector.extract_strided_slice %58 {offsets = [8, 0], sizes = [2, 8], strides = [1, 1]} : vector<16x8xf32> to vector<2x8xf32>
    %347 = vector.extract_strided_slice %17 {offsets = [8, 0], sizes = [2, 1], strides = [1, 1]} : vector<16x1xf32> to vector<2x1xf32>
    %348 = vector.extract_strided_slice %25 {offsets = [8, 0], sizes = [2, 1], strides = [1, 1]} : vector<16x1xf32> to vector<2x1xf32>
    %349 = vector.extract_strided_slice %35 {offsets = [8, 0], sizes = [2, 3], strides = [1, 1]} : vector<16x3xf32> to vector<2x3xf32>
    %350 = vector.extract_strided_slice %48 {offsets = [8, 0], sizes = [2, 1], strides = [1, 1]} : vector<16x1xf32> to vector<2x1xf32>
    %351 = vector.extract_strided_slice %64 {offsets = [8, 0], sizes = [2, 1], strides = [1, 1]} : vector<16x1xf32> to vector<2x1xf32>
    %352 = vector.shape_cast %346 : vector<2x8xf32> to vector<2x1x8xf32>
    %353 = vector.broadcast %352 : vector<2x1x8xf32> to vector<2x16x8xf32>
    %354 = arith.mulf %51, %353 : vector<2x16x8xf32>
    %cst_81 = arith.constant dense<0.000000e+00> : vector<2x16xf32>
    %355 = vector.multi_reduction <add>, %354, %cst_81 [2] : vector<2x16x8xf32> to vector<2x16xf32>
    %356 = arith.mulf %355, %56 : vector<2x16xf32>
    %357 = vector.broadcast %351 : vector<2x1xf32> to vector<2x16xf32>
    %358 = arith.mulf %356, %357 : vector<2x16xf32>
    %359 = vector.broadcast %347 : vector<2x1xf32> to vector<2x16xf32>
    %360 = arith.mulf %359, %358 : vector<2x16xf32>
    %cst_82 = arith.constant dense<0xFF800000> : vector<2xf32>
    %361 = vector.multi_reduction <maximumf>, %360, %cst_82 [1] : vector<2x16xf32> to vector<2xf32>
    %362 = vector.shape_cast %361 : vector<2xf32> to vector<2x1xf32>
    %363 = vector.broadcast %362 : vector<2x1xf32> to vector<2x16xf32>
    %364 = arith.subf %360, %363 : vector<2x16xf32>
    %365 = math.exp %364 : vector<2x16xf32>
    %cst_83 = arith.constant dense<0.000000e+00> : vector<2xf32>
    %366 = vector.multi_reduction <add>, %365, %cst_83 [1] : vector<2x16xf32> to vector<2xf32>
    %367 = vector.shape_cast %366 : vector<2xf32> to vector<2x1xf32>
    %368 = vector.broadcast %367 : vector<2x1xf32> to vector<2x16xf32>
    %369 = arith.divf %365, %368 : vector<2x16xf32>
    %370 = vector.broadcast %348 : vector<2x1xf32> to vector<2x16xf32>
    %371 = arith.mulf %370, %369 : vector<2x16xf32>
    %cst_84 = arith.constant 1.000000e+00 : f32
    %372 = vector.broadcast %cst_84 : f32 to vector<2x1xf32>
    %373 = arith.subf %372, %348 : vector<2x1xf32>
    %374 = vector.broadcast %373 : vector<2x1xf32> to vector<2x16xf32>
    %375 = arith.mulf %374, %335 : vector<2x16xf32>
    %376 = arith.addf %371, %375 : vector<2x16xf32>
    %377 = vector.extract_strided_slice %349 {offsets = [0, 0], sizes = [2, 1], strides = [1, 1]} : vector<2x3xf32> to vector<2x1xf32>
    %378 = vector.extract_strided_slice %376 {offsets = [0, 15], sizes = [2, 1], strides = [1, 1]} : vector<2x16xf32> to vector<2x1xf32>
    %379 = vector.extract_strided_slice %376 {offsets = [0, 0], sizes = [2, 15], strides = [1, 1]} : vector<2x16xf32> to vector<2x15xf32>
    %380 = tpu.concatenate %378, %379 in 1 : vector<2x1xf32>, vector<2x15xf32> -> vector<2x16xf32>
    %381 = vector.broadcast %377 : vector<2x1xf32> to vector<2x16xf32>
    %382 = arith.mulf %381, %380 : vector<2x16xf32>
    %383 = vector.extract_strided_slice %349 {offsets = [0, 1], sizes = [2, 1], strides = [1, 1]} : vector<2x3xf32> to vector<2x1xf32>
    %384 = vector.broadcast %383 : vector<2x1xf32> to vector<2x16xf32>
    %385 = arith.mulf %384, %376 : vector<2x16xf32>
    %386 = arith.addf %382, %385 : vector<2x16xf32>
    %387 = vector.extract_strided_slice %349 {offsets = [0, 2], sizes = [2, 1], strides = [1, 1]} : vector<2x3xf32> to vector<2x1xf32>
    %388 = vector.extract_strided_slice %376 {offsets = [0, 1], sizes = [2, 15], strides = [1, 1]} : vector<2x16xf32> to vector<2x15xf32>
    %389 = vector.extract_strided_slice %376 {offsets = [0, 0], sizes = [2, 1], strides = [1, 1]} : vector<2x16xf32> to vector<2x1xf32>
    %390 = tpu.concatenate %388, %389 in 1 : vector<2x15xf32>, vector<2x1xf32> -> vector<2x16xf32>
    %391 = vector.broadcast %387 : vector<2x1xf32> to vector<2x16xf32>
    %392 = arith.mulf %391, %390 : vector<2x16xf32>
    %393 = arith.addf %386, %392 : vector<2x16xf32>
    %cst_85 = arith.constant 1.000000e-16 : f32
    %394 = vector.broadcast %cst_85 : f32 to vector<2x16xf32>
    %395 = arith.addf %393, %394 : vector<2x16xf32>
    %396 = math.log %395 : vector<2x16xf32>
    %397 = vector.broadcast %350 : vector<2x1xf32> to vector<2x16xf32>
    %398 = arith.mulf %397, %396 : vector<2x16xf32>
    %399 = math.exp %398 : vector<2x16xf32>
    %cst_86 = arith.constant dense<0.000000e+00> : vector<2xf32>
    %400 = vector.multi_reduction <add>, %399, %cst_86 [1] : vector<2x16xf32> to vector<2xf32>
    %401 = vector.shape_cast %400 : vector<2xf32> to vector<2x1xf32>
    %cst_87 = arith.constant 1.000000e-16 : f32
    %402 = vector.broadcast %cst_87 : f32 to vector<2x1xf32>
    %403 = arith.addf %401, %402 : vector<2x1xf32>
    %404 = vector.broadcast %403 : vector<2x1xf32> to vector<2x16xf32>
    %405 = arith.divf %399, %404 : vector<2x16xf32>
    %c4 = arith.constant 4 : index
    %c0_88 = arith.constant 0 : index
    %c0_89 = arith.constant 0 : index
    %406 = vector.load %arg6[%c4, %c0_88, %c0_89] : memref<8x2x16xf32, #tpu.memory_space<vmem>>, vector<1x2x16xf32>
    %407 = vector.shape_cast %406 : vector<1x2x16xf32> to vector<2x16xf32>
    %408 = vector.shape_cast %405 : vector<2x16xf32> to vector<1x2x16xf32>
    tpu.vector_store %arg6[%c4, %c0_88, %c0_89], %408 {strides = array<i32>} : memref<8x2x16xf32, #tpu.memory_space<vmem>>, vector<1x2x16xf32>,
    %409 = vector.shape_cast %405 : vector<2x16xf32> to vector<2x16x1xf32>
    %410 = vector.broadcast %409 : vector<2x16x1xf32> to vector<2x16x8xf32>
    %411 = arith.mulf %410, %49 : vector<2x16x8xf32>
    %cst_90 = arith.constant dense<0.000000e+00> : vector<2x8xf32>
    %412 = vector.multi_reduction <add>, %411, %cst_90 [1] : vector<2x16x8xf32> to vector<2x8xf32>
    %c4_91 = arith.constant 4 : index
    %c0_92 = arith.constant 0 : index
    %c0_93 = arith.constant 0 : index
    %413 = vector.load %arg5[%c4_91, %c0_92, %c0_93] : memref<8x2x8xf32, #tpu.memory_space<vmem>>, vector<1x2x8xf32>
    %414 = vector.shape_cast %413 : vector<1x2x8xf32> to vector<2x8xf32>
    %415 = vector.shape_cast %412 : vector<2x8xf32> to vector<1x2x8xf32>
    tpu.vector_store %arg5[%c4_91, %c0_92, %c0_93], %415 {strides = array<i32>} : memref<8x2x8xf32, #tpu.memory_space<vmem>>, vector<1x2x8xf32>,
    %416 = vector.extract_strided_slice %58 {offsets = [10, 0], sizes = [2, 8], strides = [1, 1]} : vector<16x8xf32> to vector<2x8xf32>
    %417 = vector.extract_strided_slice %17 {offsets = [10, 0], sizes = [2, 1], strides = [1, 1]} : vector<16x1xf32> to vector<2x1xf32>
    %418 = vector.extract_strided_slice %25 {offsets = [10, 0], sizes = [2, 1], strides = [1, 1]} : vector<16x1xf32> to vector<2x1xf32>
    %419 = vector.extract_strided_slice %35 {offsets = [10, 0], sizes = [2, 3], strides = [1, 1]} : vector<16x3xf32> to vector<2x3xf32>
    %420 = vector.extract_strided_slice %48 {offsets = [10, 0], sizes = [2, 1], strides = [1, 1]} : vector<16x1xf32> to vector<2x1xf32>
    %421 = vector.extract_strided_slice %64 {offsets = [10, 0], sizes = [2, 1], strides = [1, 1]} : vector<16x1xf32> to vector<2x1xf32>
    %422 = vector.shape_cast %416 : vector<2x8xf32> to vector<2x1x8xf32>
    %423 = vector.broadcast %422 : vector<2x1x8xf32> to vector<2x16x8xf32>
    %424 = arith.mulf %51, %423 : vector<2x16x8xf32>
    %cst_94 = arith.constant dense<0.000000e+00> : vector<2x16xf32>
    %425 = vector.multi_reduction <add>, %424, %cst_94 [2] : vector<2x16x8xf32> to vector<2x16xf32>
    %426 = arith.mulf %425, %56 : vector<2x16xf32>
    %427 = vector.broadcast %421 : vector<2x1xf32> to vector<2x16xf32>
    %428 = arith.mulf %426, %427 : vector<2x16xf32>
    %429 = vector.broadcast %417 : vector<2x1xf32> to vector<2x16xf32>
    %430 = arith.mulf %429, %428 : vector<2x16xf32>
    %cst_95 = arith.constant dense<0xFF800000> : vector<2xf32>
    %431 = vector.multi_reduction <maximumf>, %430, %cst_95 [1] : vector<2x16xf32> to vector<2xf32>
    %432 = vector.shape_cast %431 : vector<2xf32> to vector<2x1xf32>
    %433 = vector.broadcast %432 : vector<2x1xf32> to vector<2x16xf32>
    %434 = arith.subf %430, %433 : vector<2x16xf32>
    %435 = math.exp %434 : vector<2x16xf32>
    %cst_96 = arith.constant dense<0.000000e+00> : vector<2xf32>
    %436 = vector.multi_reduction <add>, %435, %cst_96 [1] : vector<2x16xf32> to vector<2xf32>
    %437 = vector.shape_cast %436 : vector<2xf32> to vector<2x1xf32>
    %438 = vector.broadcast %437 : vector<2x1xf32> to vector<2x16xf32>
    %439 = arith.divf %435, %438 : vector<2x16xf32>
    %440 = vector.broadcast %418 : vector<2x1xf32> to vector<2x16xf32>
    %441 = arith.mulf %440, %439 : vector<2x16xf32>
    %cst_97 = arith.constant 1.000000e+00 : f32
    %442 = vector.broadcast %cst_97 : f32 to vector<2x1xf32>
    %443 = arith.subf %442, %418 : vector<2x1xf32>
    %444 = vector.broadcast %443 : vector<2x1xf32> to vector<2x16xf32>
    %445 = arith.mulf %444, %405 : vector<2x16xf32>
    %446 = arith.addf %441, %445 : vector<2x16xf32>
    %447 = vector.extract_strided_slice %419 {offsets = [0, 0], sizes = [2, 1], strides = [1, 1]} : vector<2x3xf32> to vector<2x1xf32>
    %448 = vector.extract_strided_slice %446 {offsets = [0, 15], sizes = [2, 1], strides = [1, 1]} : vector<2x16xf32> to vector<2x1xf32>
    %449 = vector.extract_strided_slice %446 {offsets = [0, 0], sizes = [2, 15], strides = [1, 1]} : vector<2x16xf32> to vector<2x15xf32>
    %450 = tpu.concatenate %448, %449 in 1 : vector<2x1xf32>, vector<2x15xf32> -> vector<2x16xf32>
    %451 = vector.broadcast %447 : vector<2x1xf32> to vector<2x16xf32>
    %452 = arith.mulf %451, %450 : vector<2x16xf32>
    %453 = vector.extract_strided_slice %419 {offsets = [0, 1], sizes = [2, 1], strides = [1, 1]} : vector<2x3xf32> to vector<2x1xf32>
    %454 = vector.broadcast %453 : vector<2x1xf32> to vector<2x16xf32>
    %455 = arith.mulf %454, %446 : vector<2x16xf32>
    %456 = arith.addf %452, %455 : vector<2x16xf32>
    %457 = vector.extract_strided_slice %419 {offsets = [0, 2], sizes = [2, 1], strides = [1, 1]} : vector<2x3xf32> to vector<2x1xf32>
    %458 = vector.extract_strided_slice %446 {offsets = [0, 1], sizes = [2, 15], strides = [1, 1]} : vector<2x16xf32> to vector<2x15xf32>
    %459 = vector.extract_strided_slice %446 {offsets = [0, 0], sizes = [2, 1], strides = [1, 1]} : vector<2x16xf32> to vector<2x1xf32>
    %460 = tpu.concatenate %458, %459 in 1 : vector<2x15xf32>, vector<2x1xf32> -> vector<2x16xf32>
    %461 = vector.broadcast %457 : vector<2x1xf32> to vector<2x16xf32>
    %462 = arith.mulf %461, %460 : vector<2x16xf32>
    %463 = arith.addf %456, %462 : vector<2x16xf32>
    %cst_98 = arith.constant 1.000000e-16 : f32
    %464 = vector.broadcast %cst_98 : f32 to vector<2x16xf32>
    %465 = arith.addf %463, %464 : vector<2x16xf32>
    %466 = math.log %465 : vector<2x16xf32>
    %467 = vector.broadcast %420 : vector<2x1xf32> to vector<2x16xf32>
    %468 = arith.mulf %467, %466 : vector<2x16xf32>
    %469 = math.exp %468 : vector<2x16xf32>
    %cst_99 = arith.constant dense<0.000000e+00> : vector<2xf32>
    %470 = vector.multi_reduction <add>, %469, %cst_99 [1] : vector<2x16xf32> to vector<2xf32>
    %471 = vector.shape_cast %470 : vector<2xf32> to vector<2x1xf32>
    %cst_100 = arith.constant 1.000000e-16 : f32
    %472 = vector.broadcast %cst_100 : f32 to vector<2x1xf32>
    %473 = arith.addf %471, %472 : vector<2x1xf32>
    %474 = vector.broadcast %473 : vector<2x1xf32> to vector<2x16xf32>
    %475 = arith.divf %469, %474 : vector<2x16xf32>
    %c5 = arith.constant 5 : index
    %c0_101 = arith.constant 0 : index
    %c0_102 = arith.constant 0 : index
    %476 = vector.load %arg6[%c5, %c0_101, %c0_102] : memref<8x2x16xf32, #tpu.memory_space<vmem>>, vector<1x2x16xf32>
    %477 = vector.shape_cast %476 : vector<1x2x16xf32> to vector<2x16xf32>
    %478 = vector.shape_cast %475 : vector<2x16xf32> to vector<1x2x16xf32>
    tpu.vector_store %arg6[%c5, %c0_101, %c0_102], %478 {strides = array<i32>} : memref<8x2x16xf32, #tpu.memory_space<vmem>>, vector<1x2x16xf32>,
    %479 = vector.shape_cast %475 : vector<2x16xf32> to vector<2x16x1xf32>
    %480 = vector.broadcast %479 : vector<2x16x1xf32> to vector<2x16x8xf32>
    %481 = arith.mulf %480, %49 : vector<2x16x8xf32>
    %cst_103 = arith.constant dense<0.000000e+00> : vector<2x8xf32>
    %482 = vector.multi_reduction <add>, %481, %cst_103 [1] : vector<2x16x8xf32> to vector<2x8xf32>
    %c5_104 = arith.constant 5 : index
    %c0_105 = arith.constant 0 : index
    %c0_106 = arith.constant 0 : index
    %483 = vector.load %arg5[%c5_104, %c0_105, %c0_106] : memref<8x2x8xf32, #tpu.memory_space<vmem>>, vector<1x2x8xf32>
    %484 = vector.shape_cast %483 : vector<1x2x8xf32> to vector<2x8xf32>
    %485 = vector.shape_cast %482 : vector<2x8xf32> to vector<1x2x8xf32>
    tpu.vector_store %arg5[%c5_104, %c0_105, %c0_106], %485 {strides = array<i32>} : memref<8x2x8xf32, #tpu.memory_space<vmem>>, vector<1x2x8xf32>,
    %486 = vector.extract_strided_slice %58 {offsets = [12, 0], sizes = [2, 8], strides = [1, 1]} : vector<16x8xf32> to vector<2x8xf32>
    %487 = vector.extract_strided_slice %17 {offsets = [12, 0], sizes = [2, 1], strides = [1, 1]} : vector<16x1xf32> to vector<2x1xf32>
    %488 = vector.extract_strided_slice %25 {offsets = [12, 0], sizes = [2, 1], strides = [1, 1]} : vector<16x1xf32> to vector<2x1xf32>
    %489 = vector.extract_strided_slice %35 {offsets = [12, 0], sizes = [2, 3], strides = [1, 1]} : vector<16x3xf32> to vector<2x3xf32>
    %490 = vector.extract_strided_slice %48 {offsets = [12, 0], sizes = [2, 1], strides = [1, 1]} : vector<16x1xf32> to vector<2x1xf32>
    %491 = vector.extract_strided_slice %64 {offsets = [12, 0], sizes = [2, 1], strides = [1, 1]} : vector<16x1xf32> to vector<2x1xf32>
    %492 = vector.shape_cast %486 : vector<2x8xf32> to vector<2x1x8xf32>
    %493 = vector.broadcast %492 : vector<2x1x8xf32> to vector<2x16x8xf32>
    %494 = arith.mulf %51, %493 : vector<2x16x8xf32>
    %cst_107 = arith.constant dense<0.000000e+00> : vector<2x16xf32>
    %495 = vector.multi_reduction <add>, %494, %cst_107 [2] : vector<2x16x8xf32> to vector<2x16xf32>
    %496 = arith.mulf %495, %56 : vector<2x16xf32>
    %497 = vector.broadcast %491 : vector<2x1xf32> to vector<2x16xf32>
    %498 = arith.mulf %496, %497 : vector<2x16xf32>
    %499 = vector.broadcast %487 : vector<2x1xf32> to vector<2x16xf32>
    %500 = arith.mulf %499, %498 : vector<2x16xf32>
    %cst_108 = arith.constant dense<0xFF800000> : vector<2xf32>
    %501 = vector.multi_reduction <maximumf>, %500, %cst_108 [1] : vector<2x16xf32> to vector<2xf32>
    %502 = vector.shape_cast %501 : vector<2xf32> to vector<2x1xf32>
    %503 = vector.broadcast %502 : vector<2x1xf32> to vector<2x16xf32>
    %504 = arith.subf %500, %503 : vector<2x16xf32>
    %505 = math.exp %504 : vector<2x16xf32>
    %cst_109 = arith.constant dense<0.000000e+00> : vector<2xf32>
    %506 = vector.multi_reduction <add>, %505, %cst_109 [1] : vector<2x16xf32> to vector<2xf32>
    %507 = vector.shape_cast %506 : vector<2xf32> to vector<2x1xf32>
    %508 = vector.broadcast %507 : vector<2x1xf32> to vector<2x16xf32>
    %509 = arith.divf %505, %508 : vector<2x16xf32>
    %510 = vector.broadcast %488 : vector<2x1xf32> to vector<2x16xf32>
    %511 = arith.mulf %510, %509 : vector<2x16xf32>
    %cst_110 = arith.constant 1.000000e+00 : f32
    %512 = vector.broadcast %cst_110 : f32 to vector<2x1xf32>
    %513 = arith.subf %512, %488 : vector<2x1xf32>
    %514 = vector.broadcast %513 : vector<2x1xf32> to vector<2x16xf32>
    %515 = arith.mulf %514, %475 : vector<2x16xf32>
    %516 = arith.addf %511, %515 : vector<2x16xf32>
    %517 = vector.extract_strided_slice %489 {offsets = [0, 0], sizes = [2, 1], strides = [1, 1]} : vector<2x3xf32> to vector<2x1xf32>
    %518 = vector.extract_strided_slice %516 {offsets = [0, 15], sizes = [2, 1], strides = [1, 1]} : vector<2x16xf32> to vector<2x1xf32>
    %519 = vector.extract_strided_slice %516 {offsets = [0, 0], sizes = [2, 15], strides = [1, 1]} : vector<2x16xf32> to vector<2x15xf32>
    %520 = tpu.concatenate %518, %519 in 1 : vector<2x1xf32>, vector<2x15xf32> -> vector<2x16xf32>
    %521 = vector.broadcast %517 : vector<2x1xf32> to vector<2x16xf32>
    %522 = arith.mulf %521, %520 : vector<2x16xf32>
    %523 = vector.extract_strided_slice %489 {offsets = [0, 1], sizes = [2, 1], strides = [1, 1]} : vector<2x3xf32> to vector<2x1xf32>
    %524 = vector.broadcast %523 : vector<2x1xf32> to vector<2x16xf32>
    %525 = arith.mulf %524, %516 : vector<2x16xf32>
    %526 = arith.addf %522, %525 : vector<2x16xf32>
    %527 = vector.extract_strided_slice %489 {offsets = [0, 2], sizes = [2, 1], strides = [1, 1]} : vector<2x3xf32> to vector<2x1xf32>
    %528 = vector.extract_strided_slice %516 {offsets = [0, 1], sizes = [2, 15], strides = [1, 1]} : vector<2x16xf32> to vector<2x15xf32>
    %529 = vector.extract_strided_slice %516 {offsets = [0, 0], sizes = [2, 1], strides = [1, 1]} : vector<2x16xf32> to vector<2x1xf32>
    %530 = tpu.concatenate %528, %529 in 1 : vector<2x15xf32>, vector<2x1xf32> -> vector<2x16xf32>
    %531 = vector.broadcast %527 : vector<2x1xf32> to vector<2x16xf32>
    %532 = arith.mulf %531, %530 : vector<2x16xf32>
    %533 = arith.addf %526, %532 : vector<2x16xf32>
    %cst_111 = arith.constant 1.000000e-16 : f32
    %534 = vector.broadcast %cst_111 : f32 to vector<2x16xf32>
    %535 = arith.addf %533, %534 : vector<2x16xf32>
    %536 = math.log %535 : vector<2x16xf32>
    %537 = vector.broadcast %490 : vector<2x1xf32> to vector<2x16xf32>
    %538 = arith.mulf %537, %536 : vector<2x16xf32>
    %539 = math.exp %538 : vector<2x16xf32>
    %cst_112 = arith.constant dense<0.000000e+00> : vector<2xf32>
    %540 = vector.multi_reduction <add>, %539, %cst_112 [1] : vector<2x16xf32> to vector<2xf32>
    %541 = vector.shape_cast %540 : vector<2xf32> to vector<2x1xf32>
    %cst_113 = arith.constant 1.000000e-16 : f32
    %542 = vector.broadcast %cst_113 : f32 to vector<2x1xf32>
    %543 = arith.addf %541, %542 : vector<2x1xf32>
    %544 = vector.broadcast %543 : vector<2x1xf32> to vector<2x16xf32>
    %545 = arith.divf %539, %544 : vector<2x16xf32>
    %c6 = arith.constant 6 : index
    %c0_114 = arith.constant 0 : index
    %c0_115 = arith.constant 0 : index
    %546 = vector.load %arg6[%c6, %c0_114, %c0_115] : memref<8x2x16xf32, #tpu.memory_space<vmem>>, vector<1x2x16xf32>
    %547 = vector.shape_cast %546 : vector<1x2x16xf32> to vector<2x16xf32>
    %548 = vector.shape_cast %545 : vector<2x16xf32> to vector<1x2x16xf32>
    tpu.vector_store %arg6[%c6, %c0_114, %c0_115], %548 {strides = array<i32>} : memref<8x2x16xf32, #tpu.memory_space<vmem>>, vector<1x2x16xf32>,
    %549 = vector.shape_cast %545 : vector<2x16xf32> to vector<2x16x1xf32>
    %550 = vector.broadcast %549 : vector<2x16x1xf32> to vector<2x16x8xf32>
    %551 = arith.mulf %550, %49 : vector<2x16x8xf32>
    %cst_116 = arith.constant dense<0.000000e+00> : vector<2x8xf32>
    %552 = vector.multi_reduction <add>, %551, %cst_116 [1] : vector<2x16x8xf32> to vector<2x8xf32>
    %c6_117 = arith.constant 6 : index
    %c0_118 = arith.constant 0 : index
    %c0_119 = arith.constant 0 : index
    %553 = vector.load %arg5[%c6_117, %c0_118, %c0_119] : memref<8x2x8xf32, #tpu.memory_space<vmem>>, vector<1x2x8xf32>
    %554 = vector.shape_cast %553 : vector<1x2x8xf32> to vector<2x8xf32>
    %555 = vector.shape_cast %552 : vector<2x8xf32> to vector<1x2x8xf32>
    tpu.vector_store %arg5[%c6_117, %c0_118, %c0_119], %555 {strides = array<i32>} : memref<8x2x8xf32, #tpu.memory_space<vmem>>, vector<1x2x8xf32>,
    %556 = vector.extract_strided_slice %58 {offsets = [14, 0], sizes = [2, 8], strides = [1, 1]} : vector<16x8xf32> to vector<2x8xf32>
    %557 = vector.extract_strided_slice %17 {offsets = [14, 0], sizes = [2, 1], strides = [1, 1]} : vector<16x1xf32> to vector<2x1xf32>
    %558 = vector.extract_strided_slice %25 {offsets = [14, 0], sizes = [2, 1], strides = [1, 1]} : vector<16x1xf32> to vector<2x1xf32>
    %559 = vector.extract_strided_slice %35 {offsets = [14, 0], sizes = [2, 3], strides = [1, 1]} : vector<16x3xf32> to vector<2x3xf32>
    %560 = vector.extract_strided_slice %48 {offsets = [14, 0], sizes = [2, 1], strides = [1, 1]} : vector<16x1xf32> to vector<2x1xf32>
    %561 = vector.extract_strided_slice %64 {offsets = [14, 0], sizes = [2, 1], strides = [1, 1]} : vector<16x1xf32> to vector<2x1xf32>
    %562 = vector.shape_cast %556 : vector<2x8xf32> to vector<2x1x8xf32>
    %563 = vector.broadcast %562 : vector<2x1x8xf32> to vector<2x16x8xf32>
    %564 = arith.mulf %51, %563 : vector<2x16x8xf32>
    %cst_120 = arith.constant dense<0.000000e+00> : vector<2x16xf32>
    %565 = vector.multi_reduction <add>, %564, %cst_120 [2] : vector<2x16x8xf32> to vector<2x16xf32>
    %566 = arith.mulf %565, %56 : vector<2x16xf32>
    %567 = vector.broadcast %561 : vector<2x1xf32> to vector<2x16xf32>
    %568 = arith.mulf %566, %567 : vector<2x16xf32>
    %569 = vector.broadcast %557 : vector<2x1xf32> to vector<2x16xf32>
    %570 = arith.mulf %569, %568 : vector<2x16xf32>
    %cst_121 = arith.constant dense<0xFF800000> : vector<2xf32>
    %571 = vector.multi_reduction <maximumf>, %570, %cst_121 [1] : vector<2x16xf32> to vector<2xf32>
    %572 = vector.shape_cast %571 : vector<2xf32> to vector<2x1xf32>
    %573 = vector.broadcast %572 : vector<2x1xf32> to vector<2x16xf32>
    %574 = arith.subf %570, %573 : vector<2x16xf32>
    %575 = math.exp %574 : vector<2x16xf32>
    %cst_122 = arith.constant dense<0.000000e+00> : vector<2xf32>
    %576 = vector.multi_reduction <add>, %575, %cst_122 [1] : vector<2x16xf32> to vector<2xf32>
    %577 = vector.shape_cast %576 : vector<2xf32> to vector<2x1xf32>
    %578 = vector.broadcast %577 : vector<2x1xf32> to vector<2x16xf32>
    %579 = arith.divf %575, %578 : vector<2x16xf32>
    %580 = vector.broadcast %558 : vector<2x1xf32> to vector<2x16xf32>
    %581 = arith.mulf %580, %579 : vector<2x16xf32>
    %cst_123 = arith.constant 1.000000e+00 : f32
    %582 = vector.broadcast %cst_123 : f32 to vector<2x1xf32>
    %583 = arith.subf %582, %558 : vector<2x1xf32>
    %584 = vector.broadcast %583 : vector<2x1xf32> to vector<2x16xf32>
    %585 = arith.mulf %584, %545 : vector<2x16xf32>
    %586 = arith.addf %581, %585 : vector<2x16xf32>
    %587 = vector.extract_strided_slice %559 {offsets = [0, 0], sizes = [2, 1], strides = [1, 1]} : vector<2x3xf32> to vector<2x1xf32>
    %588 = vector.extract_strided_slice %586 {offsets = [0, 15], sizes = [2, 1], strides = [1, 1]} : vector<2x16xf32> to vector<2x1xf32>
    %589 = vector.extract_strided_slice %586 {offsets = [0, 0], sizes = [2, 15], strides = [1, 1]} : vector<2x16xf32> to vector<2x15xf32>
    %590 = tpu.concatenate %588, %589 in 1 : vector<2x1xf32>, vector<2x15xf32> -> vector<2x16xf32>
    %591 = vector.broadcast %587 : vector<2x1xf32> to vector<2x16xf32>
    %592 = arith.mulf %591, %590 : vector<2x16xf32>
    %593 = vector.extract_strided_slice %559 {offsets = [0, 1], sizes = [2, 1], strides = [1, 1]} : vector<2x3xf32> to vector<2x1xf32>
    %594 = vector.broadcast %593 : vector<2x1xf32> to vector<2x16xf32>
    %595 = arith.mulf %594, %586 : vector<2x16xf32>
    %596 = arith.addf %592, %595 : vector<2x16xf32>
    %597 = vector.extract_strided_slice %559 {offsets = [0, 2], sizes = [2, 1], strides = [1, 1]} : vector<2x3xf32> to vector<2x1xf32>
    %598 = vector.extract_strided_slice %586 {offsets = [0, 1], sizes = [2, 15], strides = [1, 1]} : vector<2x16xf32> to vector<2x15xf32>
    %599 = vector.extract_strided_slice %586 {offsets = [0, 0], sizes = [2, 1], strides = [1, 1]} : vector<2x16xf32> to vector<2x1xf32>
    %600 = tpu.concatenate %598, %599 in 1 : vector<2x15xf32>, vector<2x1xf32> -> vector<2x16xf32>
    %601 = vector.broadcast %597 : vector<2x1xf32> to vector<2x16xf32>
    %602 = arith.mulf %601, %600 : vector<2x16xf32>
    %603 = arith.addf %596, %602 : vector<2x16xf32>
    %cst_124 = arith.constant 1.000000e-16 : f32
    %604 = vector.broadcast %cst_124 : f32 to vector<2x16xf32>
    %605 = arith.addf %603, %604 : vector<2x16xf32>
    %606 = math.log %605 : vector<2x16xf32>
    %607 = vector.broadcast %560 : vector<2x1xf32> to vector<2x16xf32>
    %608 = arith.mulf %607, %606 : vector<2x16xf32>
    %609 = math.exp %608 : vector<2x16xf32>
    %cst_125 = arith.constant dense<0.000000e+00> : vector<2xf32>
    %610 = vector.multi_reduction <add>, %609, %cst_125 [1] : vector<2x16xf32> to vector<2xf32>
    %611 = vector.shape_cast %610 : vector<2xf32> to vector<2x1xf32>
    %cst_126 = arith.constant 1.000000e-16 : f32
    %612 = vector.broadcast %cst_126 : f32 to vector<2x1xf32>
    %613 = arith.addf %611, %612 : vector<2x1xf32>
    %614 = vector.broadcast %613 : vector<2x1xf32> to vector<2x16xf32>
    %615 = arith.divf %609, %614 : vector<2x16xf32>
    %c7 = arith.constant 7 : index
    %c0_127 = arith.constant 0 : index
    %c0_128 = arith.constant 0 : index
    %616 = vector.load %arg6[%c7, %c0_127, %c0_128] : memref<8x2x16xf32, #tpu.memory_space<vmem>>, vector<1x2x16xf32>
    %617 = vector.shape_cast %616 : vector<1x2x16xf32> to vector<2x16xf32>
    %618 = vector.shape_cast %615 : vector<2x16xf32> to vector<1x2x16xf32>
    tpu.vector_store %arg6[%c7, %c0_127, %c0_128], %618 {strides = array<i32>} : memref<8x2x16xf32, #tpu.memory_space<vmem>>, vector<1x2x16xf32>,
    %619 = vector.shape_cast %615 : vector<2x16xf32> to vector<2x16x1xf32>
    %620 = vector.broadcast %619 : vector<2x16x1xf32> to vector<2x16x8xf32>
    %621 = arith.mulf %620, %49 : vector<2x16x8xf32>
    %cst_129 = arith.constant dense<0.000000e+00> : vector<2x8xf32>
    %622 = vector.multi_reduction <add>, %621, %cst_129 [1] : vector<2x16x8xf32> to vector<2x8xf32>
    %c7_130 = arith.constant 7 : index
    %c0_131 = arith.constant 0 : index
    %c0_132 = arith.constant 0 : index
    %623 = vector.load %arg5[%c7_130, %c0_131, %c0_132] : memref<8x2x8xf32, #tpu.memory_space<vmem>>, vector<1x2x8xf32>
    %624 = vector.shape_cast %623 : vector<1x2x8xf32> to vector<2x8xf32>
    %625 = vector.shape_cast %622 : vector<2x8xf32> to vector<1x2x8xf32>
    tpu.vector_store %arg5[%c7_130, %c0_131, %c0_132], %625 {strides = array<i32>} : memref<8x2x8xf32, #tpu.memory_space<vmem>>, vector<1x2x8xf32>,
    return
  }
}

</mosaic_0001>

<bundles_post_ra>
// kernel: tpu_custom_call.1
= control target key start
LH: loop header
LB: loop body
LE: loop exit
PB: predicated region body
PF: predicated region fallthrough
CT: control target
= control target key end

     0   :  { %12 = vsyncpa [#allocation3], 0  ;;  %vm37_vm0 = vcmask 261120   ;;  %s2979_s0 = inlined_call_operand.vmem [shape: f32[16,32], index: 0, kind: input, shape index: {}]   ;;  %s2980_s1 = inlined_call_operand.vmem [shape: f32[32,14], index: 1, kind: input, shape index: {}]   ;;  %s2981_s2 = inlined_call_operand.vmem [shape: f32[1,14], index: 2, kind: input, shape index: {}]   ;;  %s2982_s3 = inlined_call_operand.vmem [shape: f32[2,16], index: 3, kind: input, shape index: {}]   ;;  %s2983_s4 = inlined_call_operand.vmem [shape: f32[2,16,8], index: 4, kind: input, shape index: {}]   ;;  %s2984_s5 = inlined_call_operand.hbm [shape: f32[8,2,8], index: 5, kind: output, shape index: {0}]   ;;  %s2985_s6 = inlined_call_operand.hbm [shape: f32[8,2,16], index: 6, kind: output, shape index: {1}]  }
   0x1   :  { %v26_v0 = vld [vmem:[%s2980_s1] sm:$0xff]  ;;  %v27_v1 = vld [vmem:[%s2980_s1 + $0x8] sm:$0xff]  ;;  %v28_v2 = vld [vmem:[%s2980_s1 + $0x10] sm:$0xff] }
   0x2   :  { %v1919_v3 = vpack.c.bf16 %v27_v1, %v26_v0  ;;  %v29_v4 = vld [vmem:[%s2980_s1 + $0x18] sm:$0xff]  ;;  %v24_v5 = vld [vmem:[%s2979_s0] sm:$0xff] }
   0x3   :  { %v1923_v6 = vpack.c.bf16 %v29_v4, %v28_v2  ;;  %1916 = vmatprep.mubr.msk.f32.mxu0 %vm37_vm0, %v24_v5  ;;  %v183_v7 = vld [vmem:[%s2983_s4] sm:$0xff] }
   0x4   :  { %13 = vsyncpa [#allocation5], 0  ;;  %1920 = vmatprep.subr.bf16.mxu0 %v1919_v3  ;;  %v2207_v8 = vadd.f32 1e-16, %v183_v7  ;;  %vm195_vm1 = vcmask 64512   ;;  %v25_v11 = vld [vmem:[%s2979_s0 + $0x8] sm:$0xff]  ;;  %v235_v26 = vlaneseq }
   0x5   :  { %1922 = vmatpush3.bf16.msra.mxu0 %v1919_v3  ;;  %v185_v12 = vld [vmem:[%s2983_s4 + $0x10] sm:$0xff]  ;;  %v184_v13 = vld [vmem:[%s2983_s4 + $0x8] sm:$0xff]  ;;  %v186_v18 = vld [vmem:[%s2983_s4 + $0x18] sm:$0xff]  ;;  %v2136_v24 = vmov 1966171168   ;;  %v2137_v0 = vmov 0  }
   0x6   :  { %1924 = vmatprep.subr.bf16.mxu0 %v1923_v6  ;;  %v191_v9 = vmul.f32 %v2207_v8, %v2207_v8  ;;  %v2222_v14 = vadd.f32 1e-16, %v185_v12  ;;  %v2224_v15 = vadd.f32 1e-16, %v184_v13  ;;  %v2235_v21 = vadd.f32 1e-16, %v186_v18  ;;  %1945 = vset.pattern.permute.xlu0 %v2137_v0 }
   0x7   :  { %v233_v25 = vunpack.c.l.s4 %v2136_v24  ;;  %v1899_v27 = vld [vmem:[%s2981_s2] ss:$0 sm:$0xff]  ;;  %v2244_v29 = vshrl.u32 %v235_v26, 7  ;;  %1944 = vset.pattern.permute.xlu1 %v2137_v0  ;;  %vm149_vm2 = vcmask 105552   ;;  %vm331_vm3 = vcmask 130112   ;;  %s2140_s2 = smov 118  }
   0x8   :  { %v196_v10 = vsel %vm195_vm1, %v191_v9, 0.0  ;;  %v193_v16 = vmul.f32 %v2222_v14, %v2222_v14  ;;  %v192_v17 = vmul.f32 %v2224_v15, %v2224_v15  ;;  %v194_v22 = vmul.f32 %v2235_v21, %v2235_v21  ;;  %s2145_s19 = smov 1   ;;  %s2146_s20 = smov 113  }
   0x9   :  { %1926 = vmatpush3.bf16.msra.mxu0 %v1923_v6  ;;  %197 = vadd.xlane.f32.xlu0 %v196_v10  ;;  %v234_v28 = vunpack.c.0.s8 %v233_v25  ;;  %v2256_v38 = vsub.s32 0, %v2244_v29  ;;  %vm342_vm4 = vcmask 1041409   ;;  %vm346_vm5 = vcmask 123904   ;;  %s2147_s21 = smov 15   ;;  %s2148_s22 = smov 127  }
   0xa   :  { %v202_v19 = vsel %vm195_vm1, %v193_v16, 0.0  ;;  %v199_v20 = vsel %vm195_vm1, %v192_v17, 0.0  ;;  %v205_v23 = vsel %vm195_vm1, %v194_v22, 0.0  ;;  %vm170_vm6 = vcmask 23552  }
   0xb   :  { %203 = vadd.xlane.f32.xlu1 %v202_v19  ;;  %v2251_v34 = vsub.s32 %v234_v28, %v2244_v29  ;;  %vm555_vm7 = vcmask 1043459   ;;  %vm559_vm8 = vcmask 125954   ;;  %vm379_vm9 = vcmask 7168  }
   0xc   :  { %1917 = vmatmul.mubr.msk.f32.vlgmr.msra.gmra.mrb[0].mxu0 %vm37_vm0, %v25_v11  ;;  %vm399_vm10 = vcmask 121856   ;;  %vm762_vm11 = vcmask 1045509   ;;  %vm766_vm12 = vcmask 128004   ;;  %vm948_vm13 = vcmask 1047559  }
   0xd   :  { %200 = vadd.xlane.f32.xlu0 %v199_v20  ;;  %vm952_vm14 = vcmask 130054   ;;  %vm473_vm15 = vcmask 58368  }
   0xf   :  { %206 = vadd.xlane.f32.xlu1 %v205_v23 }
  0x96   :  { %v198_v4 = vpop.xlane.xlu0 %197 }
  0x97   :  { %v208_v6 = vmax.f32 %v198_v4, 1e-16 }
  0x98   :  { %v204_v12 = vpop.xlane.xlu1 %203 }
  0x99   :  { %v210_v16 = vmax.f32 %v204_v12, 1e-16 }
  0x9a   :  { %v201_v5 = vpop.xlane.xlu0 %200 }
  0x9b   :  { %v209_v9 = vmax.f32 %v201_v5, 1e-16 }
  0x9c   :  { %v207_v17 = vpop.xlane.xlu1 %206 }
  0x9d   :  { %v211_v20 = vmax.f32 %v207_v17, 1e-16 }
  0xdf   :  { %v1918_v30 = vpop.f32.mrb[0].mxu0 }
  0xe0   :  { %v2246_v31 = vadd.f32 %v1918_v30, %v1899_v27  ;;  %v110_v32 = vpop.f32.mrb[1].mxu0 }
  0xe1   :  { %v2248_v33 = vadd.f32 %v1899_v27, %v110_v32 }
  0xe2   :  { %v2285_v58 = vadd.f32 1e-16, %v2246_v31 }
  0xe3   :  { %v216_v35 = vadd.f32 1e-16, %v2248_v33  ;;  %v121_v1 = vand.u32 2147483647, %v2248_v33 }
  0xe4   :  { %v1478_v59 = vcombine.high %v2285_v58, %v2285_v58 }
  0xe5   :  { %v218_v36 = vmul.f32 %v216_v35, %v216_v35  ;;  %v238_v37 = vrot.slane %v216_v35, %v2251_v34  ;;  %v661_v39 = vcombine.high %v216_v35, %v216_v35  ;;  %v123_v2 = vsub.f32 0.0, %v121_v1 }
  0xe6   :  { %v1485_v60 = vrot.slane %v1478_v59, %v2251_v34 }
  0xe7   :  { %v220_v40 = vsel %vm195_vm1, %v218_v36, 0.0  ;;  %v2260_v41 = vrot.slane %v238_v37, %v2251_v34  ;;  %v239_v42 = vcombine.high %v238_v37, %v238_v37  ;;  %v668_v43 = vrot.slane %v661_v39, %v2251_v34 }
  0xe8   :  { %221 = vadd.xlane.f32.xlu0 %v220_v40  ;;  %v2291_v61 = vrot.slane %v1485_v60, %v2251_v34  ;;  %v1486_v62 = vcombine.high %v1485_v60, %v1485_v60  ;;  %v125_v3 = vmul.f32 1.442695, %v123_v2  ;;  %v2310_v37 = vsub.s32 1, %v2244_v29 }
  0xe9   :  { %v257_v44 = vrot.slane %v2260_v41, %v2256_v38  ;;  %v2266_v45 = vrot.slane %v239_v42, %v2251_v34  ;;  %v2269_v46 = vrot.slane %v668_v43, %v2251_v34  ;;  %v669_v47 = vcombine.high %v668_v43, %v668_v43 }
  0xea   :  { %v2294_v63 = vrot.slane %v1486_v62, %v2251_v34  ;;  %1968 = vpow2.f32 %v125_v3  ;;  %v119_v39 = vmax.f32 %v2248_v33, 0.0  ;;  %v150_v60 = vsel %vm149_vm2, %v2248_v33, -inf }
  0xeb   :  { %v264_v48 = vmul.f32 %v257_v44, %v2207_v8  ;;  %v265_v49 = vmul.f32 %v257_v44, %v2224_v15  ;;  %v261_v50 = vrot.slane %v2266_v45, %v2256_v38  ;;  %v2276_v51 = vrot.slane %v669_v47, %v2251_v34 }
  0xec   :  { %1970 = vrsqrt.f32 %v208_v6  ;;  %v2138_v47 = vmov 8   ;;  %v2139_v62 = vmov 9  }
  0xed   :  { %v268_v52 = vsel %vm195_vm1, %v264_v48, 0.0  ;;  %v271_v53 = vsel %vm195_vm1, %v265_v49, 0.0  ;;  %v266_v54 = vmul.f32 %v261_v50, %v2222_v14  ;;  %v267_v55 = vmul.f32 %v261_v50, %v2235_v21 }
  0xee   :  { %269 = vadd.xlane.f32.xlu1 %v268_v52  ;;  %272 = vadd.xlane.f32.xlu0 %v271_v53  ;;  %1972 = vrsqrt.f32 %v209_v9 }
  0xef   :  { %v274_v56 = vsel %vm195_vm1, %v266_v54, 0.0  ;;  %v277_v57 = vsel %vm195_vm1, %v267_v55, 0.0  ;;  %v475_v55 = vcombine.high %v2260_v41, %v2260_v41  ;;  %v321_v41 = vand.u32 127, %v235_v26 }
  0xf1   :  { %v326_v2 = vadd.s32 4294967288, %v321_v41  ;;  %v2339_v4 = vsub.s32 %v321_v41, %v2244_v29 }
  0xf2   :  { %275 = vadd.xlane.f32.xlu1 %v274_v56  ;;  %278 = vadd.xlane.f32.xlu0 %v277_v57  ;;  %v480_v56 = vrot.slane %v475_v55, %v2256_v38 }
  0xf3   :  { %v2342_v5 = vsub.s32 %v326_v2, %v2244_v29 }
  0xf4   :  { %v1969_v7 = vpop.eup %1968  ;;  %v487_v57 = vmul.f32 %v480_v56, %v2207_v8 }
  0xf5   :  { %v129_v11 = vadd.f32 1.0, %v1969_v7 }
  0xf6   :  { %v2299_v18 = vpop.eup %1970  ;;  %v491_v59 = vsel %vm195_vm1, %v487_v57, 0.0  ;;  %v2366_v57 = vsub.s32 2, %v2244_v29 }
  0xf8   :  { %v2301_v19 = vpop.eup %1972 }
 0x175   :  { %v222_v10 = vpop.xlane.xlu0 %221 }
 0x176   :  { %v226_v13 = vmax.f32 %v222_v10, 1e-16 }
 0x178   :  { %1974 = vrsqrt.f32 %v226_v13 }
 0x179   :  { %1976 = vlog2.f32 %v129_v11  ;;  %v476_v11 = vcombine.high %v2266_v45, %v2266_v45 }
 0x17a   :  { %1978 = vrsqrt.f32 %v210_v16 }
 0x17b   :  { %v270_v22 = vpop.xlane.xlu1 %269  ;;  %v273_v23 = vpop.xlane.xlu0 %272  ;;  %1980 = vrsqrt.f32 %v211_v20  ;;  %v484_v20 = vrot.slane %v476_v11, %v2256_v38 }
 0x17c   :  { %v280_v27 = vmul.f32 %v2299_v18, %v270_v22  ;;  %v281_v30 = vmul.f32 %v2301_v19, %v273_v23 }
 0x17f   :  { %v276_v42 = vpop.xlane.xlu1 %275  ;;  %v279_v50 = vpop.xlane.xlu0 %278 }
 0x182   :  { %v2303_v24 = vpop.eup %1974 }
 0x183   :  { %v1977_v25 = vpop.eup %1976  ;;  %v288_v28 = vrot.slane %v2303_v24, %v2256_v38  ;;  %v292_v44 = vrot.slane %v2303_v24, %v2310_v37 }
 0x184   :  { %v132_v36 = vmul.f32 0.6931472, %v1977_v25  ;;  %v2313_v40 = vpop.eup %1978  ;;  %v489_v25 = vmul.f32 %v484_v20, %v2222_v14 }
 0x185   :  { %v295_v32 = vmul.f32 %v288_v28, %v280_v27  ;;  %v296_v35 = vmul.f32 %v288_v28, %v281_v30  ;;  %v282_v48 = vmul.f32 %v2313_v40, %v276_v42  ;;  %v2322_v49 = vpop.eup %1980  ;;  %v490_v28 = vmul.f32 %v484_v20, %v2235_v21 }
 0x186   :  { %v2315_v43 = vadd.f32 %v132_v36, %v119_v39  ;;  %v283_v53 = vmul.f32 %v2322_v49, %v279_v50  ;;  %v497_v27 = vsel %vm195_vm1, %v489_v25, 0.0  ;;  %v137_v42 = vsub.f32 0.0, %v2248_v33 }
 0x187   :  { %309 = vperm.xlu1 %1944, %v295_v32   ;;  %312 = vperm.xlu0 %1945, %v296_v35   ;;  %v297_v52 = vmul.f32 %v292_v44, %v282_v48  ;;  %v500_v30 = vsel %vm195_vm1, %v490_v28, 0.0  ;;  %v488_v50 = vmul.f32 %v480_v56, %v2224_v15  ;;  %v2142_v28 = vmov 11  }
 0x188   :  { %v298_v54 = vmul.f32 %v292_v44, %v283_v53  ;;  %v139_v44 = vmul.f32 1.442695, %v137_v42  ;;  %v2144_v42 = vmov 13  }
 0x189   :  { %v494_v53 = vsel %vm195_vm1, %v488_v50, 0.0 }
 0x18b   :  { %1946 = vset.pattern.permute.xlu1 %v2138_v47  ;;  %1948 = vset.pattern.permute.xlu0 %v2139_v62 }
 0x18c   :  { %301 = vperm.xlu1 %1946, %v2315_v43  }
 0x190   :  { %1947 = vset.pattern.permute.xlu1 %v2137_v0 }
 0x191   :  { %315 = vperm.xlu1 %1947, %v297_v52  }
 0x195   :  { %318 = vperm.xlu1 %1947, %v298_v54  }
 0x199   :  { %1949 = vset.pattern.permute.xlu1 %v2139_v62 }
 0x1a6   :  { %492 = vadd.xlane.f32.xlu0 %v491_v59 }
 0x1b9   :  { %151 = vmax.xlane.f32.xlu1 %v150_v60 }
 0x206   :  { %v310_v1 = vpop.permute.xlu1 %309  ;;  %v313_v6 = vpop.permute.xlu0 %312 }
 0x207   :  { %v325_v9 = vrot.slane %v310_v1, %v2339_v4  ;;  %v330_v10 = vrot.slane %v313_v6, %v2342_v5 }
 0x209   :  { %v332_v16 = vsel %vm331_vm3, %v330_v10, %v325_v9 }
 0x20b   :  { %v2336_v3 = vpop.permute.xlu1 %301 }
 0x210   :  { %v316_v7 = vpop.permute.xlu1 %315 }
 0x211   :  { %v336_v26 = vrot.slane %v316_v7, %v2339_v4 }
 0x214   :  { %v319_v12 = vpop.permute.xlu1 %318 }
 0x215   :  { %v340_v13 = vrot.slane %v319_v12, %v2342_v5 }
 0x217   :  { %v341_v17 = vsel %vm331_vm3, %v340_v13, %v336_v26  ;;  %v2376_v13 = vsub.s32 3, %v2244_v29 }
 0x218   :  { %v343_v22 = vsel %vm342_vm4, %v341_v17, %v332_v16 }
 0x219   :  { %v345_v23 = vmul.f32 %v343_v22, %v2336_v3  ;;  %v514_v22 = vrot.slane %v2303_v24, %v2376_v13 }
 0x21b   :  { %v347_v45 = vsel %vm346_vm5, %v345_v23, -inf }
 0x21c   :  { %348 = vmax.xlane.f32.xlu0 %v347_v45 }
 0x220   :  { %498 = vadd.xlane.f32.xlu0 %v497_v27  ;;  %v2141_v27 = vmov 10  }
 0x224   :  { %501 = vadd.xlane.f32.xlu0 %v500_v30 }
 0x233   :  { %v493_v55 = vpop.xlane.xlu0 %492 }
 0x234   :  { %v503_v60 = vmul.f32 %v2299_v18, %v493_v55 }
 0x246   :  { %v152_v32 = vpop.xlane.xlu1 %151 }
 0x247   :  { %v156_v35 = vsub.f32 %v2248_v33, %v152_v32  ;;  %v510_v33 = vrot.slane %v2303_v24, %v2366_v57 }
 0x249   :  { %v158_v36 = vmul.f32 1.442695, %v156_v35  ;;  %v517_v1 = vmul.f32 %v510_v33, %v503_v60  ;;  %v181_v60 = vadd.f32 1.0, %v2315_v43  ;;  %v687_v43 = vrot.slane %v2269_v46, %v2256_v38 }
 0x24b   :  { %1982 = vpow2.f32 %v158_v36  ;;  %v2143_v36 = vmov 12  }
 0x24c   :  { %1984 = vpow2.f32 %v139_v44 }
 0x255   :  { %v1983_v39 = vpop.eup %1982 }
 0x256   :  { %164 = vrot.lane.b32.xlu1 %v1983_v39, %s2140_s2  ;;  %v1985_v48 = vpop.eup %1984 }
 0x257   :  { %v143_v52 = vadd.f32 1.0, %v1985_v48 }
 0x259   :  { %1986 = vrcp.f32 %v143_v52 }
 0x263   :  { %v1987_v54 = vpop.eup %1986 }
 0x264   :  { %v364_v59 = vsub.f32 1.0, %v1987_v54 }
 0x27a   :  { %495 = vadd.xlane.f32.xlu1 %v494_v53 }
 0x28b   :  { %367 = vperm.xlu1 %1949, %v364_v59  }
 0x28f   :  { %1950 = vset.pattern.permute.xlu1 %v2137_v0 }
 0x290   :  { %526 = vperm.xlu1 %1950, %v517_v1  }
 0x2a9   :  { %v349_v2 = vpop.xlane.xlu0 %348 }
 0x2aa   :  { %v350_v6 = vsub.f32 %v345_v23, %v349_v2 }
 0x2ac   :  { %v351_v7 = vmul.f32 1.442695, %v350_v6 }
 0x2ad   :  { %v499_v11 = vpop.xlane.xlu0 %498 }
 0x2ae   :  { %1988 = vpow2.f32 %v351_v7  ;;  %v505_v45 = vmul.f32 %v2313_v40, %v499_v11 }
 0x2b0   :  { %v519_v25 = vmul.f32 %v514_v22, %v505_v45  ;;  %v695_v45 = vmul.f32 %v687_v43, %v2224_v15 }
 0x2b1   :  { %v502_v12 = vpop.xlane.xlu0 %501 }
 0x2b2   :  { %v506_v17 = vmul.f32 %v2322_v49, %v502_v12 }
 0x2b4   :  { %v520_v23 = vmul.f32 %v514_v22, %v506_v17 }
 0x2b8   :  { %v1989_v9 = vpop.eup %1988 }
 0x2b9   :  { %v353_v10 = vsel %vm346_vm5, %v1989_v9, 0.0 }
 0x2c8   :  { %v165_v56 = vpop.permute.xlu1 %164 }
 0x2c9   :  { %v171_v41 = vsel %vm170_vm6, %v165_v56, 0.0 }
 0x2ca   :  { %172 = vadd.xlane.f32.xlu0 %v171_v41 }
 0x2e0   :  { %360 = vperm.xlu0 %1948, %v1987_v54  }
 0x2e4   :  { %1951 = vset.pattern.permute.xlu0 %v2137_v0 }
 0x2ff   :  { %354 = vadd.xlane.f32.xlu0 %v353_v10 }
 0x307   :  { %v496_v26 = vpop.xlane.xlu1 %495 }
 0x308   :  { %v504_v16 = vmul.f32 %v2301_v19, %v496_v26  ;;  %v694_v26 = vmul.f32 %v687_v43, %v2207_v8 }
 0x30a   :  { %v518_v20 = vmul.f32 %v510_v33, %v504_v16  ;;  %v691_v16 = vrot.slane %v2276_v51, %v2256_v38 }
 0x30b   :  { %v2393_v52 = vpop.permute.xlu1 %367 }
 0x30c   :  { %529 = vperm.xlu1 %1950, %v518_v20   ;;  %v698_v20 = vsel %vm195_vm1, %v694_v26, 0.0  ;;  %v697_v22 = vmul.f32 %v691_v16, %v2235_v21 }
 0x30f   :  { %v527_v33 = vpop.permute.xlu1 %526 }
 0x310   :  { %535 = vperm.xlu1 %1950, %v520_v23  }
 0x314   :  { %1952 = vset.pattern.permute.xlu1 %v2141_v27 }
 0x315   :  { %532 = vperm.xlu0 %1951, %v519_v25   ;;  %v707_v25 = vsel %vm195_vm1, %v697_v22, 0.0 }
 0x319   :  { %1953 = vset.pattern.permute.xlu0 %v2142_v28 }
 0x357   :  { %v173_v30 = vpop.xlane.xlu0 %172 }
 0x358   :  { %1990 = vrcp.f32 %v173_v30  ;;  %v701_v30 = vsel %vm195_vm1, %v695_v45, 0.0  ;;  %v2444_v45 = vsub.s32 5, %v2244_v29 }
 0x35f   :  { %v2388_v44 = vpop.permute.xlu0 %360 }
 0x362   :  { %v1991_v32 = vpop.eup %1990 }
 0x363   :  { %v178_v35 = vmul.f32 %v1991_v32, %v1983_v39  ;;  %v230_v39 = vld [vmem:[%s2982_s3] sm:$0x3]  ;;  %v696_v32 = vmul.f32 %v691_v16, %v2222_v14 }
 0x364   :  { %v370_v54 = vmul.f32 %v2393_v52, %v230_v39 }
 0x365   :  { %388 = vperm.xlu0 %1953, %v178_v35   ;;  %383 = vperm.xlu1 %1952, %v178_v35  }
 0x369   :  { %1954 = vset.pattern.permute.xlu1 %v2143_v36  ;;  %1955 = vset.pattern.permute.xlu0 %v2144_v42 }
 0x36a   :  { %402 = vperm.xlu1 %1954, %v178_v35   ;;  %v704_v35 = vsel %vm195_vm1, %v696_v32, 0.0 }
 0x36e   :  { %1956 = vset.pattern.permute.xlu1 %v2137_v0 }
 0x38b   :  { %v530_v1 = vpop.permute.xlu1 %529 }
 0x38c   :  { %v355_v48 = vpop.xlane.xlu0 %354  ;;  %v544_v6 = vrot.slane %v530_v1, %v2342_v5 }
 0x38d   :  { %1992 = vrcp.f32 %v355_v48 }
 0x38f   :  { %v536_v41 = vpop.permute.xlu1 %535 }
 0x390   :  { %v553_v7 = vrot.slane %v536_v41, %v2342_v5 }
 0x394   :  { %v533_v56 = vpop.permute.xlu0 %532 }
 0x395   :  { %v549_v2 = vrot.slane %v533_v56, %v2339_v4 }
 0x397   :  { %v1993_v50 = vpop.eup %1992  ;;  %v554_v10 = vsel %vm331_vm3, %v553_v7, %v549_v2  ;;  %v2436_v2 = vsub.s32 4, %v2244_v29 }
 0x398   :  { %v357_v53 = vmul.f32 %v1993_v50, %v1989_v9  ;;  %v540_v9 = vrot.slane %v527_v33, %v2339_v4 }
 0x399   :  { %v717_v43 = vrot.slane %v2303_v24, %v2436_v2 }
 0x39a   :  { %v363_v55 = vmul.f32 %v2388_v44, %v357_v53  ;;  %v545_v11 = vsel %vm331_vm3, %v544_v6, %v540_v9 }
 0x39b   :  { %v556_v12 = vsel %vm555_vm7, %v554_v10, %v545_v11 }
 0x39c   :  { %v371_v59 = vadd.f32 %v370_v54, %v363_v55  ;;  %v558_v17 = vmul.f32 %v556_v12, %v2336_v3 }
 0x39e   :  { %376 = vrot.lane.b32.xlu0 %v371_v59, %s2145_s19  ;;  %373 = vrot.lane.b32.xlu1 %v371_v59, %s2146_s20  ;;  %v560_v23 = vsel %vm559_vm8, %v558_v17, -inf }
 0x3a2   :  { %396 = vrot.lane.b32.xlu0 %v371_v59, %s2147_s21  ;;  %393 = vrot.lane.b32.xlu1 %v371_v59, %s2148_s22 }
 0x3a6   :  { %412 = vperm.xlu0 %1955, %v181_v60  }
 0x3aa   :  { %1957 = vset.pattern.permute.xlu0 %v2137_v0 }
 0x3c5   :  { %699 = vadd.xlane.f32.xlu0 %v698_v20 }
 0x3c6   :  { %561 = vmax.xlane.f32.xlu1 %v560_v23 }
 0x3c9   :  { %708 = vadd.xlane.f32.xlu0 %v707_v25 }
 0x3ca   :  { %702 = vadd.xlane.f32.xlu1 %v701_v30  ;;  %v721_v30 = vrot.slane %v2303_v24, %v2444_v45 }
 0x3ce   :  { %705 = vadd.xlane.f32.xlu1 %v704_v35 }
 0x3e4   :  { %v2424_v48 = vpop.permute.xlu1 %383  ;;  %v2426_v50 = vpop.permute.xlu0 %388 }
 0x3e5   :  { %v391_v6 = vmul.f32 %v2426_v50, %v371_v59 }
 0x3e9   :  { %v2428_v39 = vpop.permute.xlu1 %402 }
 0x410   :  { %v377_v53 = vpop.permute.xlu0 %376  ;;  %v374_v54 = vpop.permute.xlu1 %373 }
 0x411   :  { %v380_v33 = vsel %vm379_vm9, %v374_v54, %v377_v53 }
 0x412   :  { %v386_v41 = vmul.f32 %v2424_v48, %v380_v33 }
 0x414   :  { %v397_v55 = vpop.permute.xlu0 %396  ;;  %v394_v60 = vpop.permute.xlu1 %393  ;;  %v392_v10 = vadd.f32 %v391_v6, %v386_v41 }
 0x415   :  { %v400_v1 = vsel %vm399_vm10, %v394_v60, %v397_v55 }
 0x416   :  { %v405_v7 = vmul.f32 %v2428_v39, %v400_v1 }
 0x418   :  { %v406_v16 = vadd.f32 %v405_v7, %v392_v10  ;;  %v868_v10 = vcombine.high %v2269_v46, %v2269_v46 }
 0x41a   :  { %v407_v59 = vadd.f32 1e-16, %v406_v16 }
 0x425   :  { %v2432_v56 = vpop.permute.xlu0 %412 }
 0x452   :  { %v700_v9 = vpop.xlane.xlu0 %699 }
 0x453   :  { %v710_v11 = vmul.f32 %v2299_v18, %v700_v9  ;;  %v562_v12 = vpop.xlane.xlu1 %561 }
 0x454   :  { %v563_v26 = vsub.f32 %v558_v17, %v562_v12  ;;  %v873_v12 = vrot.slane %v868_v10, %v2256_v38 }
 0x455   :  { %v724_v20 = vmul.f32 %v717_v43, %v710_v11 }
 0x456   :  { %v564_v22 = vmul.f32 1.442695, %v563_v26  ;;  %v709_v9 = vpop.xlane.xlu0 %708  ;;  %v869_v26 = vcombine.high %v2276_v51, %v2276_v51 }
 0x457   :  { %v703_v23 = vpop.xlane.xlu1 %702  ;;  %733 = vperm.xlu1 %1956, %v724_v20   ;;  %v713_v11 = vmul.f32 %v2322_v49, %v709_v9  ;;  %v880_v20 = vmul.f32 %v873_v12, %v2207_v8 }
 0x458   :  { %1994 = vpow2.f32 %v564_v22  ;;  %v711_v1 = vmul.f32 %v2301_v19, %v703_v23 }
 0x459   :  { %1996 = vlog2.f32 %v407_v59  ;;  %v727_v16 = vmul.f32 %v721_v30, %v713_v11  ;;  %v884_v22 = vsel %vm195_vm1, %v880_v20, 0.0 }
 0x45a   :  { %v725_v41 = vmul.f32 %v717_v43, %v711_v1  ;;  %v877_v43 = vrot.slane %v869_v26, %v2256_v38  ;;  %v2470_v1 = vsub.s32 6, %v2244_v29 }
 0x45b   :  { %v706_v25 = vpop.xlane.xlu1 %705 }
 0x45c   :  { %v712_v32 = vmul.f32 %v2313_v40, %v706_v25  ;;  %v882_v23 = vmul.f32 %v877_v43, %v2222_v14 }
 0x45e   :  { %v726_v35 = vmul.f32 %v721_v30, %v712_v32  ;;  %v890_v46 = vsel %vm195_vm1, %v882_v23, 0.0 }
 0x460   :  { %739 = vperm.xlu1 %1956, %v726_v35  }
 0x462   :  { %v1995_v17 = vpop.eup %1994 }
 0x463   :  { %v566_v53 = vsel %vm559_vm8, %v1995_v17, 0.0  ;;  %v1997_v54 = vpop.eup %1996 }
 0x464   :  { %567 = vadd.xlane.f32.xlu0 %v566_v53  ;;  %v409_v55 = vmul.f32 0.6931472, %v1997_v54 }
 0x466   :  { %v415_v60 = vmul.f32 %v2432_v56, %v409_v55 }
 0x468   :  { %v416_v33 = vmul.f32 1.442695, %v415_v60 }
 0x46a   :  { %1998 = vpow2.f32 %v416_v33 }
 0x474   :  { %v1999_v6 = vpop.eup %1998 }
 0x475   :  { %v418_v7 = vsel %vm346_vm5, %v1999_v6, 0.0 }
 0x47a   :  { %736 = vperm.xlu0 %1957, %v725_v41  }
 0x484   :  { %419 = vadd.xlane.f32.xlu1 %v418_v7 }
 0x495   :  { %742 = vperm.xlu1 %1956, %v727_v16  }
 0x499   :  { %885 = vadd.xlane.f32.xlu0 %v884_v22 }
 0x49d   :  { %891 = vadd.xlane.f32.xlu0 %v890_v46 }
 0x4d6   :  { %v734_v59 = vpop.permute.xlu1 %733 }
 0x4d7   :  { %v747_v23 = vrot.slane %v734_v59, %v2339_v4 }
 0x4df   :  { %v740_v25 = vpop.permute.xlu1 %739 }
 0x4e0   :  { %v756_v20 = vrot.slane %v740_v25, %v2339_v4 }
 0x4f1   :  { %v568_v32 = vpop.xlane.xlu0 %567 }
 0x4f2   :  { %2000 = vrcp.f32 %v568_v32 }
 0x4f9   :  { %v737_v33 = vpop.permute.xlu0 %736 }
 0x4fa   :  { %v751_v22 = vrot.slane %v737_v33, %v2342_v5 }
 0x4fc   :  { %v2001_v30 = vpop.eup %2000  ;;  %v752_v32 = vsel %vm331_vm3, %v751_v22, %v747_v23 }
 0x4fd   :  { %v570_v54 = vmul.f32 %v2001_v30, %v1995_v17  ;;  %v903_v17 = vrot.slane %v2303_v24, %v2470_v1 }
 0x4ff   :  { %v571_v41 = vmul.f32 %v570_v54, %v2388_v44  ;;  %v883_v54 = vmul.f32 %v877_v43, %v2235_v21 }
 0x501   :  { %v893_v59 = vsel %vm195_vm1, %v883_v54, 0.0 }
 0x511   :  { %v420_v35 = vpop.xlane.xlu1 %419 }
 0x512   :  { %v421_v51 = vadd.f32 1e-16, %v420_v35 }
 0x514   :  { %2002 = vrcp.f32 %v421_v51 }
 0x515   :  { %v743_v26 = vpop.permute.xlu1 %742 }
 0x516   :  { %v760_v16 = vrot.slane %v743_v26, %v2342_v5 }
 0x518   :  { %v761_v46 = vsel %vm331_vm3, %v760_v16, %v756_v20 }
 0x519   :  { %v763_v35 = vsel %vm762_vm11, %v761_v46, %v752_v32 }
 0x51a   :  { %v765_v51 = vmul.f32 %v763_v35, %v2336_v3  ;;  %v2500_v35 = vsub.s32 7, %v2244_v29 }
 0x51c   :  { %v767_v30 = vsel %vm766_vm12, %v765_v51, -inf }
 0x51e   :  { %v2003_v53 = vpop.eup %2002 }
 0x51f   :  { %v2464_v55 = vmul.f32 %v2003_v53, %v1999_v6  ;;  %v881_v53 = vmul.f32 %v873_v12, %v2224_v15 }
 0x521   :  { %424 = vst.msk [vmem:[#allocation4] sm:$0x3] %vm346_vm5, %v2464_v55  ;;  %v573_v60 = vrot.slane %v2464_v55, 6  ;;  %v887_v25 = vsel %vm195_vm1, %v881_v53, 0.0  ;;  %v907_v53 = vrot.slane %v2303_v24, %v2500_v35 }
 0x523   :  { %v575_v7 = vmul.f32 %v573_v60, %v2393_v52 }
 0x525   :  { %v576_v9 = vadd.f32 %v575_v7, %v571_v41 }
 0x526   :  { %v886_v10 = vpop.xlane.xlu0 %885 }
 0x527   :  { %v896_v6 = vmul.f32 %v2299_v18, %v886_v10  ;;  %578 = vrot.lane.b32.xlu1 %v576_v9, %s2146_s20  ;;  %v586_v12 = vmul.f32 %v576_v9, %v2426_v50 }
 0x529   :  { %v910_v11 = vmul.f32 %v903_v17, %v896_v6 }
 0x52b   :  { %581 = vrot.lane.b32.xlu1 %v576_v9, %s2145_s19  ;;  %919 = vperm.xlu0 %1957, %v910_v11  }
 0x52f   :  { %588 = vrot.lane.b32.xlu1 %v576_v9, %s2148_s22 }
 0x533   :  { %591 = vrot.lane.b32.xlu1 %v576_v9, %s2147_s21 }
 0x557   :  { %768 = vmax.xlane.f32.xlu1 %v767_v30 }
 0x55b   :  { %888 = vadd.xlane.f32.xlu1 %v887_v25 }
 0x55f   :  { %894 = vadd.xlane.f32.xlu1 %v893_v59 }
 0x599   :  { %v579_v60 = vpop.permute.xlu1 %578 }
 0x59d   :  { %v582_v33 = vpop.permute.xlu1 %581 }
 0x59e   :  { %v584_v10 = vsel %vm379_vm9, %v579_v60, %v582_v33 }
 0x59f   :  { %v585_v11 = vmul.f32 %v584_v10, %v2424_v48 }
 0x5a1   :  { %v589_v41 = vpop.permute.xlu1 %588  ;;  %v587_v16 = vadd.f32 %v586_v12, %v585_v11 }
 0x5a5   :  { %v592_v7 = vpop.permute.xlu1 %591 }
 0x5a6   :  { %v594_v6 = vsel %vm399_vm10, %v589_v41, %v592_v7  ;;  %v892_v7 = vpop.xlane.xlu0 %891 }
 0x5a7   :  { %v595_v26 = vmul.f32 %v594_v6, %v2428_v39  ;;  %v898_v10 = vmul.f32 %v2313_v40, %v892_v7 }
 0x5a9   :  { %v596_v43 = vadd.f32 %v595_v26, %v587_v16  ;;  %v912_v6 = vmul.f32 %v907_v53, %v898_v10 }
 0x5aa   :  { %v920_v26 = vpop.permute.xlu0 %919 }
 0x5ab   :  { %v597_v20 = vadd.f32 1e-16, %v596_v43 }
 0x5ad   :  { %2004 = vlog2.f32 %v597_v20 }
 0x5b7   :  { %v2005_v54 = vpop.eup %2004 }
 0x5e4   :  { %v769_v22 = vpop.xlane.xlu1 %768 }
 0x5e5   :  { %v770_v23 = vsub.f32 %v765_v51, %v769_v22  ;;  %v599_v51 = vmul.f32 0.6931472, %v2005_v54 }
 0x5e7   :  { %v771_v46 = vmul.f32 1.442695, %v770_v23  ;;  %v600_v33 = vmul.f32 %v599_v51, %v2432_v56 }
 0x5e8   :  { %v889_v32 = vpop.xlane.xlu1 %888 }
 0x5e9   :  { %2006 = vpow2.f32 %v771_v46  ;;  %v601_v41 = vmul.f32 1.442695, %v600_v33  ;;  %v897_v29 = vmul.f32 %v2301_v19, %v889_v32 }
 0x5eb   :  { %2008 = vpow2.f32 %v601_v41  ;;  %v911_v24 = vmul.f32 %v903_v17, %v897_v29  ;;  %v219_v41 = vmul.f32 %v2285_v58, %v2285_v58 }
 0x5ec   :  { %v895_v30 = vpop.xlane.xlu1 %894 }
 0x5ed   :  { %v899_v9 = vmul.f32 %v2322_v49, %v895_v30 }
 0x5ef   :  { %v913_v25 = vmul.f32 %v907_v53, %v899_v9 }
 0x5f1   :  { %928 = vperm.xlu0 %1957, %v913_v25  }
 0x5f3   :  { %v2007_v59 = vpop.eup %2006 }
 0x5f4   :  { %v773_v60 = vsel %vm766_vm12, %v2007_v59, 0.0 }
 0x5f5   :  { %774 = vadd.xlane.f32.xlu1 %v773_v60  ;;  %v2009_v11 = vpop.eup %2008 }
 0x5f6   :  { %v603_v12 = vsel %vm559_vm8, %v2009_v11, 0.0 }
 0x606   :  { %922 = vperm.xlu1 %1956, %v911_v24   ;;  %v933_v24 = vrot.slane %v920_v26, %v2339_v4 }
 0x60a   :  { %925 = vperm.xlu1 %1956, %v912_v6  }
 0x610   :  { %604 = vadd.xlane.f32.xlu0 %v603_v12 }
 0x670   :  { %v929_v16 = vpop.permute.xlu0 %928 }
 0x671   :  { %v946_v7 = vrot.slane %v929_v16, %v2342_v5 }
 0x682   :  { %v775_v43 = vpop.xlane.xlu1 %774 }
 0x683   :  { %2010 = vrcp.f32 %v775_v43 }
 0x686   :  { %v923_v54 = vpop.permute.xlu1 %922 }
 0x687   :  { %v937_v10 = vrot.slane %v923_v54, %v2342_v5 }
 0x689   :  { %v938_v43 = vsel %vm331_vm3, %v937_v10, %v933_v24 }
 0x68a   :  { %v926_v60 = vpop.permute.xlu1 %925 }
 0x68b   :  { %v942_v33 = vrot.slane %v926_v60, %v2339_v4 }
 0x68d   :  { %v2011_v23 = vpop.eup %2010  ;;  %v947_v6 = vsel %vm331_vm3, %v946_v7, %v942_v33 }
 0x68e   :  { %v777_v32 = vmul.f32 %v2011_v23, %v2007_v59  ;;  %v1061_v59 = vrot.slane %v2285_v58, %v2251_v34 }
 0x690   :  { %v778_v53 = vmul.f32 %v777_v32, %v2388_v44  ;;  %v2523_v51 = vrot.slane %v1061_v59, %v2251_v34  ;;  %v1062_v58 = vcombine.high %v1061_v59, %v1061_v59 }
 0x692   :  { %v1080_v29 = vrot.slane %v2523_v51, %v2256_v38  ;;  %v2541_v26 = vrot.slane %v1062_v58, %v2251_v34 }
 0x694   :  { %v1087_v12 = vmul.f32 %v1080_v29, %v2207_v8  ;;  %v1084_v32 = vrot.slane %v2541_v26, %v2256_v38 }
 0x696   :  { %v1089_v34 = vmul.f32 %v1084_v32, %v2222_v14 }
 0x69d   :  { %v605_v20 = vpop.xlane.xlu0 %604 }
 0x69e   :  { %v606_v22 = vadd.f32 1e-16, %v605_v20  ;;  %v949_v20 = vsel %vm948_vm13, %v947_v6, %v938_v43 }
 0x69f   :  { %v951_v16 = vmul.f32 %v949_v20, %v2336_v3  ;;  %v1097_v3 = vsel %vm195_vm1, %v1089_v34, 0.0 }
 0x6a0   :  { %2012 = vrcp.f32 %v606_v22  ;;  %v1091_v22 = vsel %vm195_vm1, %v1087_v12, 0.0 }
 0x6a1   :  { %v953_v23 = vsel %vm952_vm14, %v951_v16, -inf }
 0x6aa   :  { %v2013_v46 = vpop.eup %2012 }
 0x6ab   :  { %v2510_v30 = vmul.f32 %v2013_v46, %v2009_v11  ;;  %v223_v11 = vsel %vm195_vm1, %v219_v41, 0.0  ;;  %v1088_v46 = vmul.f32 %v1080_v29, %v2224_v15 }
 0x6ad   :  { %610 = vst.msk [vmem:[#allocation4] sm:$0xc] %vm559_vm8, %v2510_v30  ;;  %v780_v17 = vrot.slane %v2510_v30, 6 }
 0x6af   :  { %v782_v9 = vmul.f32 %v780_v17, %v2393_v52  ;;  %v1094_v17 = vsel %vm195_vm1, %v1088_v46, 0.0 }
 0x6b1   :  { %v783_v25 = vadd.f32 %v782_v9, %v778_v53  ;;  %v1090_v53 = vmul.f32 %v1084_v32, %v2235_v21 }
 0x6b3   :  { %788 = vrot.lane.b32.xlu0 %v783_v25, %s2145_s19  ;;  %785 = vrot.lane.b32.xlu1 %v783_v25, %s2146_s20  ;;  %v1100_v9 = vsel %vm195_vm1, %v1090_v53, 0.0  ;;  %v793_v24 = vmul.f32 %v783_v25, %v2426_v50 }
 0x6b7   :  { %795 = vrot.lane.b32.xlu1 %v783_v25, %s2148_s22 }
 0x6d2   :  { %224 = vadd.xlane.f32.xlu0 %v223_v11 }
 0x6d6   :  { %1092 = vadd.xlane.f32.xlu0 %v1091_v22 }
 0x6db   :  { %954 = vmax.xlane.f32.xlu1 %v953_v23 }
 0x6df   :  { %1095 = vadd.xlane.f32.xlu1 %v1094_v17 }
 0x6e3   :  { %1101 = vadd.xlane.f32.xlu1 %v1100_v9  ;;  %v122_v9 = vand.u32 2147483647, %v2246_v31 }
 0x6e5   :  { %v124_v34 = vsub.f32 0.0, %v122_v9 }
 0x6ec   :  { %798 = vrot.lane.b32.xlu0 %v783_v25, %s2147_s21 }
 0x70b   :  { %1098 = vadd.xlane.f32.xlu0 %v1097_v3 }
 0x725   :  { %v789_v54 = vpop.permute.xlu0 %788  ;;  %v786_v59 = vpop.permute.xlu1 %785 }
 0x726   :  { %v791_v41 = vsel %vm379_vm9, %v786_v59, %v789_v54 }
 0x727   :  { %v792_v10 = vmul.f32 %v791_v41, %v2424_v48 }
 0x729   :  { %v796_v7 = vpop.permute.xlu1 %795  ;;  %v794_v43 = vadd.f32 %v793_v24, %v792_v10 }
 0x75f   :  { %v225_v60 = vpop.xlane.xlu0 %224 }
 0x760   :  { %v227_v33 = vmax.f32 %v225_v60, 1e-16  ;;  %v127_v60 = vmul.f32 1.442695, %v124_v34 }
 0x762   :  { %2014 = vrsqrt.f32 %v227_v33 }
 0x763   :  { %v1093_v29 = vpop.xlane.xlu0 %1092 }
 0x764   :  { %v1103_v17 = vmul.f32 %v2299_v18, %v1093_v29 }
 0x767   :  { %v799_v6 = vpop.permute.xlu0 %798 }
 0x768   :  { %v801_v11 = vsel %vm399_vm10, %v796_v7, %v799_v6  ;;  %v955_v12 = vpop.xlane.xlu1 %954 }
 0x769   :  { %v802_v58 = vmul.f32 %v801_v11, %v2428_v39  ;;  %v956_v20 = vsub.f32 %v951_v16, %v955_v12 }
 0x76b   :  { %v803_v22 = vadd.f32 %v802_v58, %v794_v43  ;;  %v957_v23 = vmul.f32 1.442695, %v956_v20 }
 0x76c   :  { %v2558_v46 = vpop.eup %2014  ;;  %v1096_v29 = vpop.xlane.xlu1 %1095 }
 0x76d   :  { %v1111_v32 = vrot.slane %v2558_v46, %v2256_v38  ;;  %v804_v53 = vadd.f32 1e-16, %v803_v22  ;;  %2016 = vpow2.f32 %v957_v23  ;;  %v1104_v7 = vmul.f32 %v2301_v19, %v1096_v29 }
 0x76e   :  { %v1115_v20 = vrot.slane %v2558_v46, %v2310_v37 }
 0x76f   :  { %v1118_v25 = vmul.f32 %v1111_v32, %v1103_v17  ;;  %2018 = vlog2.f32 %v804_v53  ;;  %v1119_v24 = vmul.f32 %v1111_v32, %v1104_v7  ;;  %v120_v32 = vmax.f32 %v2246_v31, 0.0 }
 0x770   :  { %2020 = vpow2.f32 %v127_v60  ;;  %v1102_v53 = vpop.xlane.xlu1 %1101  ;;  %v1294_v7 = vcombine.high %v2523_v51, %v2523_v51 }
 0x771   :  { %1132 = vperm.xlu0 %1957, %v1118_v25   ;;  %v1106_v25 = vmul.f32 %v2322_v49, %v1102_v53 }
 0x773   :  { %v1121_v34 = vmul.f32 %v1115_v20, %v1106_v25 }
 0x777   :  { %v2564_v3 = vpop.eup %2016 }
 0x778   :  { %v959_v16 = vsel %vm952_vm14, %v2564_v3, 0.0 }
 0x779   :  { %v2019_v54 = vpop.eup %2018  ;;  %960 = vadd.xlane.f32.xlu1 %v959_v16  ;;  %v153_v16 = vsel %vm149_vm2, %v2246_v31, -inf }
 0x77a   :  { %v806_v59 = vmul.f32 0.6931472, %v2019_v54  ;;  %v2021_v10 = vpop.eup %2020 }
 0x77b   :  { %v130_v6 = vadd.f32 1.0, %v2021_v10 }
 0x77c   :  { %v807_v33 = vmul.f32 %v806_v59, %v2432_v56 }
 0x77e   :  { %v808_v41 = vmul.f32 1.442695, %v807_v33 }
 0x780   :  { %2022 = vpow2.f32 %v808_v41 }
 0x781   :  { %2024 = vlog2.f32 %v130_v6 }
 0x78a   :  { %1135 = vperm.xlu1 %1956, %v1119_v24   ;;  %v2023_v11 = vpop.eup %2022 }
 0x78b   :  { %v810_v12 = vsel %vm766_vm12, %v2023_v11, 0.0  ;;  %v2025_v58 = vpop.eup %2024 }
 0x78c   :  { %v134_v17 = vmul.f32 0.6931472, %v2025_v58  ;;  %v1299_v58 = vrot.slane %v1294_v7, %v2256_v38  ;;  %v138_v7 = vsub.f32 0.0, %v2246_v31 }
 0x78e   :  { %v2576_v9 = vadd.f32 %v134_v17, %v120_v32  ;;  %v1307_v32 = vmul.f32 %v1299_v58, %v2224_v15 }
 0x790   :  { %811 = vadd.xlane.f32.xlu0 %v810_v12  ;;  %v1313_v25 = vsel %vm195_vm1, %v1307_v32, 0.0 }
 0x798   :  { %v1099_v43 = vpop.xlane.xlu0 %1098 }
 0x799   :  { %v1105_v22 = vmul.f32 %v2313_v40, %v1099_v43 }
 0x79b   :  { %v1120_v23 = vmul.f32 %v1115_v20, %v1105_v22 }
 0x79d   :  { %1138 = vperm.xlu1 %1956, %v1120_v23  }
 0x7a1   :  { %1958 = vset.pattern.permute.xlu1 %v2138_v47 }
 0x7a2   :  { %1124 = vperm.xlu1 %1958, %v2576_v9  }
 0x7a6   :  { %1141 = vperm.xlu0 %1957, %v1121_v34   ;;  %1959 = vset.pattern.permute.xlu1 %v2139_v62 }
 0x7aa   :  { %1960 = vset.pattern.permute.xlu0 %v2139_v62 }
 0x7c5   :  { %154 = vmax.xlane.f32.xlu0 %v153_v16 }
 0x7f0   :  { %v1133_v54 = vpop.permute.xlu0 %1132 }
 0x7f1   :  { %v1146_v24 = vrot.slane %v1133_v54, %v2339_v4 }
 0x806   :  { %v961_v59 = vpop.xlane.xlu1 %960 }
 0x80a   :  { %v1136_v41 = vpop.permute.xlu1 %1135 }
 0x80b   :  { %v1150_v47 = vrot.slane %v1136_v41, %v2342_v5 }
 0x80d   :  { %v1151_v43 = vsel %vm331_vm3, %v1150_v47, %v1146_v24 }
 0x81c   :  { %v1139_v29 = vpop.permute.xlu1 %1138 }
 0x81d   :  { %v812_v60 = vpop.xlane.xlu0 %811  ;;  %v1155_v62 = vrot.slane %v1139_v29, %v2339_v4 }
 0x81e   :  { %v813_v33 = vadd.f32 1e-16, %v812_v60 }
 0x820   :  { %2026 = vrcp.f32 %v813_v33 }
 0x821   :  { %v2593_v20 = vpop.permute.xlu1 %1124  ;;  %2028 = vrcp.f32 %v961_v59 }
 0x825   :  { %v1142_v10 = vpop.permute.xlu0 %1141 }
 0x826   :  { %v1159_v6 = vrot.slane %v1142_v10, %v2342_v5 }
 0x828   :  { %v1160_v12 = vsel %vm331_vm3, %v1159_v6, %v1155_v62  ;;  %v141_v62 = vmul.f32 1.442695, %v138_v7 }
 0x829   :  { %v1161_v22 = vsel %vm342_vm4, %v1160_v12, %v1151_v43  ;;  %v1306_v12 = vmul.f32 %v1299_v58, %v2207_v8 }
 0x82a   :  { %v2027_v23 = vpop.eup %2026  ;;  %v1163_v51 = vmul.f32 %v1161_v22, %v2593_v20 }
 0x82b   :  { %v2597_v17 = vmul.f32 %v2027_v23, %v2023_v11  ;;  %v2029_v34 = vpop.eup %2028 }
 0x82c   :  { %v1164_v53 = vsel %vm346_vm5, %v1163_v51, -inf  ;;  %v963_v54 = vmul.f32 %v2029_v34, %v2564_v3 }
 0x82d   :  { %817 = vst.msk [vmem:[#allocation4] sm:$0x30] %vm766_vm12, %v2597_v17  ;;  %1165 = vmax.xlane.f32.xlu1 %v1164_v53  ;;  %v966_v16 = vrot.slane %v2597_v17, 6 }
 0x82e   :  { %v964_v60 = vmul.f32 %v963_v54, %v2388_v44  ;;  %v1295_v44 = vcombine.high %v2541_v26, %v2541_v26  ;;  %v1310_v26 = vsel %vm195_vm1, %v1306_v12, 0.0 }
 0x82f   :  { %v968_v11 = vmul.f32 %v966_v16, %v2393_v52 }
 0x830   :  { %v1303_v52 = vrot.slane %v1295_v44, %v2256_v38 }
 0x831   :  { %1314 = vadd.xlane.f32.xlu1 %v1313_v25  ;;  %v969_v33 = vadd.f32 %v968_v11, %v964_v60 }
 0x832   :  { %v1308_v3 = vmul.f32 %v1303_v52, %v2222_v14  ;;  %v1309_v24 = vmul.f32 %v1303_v52, %v2235_v21 }
 0x834   :  { %v1316_v10 = vsel %vm195_vm1, %v1308_v3, 0.0  ;;  %v1319_v6 = vsel %vm195_vm1, %v1309_v24, 0.0  ;;  %v979_v3 = vmul.f32 %v969_v33, %v2426_v50  ;;  %v1333_v50 = vrot.slane %v2558_v46, %v2376_v13 }
 0x842   :  { %971 = vrot.lane.b32.xlu1 %v969_v33, %s2146_s20 }
 0x846   :  { %974 = vrot.lane.b32.xlu1 %v969_v33, %s2145_s19 }
 0x84a   :  { %981 = vrot.lane.b32.xlu1 %v969_v33, %s2148_s22 }
 0x84e   :  { %984 = vrot.lane.b32.xlu1 %v969_v33, %s2147_s21 }
 0x852   :  { %v155_v59 = vpop.xlane.xlu0 %154 }
 0x853   :  { %v157_v41 = vsub.f32 %v2246_v31, %v155_v59 }
 0x855   :  { %v160_v29 = vmul.f32 1.442695, %v157_v41 }
 0x857   :  { %2030 = vpow2.f32 %v160_v29 }
 0x858   :  { %2032 = vpow2.f32 %v141_v62  ;;  %v1329_v62 = vrot.slane %v2558_v46, %v2366_v57 }
 0x861   :  { %v2613_v47 = vpop.eup %2030 }
 0x862   :  { %166 = vrot.lane.b32.xlu0 %v2613_v47, %s2140_s2  ;;  %v2033_v43 = vpop.eup %2032 }
 0x863   :  { %v144_v22 = vadd.f32 1.0, %v2033_v43 }
 0x865   :  { %2034 = vrcp.f32 %v144_v22 }
 0x86f   :  { %v2035_v23 = vpop.eup %2034 }
 0x870   :  { %v1181_v31 = vsub.f32 1.0, %v2035_v23 }
 0x872   :  { %1317 = vadd.xlane.f32.xlu1 %v1316_v10 }
 0x876   :  { %1320 = vadd.xlane.f32.xlu1 %v1319_v6 }
 0x881   :  { %1311 = vadd.xlane.f32.xlu0 %v1310_v26 }
 0x897   :  { %1184 = vperm.xlu0 %1960, %v1181_v31  }
 0x89b   :  { %1966 = vset.pattern.permute.xlu0 %v2137_v0 }
 0x8ba   :  { %v1166_v53 = vpop.xlane.xlu1 %1165 }
 0x8bb   :  { %v1167_v32 = vsub.f32 %v1163_v51, %v1166_v53 }
 0x8bd   :  { %v1168_v25 = vmul.f32 1.442695, %v1167_v32 }
 0x8be   :  { %v1315_v11 = vpop.xlane.xlu1 %1314 }
 0x8bf   :  { %2036 = vpow2.f32 %v1168_v25  ;;  %v1323_v26 = vmul.f32 %v2301_v19, %v1315_v11 }
 0x8c1   :  { %v1337_v31 = vmul.f32 %v1329_v62, %v1323_v26 }
 0x8c2   :  { %v972_v60 = vpop.permute.xlu1 %971 }
 0x8c6   :  { %v975_v59 = vpop.permute.xlu1 %974 }
 0x8c7   :  { %v977_v29 = vsel %vm379_vm9, %v972_v60, %v975_v59 }
 0x8c8   :  { %v978_v52 = vmul.f32 %v977_v29, %v2424_v48 }
 0x8c9   :  { %v2629_v54 = vpop.eup %2036 }
 0x8ca   :  { %v1170_v58 = vsel %vm346_vm5, %v2629_v54, 0.0  ;;  %v982_v41 = vpop.permute.xlu1 %981  ;;  %v980_v10 = vadd.f32 %v979_v3, %v978_v52 }
 0x8ce   :  { %v985_v51 = vpop.permute.xlu1 %984 }
 0x8cf   :  { %v987_v44 = vsel %vm399_vm10, %v982_v41, %v985_v51 }
 0x8d0   :  { %v988_v7 = vmul.f32 %v987_v44, %v2428_v39 }
 0x8d2   :  { %v989_v12 = vadd.f32 %v988_v7, %v980_v10 }
 0x8d4   :  { %v167_v34 = vpop.permute.xlu0 %166 }
 0x8d5   :  { %v174_v16 = vsel %vm170_vm6, %v167_v34, 0.0 }
 0x8d6   :  { %175 = vadd.xlane.f32.xlu1 %v174_v16 }
 0x8da   :  { %1171 = vadd.xlane.f32.xlu1 %v1170_v58 }
 0x8eb   :  { %1177 = vperm.xlu1 %1959, %v2035_v23   ;;  %v990_v23 = vadd.f32 1e-16, %v989_v12 }
 0x8ed   :  { %2038 = vlog2.f32 %v990_v23 }
 0x8ef   :  { %1961 = vset.pattern.permute.xlu1 %v2137_v0 }
 0x8f7   :  { %v2039_v33 = vpop.eup %2038 }
 0x8f8   :  { %v992_v53 = vmul.f32 0.6931472, %v2039_v33  ;;  %v1504_v33 = vrot.slane %v2291_v61, %v2256_v38 }
 0x8fa   :  { %v993_v32 = vmul.f32 %v992_v53, %v2432_v56 }
 0x8fc   :  { %v994_v25 = vmul.f32 1.442695, %v993_v32  ;;  %v1508_v32 = vrot.slane %v2294_v63, %v2256_v38 }
 0x8fe   :  { %2040 = vpow2.f32 %v994_v25 }
 0x8ff   :  { %v1318_v22 = vpop.xlane.xlu1 %1317 }
 0x900   :  { %v1324_v48 = vmul.f32 %v2313_v40, %v1318_v22 }
 0x902   :  { %v1338_v39 = vmul.f32 %v1333_v50, %v1324_v48 }
 0x903   :  { %v1321_v58 = vpop.xlane.xlu1 %1320 }
 0x904   :  { %v1325_v11 = vmul.f32 %v2322_v49, %v1321_v58  ;;  %v1514_v58 = vmul.f32 %v1508_v32, %v2235_v21 }
 0x906   :  { %v1339_v60 = vmul.f32 %v1333_v50, %v1325_v11  ;;  %v1524_v11 = vsel %vm195_vm1, %v1514_v58, 0.0 }
 0x908   :  { %v2041_v34 = vpop.eup %2040 }
 0x909   :  { %v996_v16 = vsel %vm952_vm14, %v2041_v34, 0.0 }
 0x90e   :  { %v1312_v24 = vpop.xlane.xlu0 %1311 }
 0x90f   :  { %v1322_v6 = vmul.f32 %v2299_v18, %v1312_v24 }
 0x911   :  { %v1336_v43 = vmul.f32 %v1329_v62, %v1322_v6 }
 0x913   :  { %1345 = vperm.xlu1 %1961, %v1336_v43  }
 0x917   :  { %1348 = vperm.xlu1 %1961, %v1337_v31  }
 0x91b   :  { %1351 = vperm.xlu1 %1961, %v1338_v39  }
 0x93f   :  { %997 = vadd.xlane.f32.xlu1 %v996_v16 }
 0x950   :  { %1354 = vperm.xlu1 %1961, %v1339_v60   ;;  %v1511_v60 = vmul.f32 %v1504_v33, %v2207_v8 }
 0x954   :  { %1962 = vset.pattern.permute.xlu1 %v2141_v27 }
 0x963   :  { %v176_v59 = vpop.xlane.xlu1 %175 }
 0x964   :  { %2042 = vrcp.f32 %v176_v59  ;;  %v1515_v59 = vsel %vm195_vm1, %v1511_v60, 0.0 }
 0x967   :  { %v1172_v56 = vpop.xlane.xlu1 %1171 }
 0x968   :  { %2044 = vrcp.f32 %v1172_v56 }
 0x96b   :  { %v2654_v29 = vpop.permute.xlu1 %1177 }
 0x96e   :  { %v2043_v41 = vpop.eup %2042 }
 0x96f   :  { %v180_v51 = vmul.f32 %v2043_v41, %v2613_v47 }
 0x971   :  { %1202 = vperm.xlu1 %1962, %v180_v51  }
 0x972   :  { %v2045_v47 = vpop.eup %2044 }
 0x975   :  { %1963 = vset.pattern.permute.xlu1 %v2142_v28  ;;  %v1174_v28 = vmul.f32 %v2045_v47, %v2629_v54  ;;  %v182_v54 = vadd.f32 1.0, %v2576_v9 }
 0x976   :  { %1207 = vperm.xlu1 %1963, %v180_v51  }
 0x977   :  { %v1180_v62 = vmul.f32 %v2654_v29, %v1174_v28 }
 0x97a   :  { %1964 = vset.pattern.permute.xlu1 %v2143_v36 }
 0x97b   :  { %1220 = vperm.xlu1 %1964, %v180_v51  }
 0x97f   :  { %1965 = vset.pattern.permute.xlu1 %v2144_v42  ;;  %v2662_v42 = vpop.permute.xlu0 %1184 }
 0x992   :  { %v1346_v44 = vpop.permute.xlu1 %1345 }
 0x993   :  { %v1359_v31 = vrot.slane %v1346_v44, %v2339_v4 }
 0x996   :  { %v1349_v52 = vpop.permute.xlu1 %1348 }
 0x997   :  { %v1363_v22 = vrot.slane %v1349_v52, %v2342_v5 }
 0x999   :  { %v1364_v50 = vsel %vm331_vm3, %v1363_v22, %v1359_v31 }
 0x99a   :  { %v1352_v27 = vpop.permute.xlu1 %1351 }
 0x99b   :  { %v1368_v23 = vrot.slane %v1352_v27, %v2339_v4 }
 0x9cc   :  { %v998_v3 = vpop.xlane.xlu1 %997 }
 0x9cd   :  { %v999_v7 = vadd.f32 1e-16, %v998_v3 }
 0x9cf   :  { %2046 = vrcp.f32 %v999_v7 }
 0x9d0   :  { %v1355_v26 = vpop.permute.xlu1 %1354 }
 0x9d1   :  { %v1372_v43 = vrot.slane %v1355_v26, %v2342_v5 }
 0x9d3   :  { %v1373_v48 = vsel %vm331_vm3, %v1372_v43, %v1368_v23 }
 0x9d4   :  { %v1374_v39 = vsel %vm555_vm7, %v1373_v48, %v1364_v50 }
 0x9d5   :  { %v1376_v9 = vmul.f32 %v1374_v39, %v2593_v20 }
 0x9d7   :  { %v1377_v53 = vsel %vm559_vm8, %v1376_v9, -inf }
 0x9d9   :  { %v2047_v10 = vpop.eup %2046 }
 0x9da   :  { %v2657_v24 = vmul.f32 %v2047_v10, %v2041_v34  ;;  %v1513_v34 = vmul.f32 %v1508_v32, %v2222_v14 }
 0x9dc   :  { %1003 = vst.msk [vmem:[#allocation4] sm:$0xc0] %vm952_vm14, %v2657_v24  ;;  %v1188_v36 = vrot.slane %v2657_v24, 6  ;;  %v1521_v16 = vsel %vm195_vm1, %v1513_v34, 0.0 }
 0x9de   :  { %v1190_v6 = vmul.f32 %v1188_v36, %v2662_v42 }
 0x9e0   :  { %v1191_v12 = vadd.f32 %v1190_v6, %v1180_v62 }
 0x9e2   :  { %1212 = vrot.lane.b32.xlu0 %v1191_v12, %s2148_s22  ;;  %1193 = vrot.lane.b32.xlu1 %v1191_v12, %s2146_s20 }
 0x9e6   :  { %1196 = vrot.lane.b32.xlu1 %v1191_v12, %s2145_s19 }
 0x9ea   :  { %1215 = vrot.lane.b32.xlu1 %v1191_v12, %s2147_s21 }
 0x9ee   :  { %1230 = vperm.xlu1 %1965, %v182_v54  }
 0x9f0   :  { %v2693_v41 = vpop.permute.xlu1 %1202 }
 0x9f2   :  { %1967 = vset.pattern.permute.xlu1 %v2137_v0  ;;  %v1512_v0 = vmul.f32 %v1504_v33, %v2224_v15 }
 0x9f4   :  { %v1518_v25 = vsel %vm195_vm1, %v1512_v0, 0.0 }
 0x9f5   :  { %v2695_v51 = vpop.permute.xlu1 %1207 }
 0x9f6   :  { %v1210_v7 = vmul.f32 %v2695_v51, %v1191_v12 }
 0x9fa   :  { %v2697_v56 = vpop.permute.xlu1 %1220 }
 0xa01   :  { %1378 = vmax.xlane.f32.xlu0 %v1377_v53 }
 0xa05   :  { %1519 = vadd.xlane.f32.xlu0 %v1518_v25  ;;  %v1534_v25 = vrot.slane %v2558_v46, %v2436_v2 }
 0xa09   :  { %1522 = vadd.xlane.f32.xlu0 %v1521_v16 }
 0xa0d   :  { %1525 = vadd.xlane.f32.xlu0 %v1524_v11 }
 0xa12   :  { %1516 = vadd.xlane.f32.xlu1 %v1515_v59 }
 0xa54   :  { %v1194_v44 = vpop.permute.xlu1 %1193  ;;  %v1213_v47 = vpop.permute.xlu0 %1212 }
 0xa58   :  { %v1197_v52 = vpop.permute.xlu1 %1196 }
 0xa59   :  { %v1199_v27 = vsel %vm379_vm9, %v1194_v44, %v1197_v52  ;;  %v1538_v52 = vrot.slane %v2558_v46, %v2444_v45 }
 0xa5a   :  { %v1205_v3 = vmul.f32 %v2693_v41, %v1199_v27 }
 0xa5c   :  { %v1216_v10 = vpop.permute.xlu1 %1215  ;;  %v1211_v36 = vadd.f32 %v1210_v7, %v1205_v3 }
 0xa5d   :  { %v1218_v28 = vsel %vm399_vm10, %v1213_v47, %v1216_v10  ;;  %v1683_v47 = vcombine.high %v2291_v61, %v2291_v61 }
 0xa5e   :  { %v1223_v62 = vmul.f32 %v2697_v56, %v1218_v28 }
 0xa5f   :  { %v1688_v10 = vrot.slane %v1683_v47, %v2256_v38 }
 0xa60   :  { %v1224_v6 = vadd.f32 %v1223_v62, %v1211_v36  ;;  %v1684_v36 = vcombine.high %v2294_v63, %v2294_v63 }
 0xa61   :  { %v1695_v28 = vmul.f32 %v1688_v10, %v2207_v8 }
 0xa62   :  { %v1225_v54 = vadd.f32 1e-16, %v1224_v6  ;;  %v1696_v6 = vmul.f32 %v1688_v10, %v2224_v15  ;;  %v1718_v10 = vrot.slane %v2558_v46, %v2470_v1 }
 0xa63   :  { %v1699_v62 = vsel %vm195_vm1, %v1695_v28, 0.0 }
 0xa64   :  { %2048 = vlog2.f32 %v1225_v54  ;;  %v1692_v54 = vrot.slane %v1684_v36, %v2256_v38 }
 0xa6d   :  { %v2704_v22 = vpop.permute.xlu1 %1230 }
 0xa6e   :  { %v2049_v26 = vpop.eup %2048 }
 0xa6f   :  { %v1227_v43 = vmul.f32 0.6931472, %v2049_v26  ;;  %v1702_v26 = vsel %vm195_vm1, %v1696_v6, 0.0 }
 0xa71   :  { %v1233_v23 = vmul.f32 %v2704_v22, %v1227_v43  ;;  %v1698_v43 = vmul.f32 %v1692_v54, %v2235_v21 }
 0xa73   :  { %v1234_v31 = vmul.f32 1.442695, %v1233_v23  ;;  %v1708_v61 = vsel %vm195_vm1, %v1698_v43, 0.0 }
 0xa75   :  { %2050 = vpow2.f32 %v1234_v31 }
 0xa7f   :  { %v2051_v48 = vpop.eup %2050 }
 0xa80   :  { %v1236_v12 = vsel %vm346_vm5, %v2051_v48, 0.0 }
 0xa81   :  { %1237 = vadd.xlane.f32.xlu0 %v1236_v12 }
 0xa8e   :  { %v1379_v50 = vpop.xlane.xlu0 %1378 }
 0xa8f   :  { %v1380_v39 = vsub.f32 %v1376_v9, %v1379_v50 }
 0xa91   :  { %v1381_v33 = vmul.f32 1.442695, %v1380_v39 }
 0xa92   :  { %v1520_v58 = vpop.xlane.xlu0 %1519 }
 0xa93   :  { %2052 = vpow2.f32 %v1381_v33  ;;  %v1528_v60 = vmul.f32 %v2301_v19, %v1520_v58 }
 0xa95   :  { %v1542_v59 = vmul.f32 %v1534_v25, %v1528_v60 }
 0xa96   :  { %v1523_v11 = vpop.xlane.xlu0 %1522 }
 0xa97   :  { %v1529_v9 = vmul.f32 %v2313_v40, %v1523_v11 }
 0xa99   :  { %v1543_v27 = vmul.f32 %v1538_v52, %v1529_v9 }
 0xa9a   :  { %v1526_v44 = vpop.xlane.xlu0 %1525 }
 0xa9b   :  { %v1530_v3 = vmul.f32 %v2322_v49, %v1526_v44 }
 0xa9d   :  { %v2053_v53 = vpop.eup %2052  ;;  %v1544_v7 = vmul.f32 %v1538_v52, %v1530_v3 }
 0xa9e   :  { %v1383_v0 = vsel %vm559_vm8, %v2053_v53, 0.0 }
 0xa9f   :  { %1384 = vadd.xlane.f32.xlu1 %v1383_v0  ;;  %v1517_v32 = vpop.xlane.xlu1 %1516 }
 0xaa0   :  { %v1527_v34 = vmul.f32 %v2299_v18, %v1517_v32 }
 0xaa2   :  { %v1541_v16 = vmul.f32 %v1534_v25, %v1527_v34 }
 0xaa4   :  { %1550 = vperm.xlu0 %1966, %v1541_v16  }
 0xab0   :  { %1553 = vperm.xlu1 %1967, %v1542_v59  }
 0xab4   :  { %1556 = vperm.xlu1 %1967, %v1543_v27   ;;  %v1697_v27 = vmul.f32 %v1692_v54, %v2222_v14 }
 0xab6   :  { %v1705_v3 = vsel %vm195_vm1, %v1697_v27, 0.0 }
 0xab8   :  { %1559 = vperm.xlu1 %1967, %v1544_v7  }
 0xac3   :  { %1700 = vadd.xlane.f32.xlu0 %v1699_v62 }
 0xac7   :  { %1703 = vadd.xlane.f32.xlu0 %v1702_v26 }
 0xacb   :  { %1709 = vadd.xlane.f32.xlu0 %v1708_v61 }
 0xb0e   :  { %v1238_v23 = vpop.xlane.xlu0 %1237 }
 0xb0f   :  { %v1239_v8 = vadd.f32 1e-16, %v1238_v23 }
 0xb11   :  { %2054 = vrcp.f32 %v1239_v8 }
 0xb1b   :  { %v2055_v31 = vpop.eup %2054 }
 0xb1c   :  { %v2729_v63 = vmul.f32 %v2055_v31, %v2051_v48 }
 0xb1e   :  { %1243 = vst.msk [vmem:[#allocation4 + $0x8] sm:$0x3] %vm346_vm5, %v2729_v63  ;;  %v1390_v12 = vrot.slane %v2729_v63, 6 }
 0xb20   :  { %v1392_v33 = vmul.f32 %v1390_v12, %v2662_v42 }
 0xb23   :  { %v1551_v16 = vpop.permute.xlu0 %1550 }
 0xb24   :  { %v1564_v11 = vrot.slane %v1551_v16, %v2339_v4 }
 0xb2c   :  { %v1385_v15 = vpop.xlane.xlu1 %1384 }
 0xb2d   :  { %2056 = vrcp.f32 %v1385_v15 }
 0xb30   :  { %v1554_v48 = vpop.permute.xlu1 %1553 }
 0xb34   :  { %v1557_v32 = vpop.permute.xlu1 %1556 }
 0xb35   :  { %v1573_v58 = vrot.slane %v1557_v32, %v2339_v4 }
 0xb37   :  { %v2057_v50 = vpop.eup %2056 }
 0xb38   :  { %v1387_v39 = vmul.f32 %v2057_v50, %v2053_v53  ;;  %v1560_v25 = vpop.permute.xlu1 %1559  ;;  %v1568_v53 = vrot.slane %v1554_v48, %v2342_v5 }
 0xb39   :  { %v1577_v34 = vrot.slane %v1560_v25, %v2342_v5 }
 0xb3a   :  { %v1388_v21 = vmul.f32 %v1387_v39, %v2654_v29  ;;  %v1569_v59 = vsel %vm331_vm3, %v1568_v53, %v1564_v11 }
 0xb3b   :  { %v1578_v60 = vsel %vm331_vm3, %v1577_v34, %v1573_v58 }
 0xb3c   :  { %v1393_v0 = vadd.f32 %v1392_v33, %v1388_v21  ;;  %v1579_v9 = vsel %vm762_vm11, %v1578_v60, %v1569_v59  ;;  %v1722_v21 = vrot.slane %v2558_v46, %v2500_v35 }
 0xb3d   :  { %v1581_v44 = vmul.f32 %v1579_v9, %v2593_v20 }
 0xb3e   :  { %1395 = vrot.lane.b32.xlu1 %v1393_v0, %s2146_s20  ;;  %v1403_v61 = vmul.f32 %v1393_v0, %v2695_v51 }
 0xb3f   :  { %v1582_v52 = vsel %vm766_vm12, %v1581_v44, -inf }
 0xb42   :  { %1398 = vrot.lane.b32.xlu1 %v1393_v0, %s2145_s19 }
 0xb46   :  { %1405 = vrot.lane.b32.xlu1 %v1393_v0, %s2148_s22 }
 0xb4a   :  { %1408 = vrot.lane.b32.xlu1 %v1393_v0, %s2147_s21 }
 0xb50   :  { %v1701_v7 = vpop.xlane.xlu0 %1700 }
 0xb51   :  { %v1711_v47 = vmul.f32 %v2299_v18, %v1701_v7 }
 0xb53   :  { %v1725_v28 = vmul.f32 %v1718_v10, %v1711_v47 }
 0xb54   :  { %v1704_v58 = vpop.xlane.xlu0 %1703 }
 0xb55   :  { %v1712_v11 = vmul.f32 %v2301_v19, %v1704_v58 }
 0xb57   :  { %v1726_v46 = vmul.f32 %v1718_v10, %v1712_v11 }
 0xb58   :  { %v1710_v59 = vpop.xlane.xlu0 %1709 }
 0xb59   :  { %v1714_v9 = vmul.f32 %v2322_v49, %v1710_v59  ;;  %v428_v59 = vrot.slane %v2464_v55, %v2256_v38 }
 0xb6e   :  { %1583 = vmax.xlane.f32.xlu1 %v1582_v52 }
 0xb72   :  { %1706 = vadd.xlane.f32.xlu1 %v1705_v3 }
 0xb83   :  { %1734 = vperm.xlu1 %1967, %v1725_v28  }
 0xbb0   :  { %v1396_v36 = vpop.permute.xlu1 %1395 }
 0xbb4   :  { %v1399_v62 = vpop.permute.xlu1 %1398 }
 0xbb5   :  { %v1401_v43 = vsel %vm379_vm9, %v1396_v36, %v1399_v62 }
 0xbb6   :  { %v1402_v54 = vmul.f32 %v1401_v43, %v2693_v41 }
 0xbb8   :  { %v1406_v6 = vpop.permute.xlu1 %1405  ;;  %v1404_v18 = vadd.f32 %v1403_v61, %v1402_v54 }
 0xbbc   :  { %v1409_v26 = vpop.permute.xlu1 %1408 }
 0xbbd   :  { %v1411_v14 = vsel %vm399_vm10, %v1406_v6, %v1409_v26 }
 0xbbe   :  { %v1412_v23 = vmul.f32 %v1411_v14, %v2697_v56 }
 0xbc0   :  { %v1413_v8 = vadd.f32 %v1412_v23, %v1404_v18 }
 0xbc2   :  { %v1414_v12 = vadd.f32 1e-16, %v1413_v8 }
 0xbfb   :  { %v1584_v31 = vpop.xlane.xlu1 %1583 }
 0xbfc   :  { %v1585_v15 = vsub.f32 %v1581_v44, %v1584_v31  ;;  %v1728_v44 = vmul.f32 %v1722_v21, %v1714_v9  ;;  %v439_v9 = vrot.slane %v2464_v55, %v2310_v37  ;;  %v832_v55 = vrot.slane %v2597_v17, %v2444_v45 }
 0xbfe   :  { %v1586_v50 = vmul.f32 1.442695, %v1585_v15 }
 0xbff   :  { %v1707_v39 = vpop.xlane.xlu1 %1706 }
 0xc00   :  { %2058 = vpow2.f32 %v1586_v50  ;;  %v1713_v33 = vmul.f32 %v2313_v40, %v1707_v39 }
 0xc01   :  { %2060 = vlog2.f32 %v1414_v12 }
 0xc02   :  { %v1727_v48 = vmul.f32 %v1722_v21, %v1713_v33 }
 0xc03   :  { %v1735_v52 = vpop.permute.xlu1 %1734 }
 0xc04   :  { %1740 = vperm.xlu1 %1967, %v1727_v48   ;;  %v1748_v18 = vrot.slane %v1735_v52, %v2339_v4 }
 0xc0a   :  { %v2059_v32 = vpop.eup %2058 }
 0xc0b   :  { %v2061_v0 = vpop.eup %2060  ;;  %v1588_v25 = vsel %vm766_vm12, %v2059_v32, 0.0 }
 0xc0c   :  { %1589 = vadd.xlane.f32.xlu0 %v1588_v25  ;;  %v1416_v34 = vmul.f32 0.6931472, %v2061_v0 }
 0xc0e   :  { %v1417_v16 = vmul.f32 %v1416_v34, %v2704_v22 }
 0xc10   :  { %v1418_v53 = vmul.f32 1.442695, %v1417_v16 }
 0xc12   :  { %2062 = vpow2.f32 %v1418_v53 }
 0xc1c   :  { %v2063_v60 = vpop.eup %2062 }
 0xc1d   :  { %v1420_v40 = vsel %vm559_vm8, %v2063_v60, 0.0 }
 0xc22   :  { %1737 = vperm.xlu0 %1966, %v1726_v46  }
 0xc28   :  { %1421 = vadd.xlane.f32.xlu1 %v1420_v40 }
 0xc39   :  { %1743 = vperm.xlu1 %1967, %v1728_v44  }
 0xc83   :  { %v1741_v27 = vpop.permute.xlu1 %1740 }
 0xc84   :  { %v1757_v61 = vrot.slane %v1741_v27, %v2339_v4  ;;  %v614_v27 = vrot.slane %v2510_v30, %v2366_v57 }
 0xc99   :  { %v1590_v3 = vpop.xlane.xlu0 %1589 }
 0xc9a   :  { %2064 = vrcp.f32 %v1590_v3 }
 0xca1   :  { %v1738_v14 = vpop.permute.xlu0 %1737 }
 0xca2   :  { %v1752_v23 = vrot.slane %v1738_v14, %v2342_v5 }
 0xca4   :  { %v2065_v28 = vpop.eup %2064  ;;  %v1753_v31 = vsel %vm331_vm3, %v1752_v23, %v1748_v18  ;;  %v2828_v23 = vld [vmem:[%s2983_s4 + $0x8] sm:$0xff] }
 0xca5   :  { %v1592_v10 = vmul.f32 %v2065_v28, %v2059_v32 }
 0xca7   :  { %v1593_v49 = vmul.f32 %v1592_v10, %v2654_v29  ;;  %v1007_v10 = vrot.slane %v2657_v24, %v2470_v1 }
 0xcb5   :  { %v1422_v7 = vpop.xlane.xlu1 %1421 }
 0xcb6   :  { %v1423_v47 = vadd.f32 1e-16, %v1422_v7  ;;  %v625_v7 = vrot.slane %v2510_v30, %v2376_v13  ;;  %v1018_v30 = vrot.slane %v2657_v24, %v2500_v35 }
 0xcb8   :  { %2066 = vrcp.f32 %v1423_v47  ;;  %v821_v47 = vrot.slane %v2597_v17, %v2436_v2  ;;  %v1258_v17 = vrot.slane %v2729_v63, %v2310_v37 }
 0xcb9   :  { %v1744_v43 = vpop.permute.xlu1 %1743 }
 0xcba   :  { %v1761_v54 = vrot.slane %v1744_v43, %v2342_v5 }
 0xcbc   :  { %v1762_v8 = vsel %vm331_vm3, %v1761_v54, %v1757_v61 }
 0xcbd   :  { %v1763_v15 = vsel %vm948_vm13, %v1762_v8, %v1753_v31 }
 0xcbe   :  { %v1765_v12 = vmul.f32 %v1763_v15, %v2593_v20  ;;  %v2841_v15 = vld [vmem:[%s2983_s4 + $0x10] sm:$0xff] }
 0xcc0   :  { %v1766_v50 = vsel %vm952_vm14, %v1765_v12, -inf }
 0xcc2   :  { %v2067_v19 = vpop.eup %2066 }
 0xcc3   :  { %v2767_v36 = vmul.f32 %v2067_v19, %v2063_v60 }
 0xcc5   :  { %1427 = vst.msk [vmem:[#allocation4 + $0x8] sm:$0xc] %vm559_vm8, %v2767_v36  ;;  %v1595_v62 = vrot.slane %v2767_v36, 6 }
 0xcc7   :  { %v1597_v6 = vmul.f32 %v1595_v62, %v2662_v42  ;;  %v1247_v62 = vrot.slane %v2729_v63, %v2256_v38 }
 0xcc9   :  { %v1598_v26 = vadd.f32 %v1597_v6, %v1593_v49  ;;  %v1431_v49 = vrot.slane %v2767_v36, %v2366_v57  ;;  %v1442_v6 = vrot.slane %v2767_v36, %v2376_v13 }
 0xccb   :  { %1603 = vrot.lane.b32.xlu1 %v1598_v26, %s2145_s19  ;;  %1600 = vrot.lane.b32.xlu0 %v1598_v26, %s2146_s20  ;;  %v1608_v5 = vmul.f32 %v1598_v26, %v2695_v51 }
 0xccf   :  { %1613 = vrot.lane.b32.xlu1 %v1598_v26, %s2147_s21  ;;  %1610 = vrot.lane.b32.xlu0 %v1598_v26, %s2148_s22 }
 0xcee   :  { %1767 = vmax.xlane.f32.xlu0 %v1766_v50 }
 0xd3d   :  { %v1604_v39 = vpop.permute.xlu1 %1603  ;;  %v1601_v21 = vpop.permute.xlu0 %1600 }
 0xd3e   :  { %v1606_v33 = vsel %vm379_vm9, %v1601_v21, %v1604_v39 }
 0xd3f   :  { %v1607_v48 = vmul.f32 %v1606_v33, %v2693_v41 }
 0xd41   :  { %v1614_v4 = vpop.permute.xlu1 %1613  ;;  %v1611_v32 = vpop.permute.xlu0 %1610  ;;  %v1609_v25 = vadd.f32 %v1608_v5, %v1607_v48  ;;  %v2848_v48 = vld [vmem:[%s2983_s4 + $0x18] sm:$0xff] }
 0xd42   :  { %v1616_v0 = vsel %vm399_vm10, %v1611_v32, %v1614_v4 }
 0xd43   :  { %v1617_v34 = vmul.f32 %v1616_v0, %v2697_v56 }
 0xd45   :  { %v1618_v16 = vadd.f32 %v1617_v34, %v1609_v25 }
 0xd47   :  { %v1619_v20 = vadd.f32 1e-16, %v1618_v16 }
 0xd49   :  { %2068 = vlog2.f32 %v1619_v20 }
 0xd53   :  { %v2069_v53 = vpop.eup %2068 }
 0xd54   :  { %v1621_v58 = vmul.f32 0.6931472, %v2069_v53 }
 0xd56   :  { %v1622_v11 = vmul.f32 %v1621_v58, %v2704_v22 }
 0xd58   :  { %v1623_v46 = vmul.f32 1.442695, %v1622_v11 }
 0xd5a   :  { %2070 = vpow2.f32 %v1623_v46 }
 0xd64   :  { %v2071_v60 = vpop.eup %2070 }
 0xd65   :  { %v1625_v40 = vsel %vm766_vm12, %v2071_v60, 0.0 }
 0xd66   :  { %1626 = vadd.xlane.f32.xlu1 %v1625_v40 }
 0xd77   :  { %434 = vbcast.lane.b32.xlu1 %v428_v59, 264 }
 0xd7b   :  { %441 = vbcast.lane.b32.xlu1 %v439_v9, 256  ;;  %v1768_v44 = vpop.xlane.xlu0 %1767 }
 0xd7c   :  { %v1769_v52 = vsub.f32 %v1765_v12, %v1768_v44 }
 0xd7e   :  { %v1770_v3 = vmul.f32 1.442695, %v1769_v52 }
 0xd7f   :  { %616 = vbcast.lane.b32.xlu1 %v614_v27, 256 }
 0xd80   :  { %2072 = vpow2.f32 %v1770_v3 }
 0xd83   :  { %627 = vbcast.lane.b32.xlu1 %v625_v7, 256 }
 0xd87   :  { %823 = vbcast.lane.b32.xlu1 %v821_v47, 256 }
 0xd8a   :  { %v2806_v28 = vpop.eup %2072 }
 0xd8b   :  { %834 = vbcast.lane.b32.xlu1 %v832_v55, 256  ;;  %v1772_v19 = vsel %vm952_vm14, %v2806_v28, 0.0 }
 0xd8c   :  { %1773 = vadd.xlane.f32.xlu0 %v1772_v19 }
 0xd8f   :  { %1009 = vbcast.lane.b32.xlu1 %v1007_v10, 256 }
 0xd93   :  { %1020 = vbcast.lane.b32.xlu1 %v1018_v30, 256 }
 0xd97   :  { %1249 = vbcast.lane.b32.xlu1 %v1247_v62, 256 }
 0xd9b   :  { %1260 = vbcast.lane.b32.xlu1 %v1258_v17, 256 }
 0xd9f   :  { %1433 = vbcast.lane.b32.xlu1 %v1431_v49, 256 }
 0xda2   :  { %430 = vbcast.lane.b32.xlu0 %v428_v59, 256 }
 0xda3   :  { %1444 = vbcast.lane.b32.xlu1 %v1442_v6, 256 }
 0xda6   :  { %445 = vbcast.lane.b32.xlu0 %v439_v9, 264 }
 0xdaa   :  { %620 = vbcast.lane.b32.xlu0 %v614_v27, 264 }
 0xdae   :  { %631 = vbcast.lane.b32.xlu0 %v625_v7, 264 }
 0xdb2   :  { %827 = vbcast.lane.b32.xlu0 %v821_v47, 264 }
 0xdb6   :  { %838 = vbcast.lane.b32.xlu0 %v832_v55, 264 }
 0xdba   :  { %1013 = vbcast.lane.b32.xlu0 %v1007_v10, 264 }
 0xdbe   :  { %1024 = vbcast.lane.b32.xlu0 %v1018_v30, 264 }
 0xdc2   :  { %1253 = vbcast.lane.b32.xlu0 %v1247_v62, 264 }
 0xdc6   :  { %1264 = vbcast.lane.b32.xlu0 %v1258_v17, 264 }
 0xdca   :  { %1437 = vbcast.lane.b32.xlu0 %v1431_v49, 264 }
 0xdce   :  { %1448 = vbcast.lane.b32.xlu0 %v1442_v6, 264 }
 0xdf3   :  { %v1627_v38 = vpop.xlane.xlu1 %1626 }
 0xdf4   :  { %v1628_v37 = vadd.f32 1e-16, %v1627_v38 }
 0xdf6   :  { %2074 = vrcp.f32 %v1628_v37 }
 0xdf7   :  { %v435_v63 = vpop.permute.xlu1 %434 }
 0xdf8   :  { %v448_v18 = vmul.f32 %v2828_v23, %v435_v63 }
 0xdfa   :  { %v452_v31 = vsel %vm195_vm1, %v448_v18, 0.0 }
 0xdfb   :  { %v442_v26 = vpop.permute.xlu1 %441 }
 0xdfc   :  { %v449_v12 = vmul.f32 %v2841_v15, %v442_v26 }
 0xdfe   :  { %v460_v25 = vsel %vm195_vm1, %v449_v12, 0.0 }
 0xdff   :  { %v617_v43 = vpop.permute.xlu1 %616 }
 0xe00   :  { %v2075_v57 = vpop.eup %2074 }
 0xe01   :  { %v1630_v24 = vmul.f32 %v2075_v57, %v2071_v60 }
 0xe03   :  { %1632 = vst.msk [vmem:[#allocation4 + $0x8] sm:$0x30] %vm766_vm12, %v1630_v24  ;;  %v1636_v13 = vrot.slane %v1630_v24, %v2436_v2  ;;  %v1647_v36 = vrot.slane %v1630_v24, %v2444_v45  ;;  %v628_v14 = vpop.permute.xlu1 %627  ;;  %v2834_v45 = vld [vmem:[%s2983_s4] sm:$0xff]  ;;  %v1779_v32 = vrot.slane %v1630_v24, 6  ;;  %s2149_s4 = smov [#allocation4]  }
 0xe04   :  { %v633_v34 = vmul.f32 %v2834_v45, %v617_v43  ;;  %v635_v27 = vmul.f32 %v2841_v15, %v628_v14  ;;  %s1884_s30 = sshll.u32 %s2149_s4, 4  ;;  %s1885_s30 = int_to_ptr.vmem [resolvable:$true] %s1884_s30 }
 0xe05   :  { %1642 = vbcast.lane.b32.xlu0 %v1636_v13, 264  ;;  %1638 = vbcast.lane.b32.xlu1 %v1636_v13, 256  ;;  %v1781_v44 = vmul.f32 %v1779_v32, %v2662_v42  ;;  %s2088_s7 = scalar_lea.vmem %s1885_s30, 256  ;;  %p2093_p1 = scmp.lt.s32.totalorder %s1885_s30, %s1885_s30 }
 0xe06   :  { %v637_v52 = vsel %vm195_vm1, %v633_v34, 0.0  ;;  %v646_v42 = vsel %vm195_vm1, %v635_v27, 0.0  ;;  %p2089_p0 = scmp.ne.s32.totalorder %s1885_s30, %s2088_s7  ;;  %p2094_p2 = scmp.lt.s32.totalorder %s2088_s7, %s2088_s7 }
 0xe07   :  { %v824_v61 = vpop.permute.xlu1 %823 }
 0xe08   :  { %v840_v62 = vmul.f32 %v2834_v45, %v824_v61  ;;  %p2095_p3 = por %p2094_p2, %p2093_p1 }
 0xe09   :  { %1653 = vbcast.lane.b32.xlu0 %v1647_v36, 264  ;;  %1649 = vbcast.lane.b32.xlu1 %v1647_v36, 256 }
 0xe0a   :  { %v844_v43 = vsel %vm195_vm1, %v840_v62, 0.0  ;;  %p2096_p4 = pnand %p2095_p3, %p2089_p0 }
 0xe0b   :  { %v835_v39 = vpop.permute.xlu1 %834 }
 0xe0c   :  { %v842_v14 = vmul.f32 %v2841_v15, %v835_v39 }
 0xe0e   :  { %v853_v32 = vsel %vm195_vm1, %v842_v14, 0.0 }
 0xe0f   :  { %v1010_v60 = vpop.permute.xlu1 %1009 }
 0xe13   :  { %v1021_v6 = vpop.permute.xlu1 %1020 }
 0xe19   :  { %v1774_v54 = vpop.xlane.xlu0 %1773 }
 0xe1a   :  { %2076 = vrcp.f32 %v1774_v54 }
 0xe1d   :  { %v431_v2 = vpop.permute.xlu0 %430 }
 0xe1e   :  { %v447_v8 = vmul.f32 %v2834_v45, %v431_v2 }
 0xe20   :  { %v451_v50 = vsel %vm195_vm1, %v447_v8, 0.0 }
 0xe21   :  { %v453_v21 = vadd.f32 %v452_v31, %v451_v50  ;;  %v446_v33 = vpop.permute.xlu0 %445 }
 0xe22   :  { %v450_v5 = vmul.f32 %v2848_v48, %v446_v33 }
 0xe23   :  { %v454_v4 = vrot.slane %v453_v21, 4 }
 0xe24   :  { %v2077_v0 = vpop.eup %2076  ;;  %v461_v16 = vsel %vm195_vm1, %v450_v5, 0.0 }
 0xe25   :  { %v1776_v20 = vmul.f32 %v2077_v0, %v2806_v28  ;;  %v455_v53 = vadd.f32 %v454_v4, %v453_v21  ;;  %v462_v58 = vadd.f32 %v461_v16, %v460_v25  ;;  %v621_v11 = vpop.permute.xlu0 %620  ;;  %v1250_v21 = vpop.permute.xlu1 %1249  ;;  %v1026_v0 = vmul.f32 %v2834_v45, %v1010_v60 }
 0xe26   :  { %v634_v46 = vmul.f32 %v2828_v23, %v621_v11  ;;  %v1266_v62 = vmul.f32 %v2834_v45, %v1250_v21 }
 0xe27   :  { %v1777_v40 = vmul.f32 %v1776_v20, %v2654_v29  ;;  %v456_v59 = vrot.slane %v455_v53, 2  ;;  %v463_v9 = vrot.slane %v462_v58, 4 }
 0xe28   :  { %v638_v3 = vsel %vm195_vm1, %v634_v46, 0.0 }
 0xe29   :  { %v457_v7 = vadd.f32 %v456_v59, %v455_v53  ;;  %v464_v47 = vadd.f32 %v463_v9, %v462_v58  ;;  %v639_v55 = vadd.f32 %v638_v3, %v637_v52  ;;  %v632_v28 = vpop.permute.xlu0 %631  ;;  %v2861_v19 = vadd.f32 %v1781_v44, %v1777_v40  ;;  %v1261_v52 = vpop.permute.xlu1 %1260 }
 0xe2a   :  { %v636_v10 = vmul.f32 %v2848_v48, %v632_v28  ;;  %v1030_v59 = vsel %vm195_vm1, %v1026_v0, 0.0  ;;  %v1028_v9 = vmul.f32 %v2841_v15, %v1021_v6  ;;  %v1268_v14 = vmul.f32 %v2841_v15, %v1261_v52 }
 0xe2b   :  { %v465_v30 = vrot.slane %v464_v47, 2  ;;  %v640_v29 = vrot.slane %v639_v55, 4  ;;  %1787 = vrot.lane.b32.xlu0 %v2861_v19, %s2145_s19  ;;  %1784 = vrot.lane.b32.xlu1 %v2861_v19, %s2146_s20  ;;  %v458_v17 = vrot.slane %v457_v7, 1 }
 0xe2c   :  { %v647_v49 = vsel %vm195_vm1, %v636_v10, 0.0 }
 0xe2d   :  { %v466_v38 = vadd.f32 %v465_v30, %v464_v47  ;;  %v641_v37 = vadd.f32 %v640_v29, %v639_v55  ;;  %v648_v57 = vadd.f32 %v647_v49, %v646_v42  ;;  %v828_v24 = vpop.permute.xlu0 %827  ;;  %v459_v54 = vadd.f32 %v458_v17, %v457_v7 }
 0xe2e   :  { %v841_v63 = vmul.f32 %v2828_v23, %v828_v24  ;;  %v1039_v42 = vsel %vm195_vm1, %v1028_v9, 0.0 }
 0xe2f   :  { %v467_v13 = vrot.slane %v466_v38, 1  ;;  %v642_v36 = vrot.slane %v641_v37, 2  ;;  %v649_v26 = vrot.slane %v648_v57, 4  ;;  %1797 = vrot.lane.b32.xlu0 %v2861_v19, %s2147_s21  ;;  %1794 = vrot.lane.b32.xlu1 %v2861_v19, %s2148_s22 }
 0xe30   :  { %v845_v61 = vsel %vm195_vm1, %v841_v63, 0.0  ;;  %v1434_v63 = vpop.permute.xlu1 %1433 }
 0xe31   :  { %v468_v18 = vadd.f32 %v467_v13, %v466_v38  ;;  %v643_v2 = vadd.f32 %v642_v36, %v641_v37  ;;  %v650_v8 = vadd.f32 %v649_v26, %v648_v57  ;;  %v846_v31 = vadd.f32 %v845_v61, %v844_v43  ;;  %v839_v12 = vpop.permute.xlu0 %838 }
 0xe32   :  { %v843_v50 = vmul.f32 %v2848_v48, %v839_v12  ;;  %v1270_v43 = vsel %vm195_vm1, %v1266_v62, 0.0 }
 0xe33   :  { %v471_v33 = vsel %vm342_vm4, %v468_v18, %v459_v54  ;;  %v651_v5 = vrot.slane %v650_v8, 2  ;;  %v847_v4 = vrot.slane %v846_v31, 4  ;;  %v644_v39 = vrot.slane %v643_v2, 1 }
 0xe34   :  { %474 = vst.msk [vmem:[#allocation2] sm:$0x3] %vm473_vm15, %v471_v33  ;;  %v854_v25 = vsel %vm195_vm1, %v843_v50, 0.0 }
 0xe35   :  { %v652_v34 = vadd.f32 %v651_v5, %v650_v8  ;;  %v848_v16 = vadd.f32 %v847_v4, %v846_v31  ;;  %v855_v20 = vadd.f32 %v854_v25, %v853_v32  ;;  %v1014_v53 = vpop.permute.xlu0 %1013  ;;  %v645_v44 = vadd.f32 %v644_v39, %v643_v2  ;;  %v1445_v25 = vpop.permute.xlu1 %1444 }
 0xe36   :  { %v1027_v58 = vmul.f32 %v2828_v23, %v1014_v53  ;;  %v1279_v4 = vsel %vm195_vm1, %v1268_v14, 0.0  ;;  %v1450_v32 = vmul.f32 %v2834_v45, %v1434_v63  ;;  %v1452_v9 = vmul.f32 %v2841_v15, %v1445_v25 }
 0xe37   :  { %v653_v11 = vrot.slane %v652_v34, 1  ;;  %v849_v46 = vrot.slane %v848_v16, 2  ;;  %v856_v40 = vrot.slane %v855_v20, 4 }
 0xe38   :  { %v1031_v60 = vsel %vm195_vm1, %v1027_v58, 0.0 }
 0xe39   :  { %v654_v27 = vadd.f32 %v653_v11, %v652_v34  ;;  %v850_v3 = vadd.f32 %v849_v46, %v848_v16  ;;  %v857_v7 = vadd.f32 %v856_v40, %v855_v20  ;;  %v1032_v47 = vadd.f32 %v1031_v60, %v1030_v59  ;;  %v1025_v55 = vpop.permute.xlu0 %1024 }
 0xe3a   :  { %v1029_v28 = vmul.f32 %v2848_v48, %v1025_v55  ;;  %v1454_v59 = vsel %vm195_vm1, %v1450_v32, 0.0 }
 0xe3b   :  { %v657_v10 = vsel %vm342_vm4, %v654_v27, %v645_v44  ;;  %v858_v30 = vrot.slane %v857_v7, 2  ;;  %v1033_v29 = vrot.slane %v1032_v47, 4  ;;  %v851_v17 = vrot.slane %v850_v3, 1 }
 0xe3c   :  { %660 = vst.msk [vmem:[#allocation2 + $0x2] sm:$0x3] %vm473_vm15, %v657_v10  ;;  %v1040_v49 = vsel %vm195_vm1, %v1029_v28, 0.0 }
 0xe3d   :  { %v859_v6 = vadd.f32 %v858_v30, %v857_v7  ;;  %v1034_v38 = vadd.f32 %v1033_v29, %v1032_v47  ;;  %v1041_v37 = vadd.f32 %v1040_v49, %v1039_v42  ;;  %v1254_v57 = vpop.permute.xlu0 %1253  ;;  %v852_v54 = vadd.f32 %v851_v17, %v850_v3 }
 0xe3e   :  { %v1267_v24 = vmul.f32 %v2828_v23, %v1254_v57  ;;  %v1463_v29 = vsel %vm195_vm1, %v1452_v9, 0.0 }
 0xe3f   :  { %v860_v13 = vrot.slane %v859_v6, 1  ;;  %v1035_v36 = vrot.slane %v1034_v38, 2  ;;  %v1042_v26 = vrot.slane %v1041_v37, 4 }
 0xe40   :  { %v1271_v61 = vsel %vm195_vm1, %v1267_v24, 0.0 }
 0xe41   :  { %v861_v18 = vadd.f32 %v860_v13, %v859_v6  ;;  %v1036_v2 = vadd.f32 %v1035_v36, %v1034_v38  ;;  %v1043_v8 = vadd.f32 %v1042_v26, %v1041_v37  ;;  %v1272_v31 = vadd.f32 %v1271_v61, %v1270_v43  ;;  %v1265_v12 = vpop.permute.xlu0 %1264 }
 0xe42   :  { %v1269_v50 = vmul.f32 %v2848_v48, %v1265_v12 }
 0xe43   :  { %v864_v21 = vsel %vm342_vm4, %v861_v18, %v852_v54  ;;  %v1044_v33 = vrot.slane %v1043_v8, 2  ;;  %v1273_v5 = vrot.slane %v1272_v31, 4  ;;  %v1037_v0 = vrot.slane %v1036_v2, 1 }
 0xe44   :  { %867 = vst.msk [vmem:[#allocation2 + $0x4] sm:$0x3] %vm473_vm15, %v864_v21  ;;  %v1280_v39 = vsel %vm195_vm1, %v1269_v50, 0.0 }
 0xe45   :  { %v1045_v34 = vadd.f32 %v1044_v33, %v1043_v8  ;;  %v1274_v16 = vadd.f32 %v1273_v5, %v1272_v31  ;;  %v1281_v20 = vadd.f32 %v1280_v39, %v1279_v4  ;;  %v1438_v53 = vpop.permute.xlu0 %1437  ;;  %v1038_v44 = vadd.f32 %v1037_v0, %v1036_v2 }
 0xe46   :  { %v1451_v58 = vmul.f32 %v2828_v23, %v1438_v53 }
 0xe47   :  { %v1046_v11 = vrot.slane %v1045_v34, 1  ;;  %v1275_v46 = vrot.slane %v1274_v16, 2  ;;  %v1282_v40 = vrot.slane %v1281_v20, 4 }
 0xe48   :  { %v1455_v60 = vsel %vm195_vm1, %v1451_v58, 0.0 }
 0xe49   :  { %v1047_v52 = vadd.f32 %v1046_v11, %v1045_v34  ;;  %v1276_v27 = vadd.f32 %v1275_v46, %v1274_v16  ;;  %v1283_v3 = vadd.f32 %v1282_v40, %v1281_v20  ;;  %v1456_v7 = vadd.f32 %v1455_v60, %v1454_v59  ;;  %v1449_v47 = vpop.permute.xlu0 %1448 }
 0xe4a   :  { %v1453_v55 = vmul.f32 %v2848_v48, %v1449_v47 }
 0xe4b   :  { %v1050_v28 = vsel %vm342_vm4, %v1047_v52, %v1038_v44  ;;  %v1284_v10 = vrot.slane %v1283_v3, 2  ;;  %v1457_v30 = vrot.slane %v1456_v7, 4  ;;  %v1277_v62 = vrot.slane %v1276_v27, 1 }
 0xe4c   :  { %1053 = vst.msk [vmem:[#allocation2 + $0x6] sm:$0x3] %vm473_vm15, %v1050_v28  ;;  %v1464_v42 = vsel %vm195_vm1, %v1453_v55, 0.0 }
 0xe4d   :  { %v1285_v17 = vadd.f32 %v1284_v10, %v1283_v3  ;;  %v1458_v49 = vadd.f32 %v1457_v30, %v1456_v7  ;;  %v1465_v6 = vadd.f32 %v1464_v42, %v1463_v29  ;;  %v1278_v24 = vadd.f32 %v1277_v62, %v1276_v27 }
 0xe4e   :  { %v1792_v30 = vmul.f32 %v2861_v19, %v2695_v51 }
 0xe4f   :  { %v1286_v38 = vrot.slane %v1285_v17, 1  ;;  %v1459_v37 = vrot.slane %v1458_v49, 2  ;;  %v1466_v57 = vrot.slane %v1465_v6, 4 }
 0xe51   :  { %v1287_v63 = vadd.f32 %v1286_v38, %v1285_v17  ;;  %v1460_v13 = vadd.f32 %v1459_v37, %v1458_v49  ;;  %v1467_v36 = vadd.f32 %v1466_v57, %v1465_v6 }
 0xe53   :  { %v1290_v26 = vsel %vm342_vm4, %v1287_v63, %v1278_v24  ;;  %v1468_v43 = vrot.slane %v1467_v36, 2  ;;  %v1461_v14 = vrot.slane %v1460_v13, 1 }
 0xe54   :  { %1293 = vst.msk [vmem:[#allocation2 + $0x8] sm:$0x3] %vm473_vm15, %v1290_v26 }
 0xe55   :  { %v1469_v54 = vadd.f32 %v1468_v43, %v1467_v36  ;;  %v1462_v18 = vadd.f32 %v1461_v14, %v1460_v13 }
 0xe57   :  { %v1470_v61 = vrot.slane %v1469_v54, 1 }
 0xe59   :  { %v1471_v2 = vadd.f32 %v1470_v61, %v1469_v54 }
 0xe5b   :  { %v1474_v8 = vsel %vm342_vm4, %v1471_v2, %v1462_v18 }
 0xe5c   :  { %1477 = vst.msk [vmem:[#allocation2 + $0xa] sm:$0x3] %vm473_vm15, %v1474_v8 }
 0xe77   :  { %v1643_v31 = vpop.permute.xlu0 %1642  ;;  %v1639_v12 = vpop.permute.xlu1 %1638 }
 0xe78   :  { %v1656_v50 = vmul.f32 %v2828_v23, %v1643_v31  ;;  %v1655_v21 = vmul.f32 %v2834_v45, %v1639_v12 }
 0xe7a   :  { %v1660_v33 = vsel %vm195_vm1, %v1656_v50, 0.0  ;;  %v1659_v5 = vsel %vm195_vm1, %v1655_v21, 0.0 }
 0xe7b   :  { %v1661_v4 = vadd.f32 %v1660_v33, %v1659_v5  ;;  %v1654_v32 = vpop.permute.xlu0 %1653  ;;  %v1650_v0 = vpop.permute.xlu1 %1649 }
 0xe7c   :  { %v1658_v39 = vmul.f32 %v2848_v48, %v1654_v32  ;;  %v1657_v25 = vmul.f32 %v2841_v15, %v1650_v0 }
 0xe7d   :  { %v1662_v34 = vrot.slane %v1661_v4, 4 }
 0xe7e   :  { %v1669_v16 = vsel %vm195_vm1, %v1658_v39, 0.0  ;;  %v1668_v20 = vsel %vm195_vm1, %v1657_v25, 0.0 }
 0xe7f   :  { %v1663_v53 = vadd.f32 %v1662_v34, %v1661_v4  ;;  %v1670_v58 = vadd.f32 %v1669_v16, %v1668_v20 }
 0xe81   :  { %v1664_v11 = vrot.slane %v1663_v53, 2  ;;  %v1671_v46 = vrot.slane %v1670_v58, 4 }
 0xe83   :  { %v1665_v40 = vadd.f32 %v1664_v11, %v1663_v53  ;;  %v1672_v59 = vadd.f32 %v1671_v46, %v1670_v58 }
 0xe85   :  { %v1673_v9 = vrot.slane %v1672_v59, 2  ;;  %v1666_v44 = vrot.slane %v1665_v40, 1 }
 0xe87   :  { %v1674_v60 = vadd.f32 %v1673_v9, %v1672_v59  ;;  %v1667_v27 = vadd.f32 %v1666_v44, %v1665_v40 }
 0xe89   :  { %v1675_v52 = vrot.slane %v1674_v60, 1 }
 0xe8b   :  { %v1676_v3 = vadd.f32 %v1675_v52, %v1674_v60 }
 0xe8d   :  { %v1679_v7 = vsel %vm342_vm4, %v1676_v3, %v1667_v27 }
 0xe8e   :  { %1682 = vst.msk [vmem:[#allocation2 + $0xc] sm:$0x3] %vm473_vm15, %v1679_v7 }
 0xe9d   :  { %v1788_v47 = vpop.permute.xlu0 %1787  ;;  %v1785_v55 = vpop.permute.xlu1 %1784 }
 0xe9e   :  { %v1790_v28 = vsel %vm379_vm9, %v1785_v55, %v1788_v47 }
 0xe9f   :  { %v1791_v10 = vmul.f32 %v1790_v28, %v2693_v41 }
 0xea1   :  { %v1798_v29 = vpop.permute.xlu0 %1797  ;;  %v1795_v42 = vpop.permute.xlu1 %1794  ;;  %v1793_v17 = vadd.f32 %v1792_v30, %v1791_v10 }
 0xea2   :  { %v1800_v62 = vsel %vm399_vm10, %v1795_v42, %v1798_v29 }
 0xea3   :  { %v1801_v49 = vmul.f32 %v1800_v62, %v2697_v56 }
 0xea5   :  { %v1802_v6 = vadd.f32 %v1801_v49, %v1793_v17 }
 0xea7   :  { %v1803_v38 = vadd.f32 1e-16, %v1802_v6 }
 0xea9   :  { %2078 = vlog2.f32 %v1803_v38 }
 0xeb3   :  { %v2079_v37 = vpop.eup %2078 }
 0xeb4   :  { %v1805_v57 = vmul.f32 0.6931472, %v2079_v37 }
 0xeb6   :  { %v1806_v24 = vmul.f32 %v1805_v57, %v2704_v22 }
 0xeb8   :  { %v1807_v63 = vmul.f32 1.442695, %v1806_v24 }
 0xeba   :  { %2080 = vpow2.f32 %v1807_v63 }
 0xec4   :  { %v2081_v41 = vpop.eup %2080 }
 0xec5   :  { %v1809_v13 = vsel %vm952_vm14, %v2081_v41, 0.0 }
 0xec6   :  { %1810 = vadd.xlane.f32.xlu1 %v1809_v13 }
 0xf53   :  { %v1811_v51 = vpop.xlane.xlu1 %1810 }
 0xf54   :  { %v1812_v19 = vadd.f32 1e-16, %v1811_v51 }
 0xf56   :  { %2082 = vrcp.f32 %v1812_v19 }
 0xf60   :  { %v2083_v36 = vpop.eup %2082 }
 0xf61   :  { %v1814_v26 = vmul.f32 %v2083_v36, %v2081_v41 }
 0xf63   :  { %v1820_v56 = vrot.slane %v1814_v26, %v2470_v1  ;;  %1816 = vst.msk [vmem:[#allocation4 + $0x8] sm:$0xc0] %vm952_vm14, %v1814_v26  ;;  %v1831_v43 = vrot.slane %v1814_v26, %v2500_v35 }
 0xf65   :  { %1822 = vbcast.lane.b32.xlu0 %v1820_v56, 256 }
 0xf69   :  { %1826 = vbcast.lane.b32.xlu0 %v1820_v56, 264 }
 0xf6d   :  { %1833 = vbcast.lane.b32.xlu0 %v1831_v43, 256 }
 0xf71   :  { %1837 = vbcast.lane.b32.xlu0 %v1831_v43, 264 }
 0xf72   :  { %2099 = shalt.err (!%p2096_p4)
}
 0xf73   :  { %s2100_s9 = scalar_lea.hbm %s2985_s6, 256 }
 0xf74   :  { %p2101_p5 = scmp.ne.s32.totalorder %s2985_s6, %s2100_s9  ;;  %p2104_p6 = scmp.lt.u32.totalorder %s2100_s9, %s2985_s6 }
 0xf76   :  { %p2106_p7 = pnand %p2104_p6, %p2101_p5 }
 0xf78   :  { %2109 = shalt.err (!%p2106_p7)
}
 0xf79   :  { %s2150_s0 = smov 32   ;;  %s2151_s14 = smov 2  }
 0xf7a   :  { %1890 = dma.vmem_to_hbm [thread:$0]  %s1885_s30, 256, %s2985_s6, [#allocation5], %s2150_s0, %s2150_s0, %s2151_s14  }
 0xf7b   :  { %s2152_s6 = smov [#allocation2]  }
 0xf7c   :  { %s1872_s2 = sshll.u32 %s2152_s6, 4  ;;  %s1873_s2 = int_to_ptr.vmem [resolvable:$true] %s1872_s2 }
 0xf7d   :  { %s2110_s17 = scalar_lea.vmem %s1873_s2, 256  ;;  %p2115_p9 = scmp.lt.s32.totalorder %s1873_s2, %s1873_s2 }
 0xf7e   :  { %p2111_p8 = scmp.ne.s32.totalorder %s1873_s2, %s2110_s17  ;;  %p2116_p10 = scmp.lt.s32.totalorder %s2110_s17, %s2110_s17 }
 0xf80   :  { %p2117_p11 = por %p2116_p10, %p2115_p9 }
 0xf82   :  { %p2118_p12 = pnand %p2117_p11, %p2111_p8 }
 0xfd7   :  { %v1823_v1 = vpop.permute.xlu0 %1822 }
 0xfd8   :  { %v1839_v35 = vmul.f32 %v2834_v45, %v1823_v1 }
 0xfda   :  { %v1843_v54 = vsel %vm195_vm1, %v1839_v35, 0.0 }
 0xfdb   :  { %v1827_v22 = vpop.permute.xlu0 %1826 }
 0xfdc   :  { %v1840_v14 = vmul.f32 %v2828_v23, %v1827_v22 }
 0xfde   :  { %v1844_v61 = vsel %vm195_vm1, %v1840_v14, 0.0 }
 0xfdf   :  { %v1845_v18 = vadd.f32 %v1844_v61, %v1843_v54  ;;  %v1834_v2 = vpop.permute.xlu0 %1833 }
 0xfe0   :  { %v1841_v31 = vmul.f32 %v2841_v15, %v1834_v2 }
 0xfe1   :  { %v1846_v8 = vrot.slane %v1845_v18, 4 }
 0xfe2   :  { %v1852_v33 = vsel %vm195_vm1, %v1841_v31, 0.0 }
 0xfe3   :  { %v1847_v12 = vadd.f32 %v1846_v8, %v1845_v18  ;;  %v1838_v50 = vpop.permute.xlu0 %1837 }
 0xfe4   :  { %v1842_v21 = vmul.f32 %v2848_v48, %v1838_v50 }
 0xfe5   :  { %v1848_v5 = vrot.slane %v1847_v12, 2 }
 0xfe6   :  { %v1853_v45 = vsel %vm195_vm1, %v1842_v21, 0.0 }
 0xfe7   :  { %v1854_v4 = vadd.f32 %v1853_v45, %v1852_v33  ;;  %v1849_v32 = vadd.f32 %v1848_v5, %v1847_v12 }
 0xfe9   :  { %v1855_v23 = vrot.slane %v1854_v4, 4  ;;  %v1850_v25 = vrot.slane %v1849_v32, 1 }
 0xfeb   :  { %v1856_v0 = vadd.f32 %v1855_v23, %v1854_v4  ;;  %v1851_v15 = vadd.f32 %v1850_v25, %v1849_v32 }
 0xfed   :  { %v1857_v39 = vrot.slane %v1856_v0, 2 }
 0xfef   :  { %v1858_v34 = vadd.f32 %v1857_v39, %v1856_v0 }
 0xff1   :  { %v1859_v16 = vrot.slane %v1858_v34, 1 }
 0xff3   :  { %v1860_v20 = vadd.f32 %v1859_v16, %v1858_v34 }
 0xff5   :  { %v1863_v48 = vsel %vm342_vm4, %v1860_v20, %v1851_v15 }
 0xff6   :  { %1866 = vst.msk [vmem:[#allocation2 + $0xe] sm:$0x3] %vm473_vm15, %v1863_v48 }
 0xff7   :  { %2121 = shalt.err (!%p2118_p12)
}
 0xff8   :  { %s2122_s20 = scalar_lea.hbm %s2984_s5, 256 }
 0xff9   :  { %p2123_p13 = scmp.ne.s32.totalorder %s2984_s5, %s2122_s20  ;;  %p2126_p0 = scmp.lt.u32.totalorder %s2122_s20, %s2984_s5 }
 0xffb   :  { %p2128_p1 = pnand %p2126_p0, %p2123_p13 }
 0xffd   :  { %2131 = shalt.err (!%p2128_p1)
}
 0xffe   :  { %1878 = dma.vmem_to_hbm [thread:$0]  %s1873_s2, 256, %s2984_s5, [#allocation3], %s2150_s0, %s2150_s0, %s2151_s14  }
 0xfff   :  { %2132 = dma.done.wait [#allocation3], 256  }
0x1000   :  { %2133 = vsyncadd [#allocation3], 4294967040 }
0x1001   :  { %2134 = dma.done.wait [#allocation5], 256  }
0x1002   :  { %2135 = vsyncadd [#allocation5], 4294967040 }
0x1003   :  { %1897 = vsyncpa [#allocation3], 1 }
0x1004   :  { %1898 = vsyncpa [#allocation5], 1 }

</bundles_post_ra>
